<compile_context>
chip_gen: v7x
topology: tpu7x:2x2x1
jax: 0.10.0
libtpu: 0.0.40
codegen_flags: <defaults>
</compile_context>

<pallas_src>
import math
from functools import partial

import numpy as np
import jax
import jax.numpy as jnp
from jax.experimental import pallas as pl
from jax.experimental.pallas import tpu as pltpu

EPS = 1e-5  # nn.BatchNorm2d default eps


# ----------------------- host-side constant builders -------------------------

def _conv_masks(N, H, W):
    """(9, M) f32 validity masks for the 9 taps of a 3x3 / pad=1 conv in the
    flattened r = n*H*W + h*W + w layout (zero cross-row / cross-image taps)."""
    M = N * H * W
    r = np.arange(M)
    h = (r // W) % H
    w = r % W
    masks = np.zeros((9, M), np.float32)
    j = 0
    for dy in (-1, 0, 1):
        for dx in (-1, 0, 1):
            ok = (h + dy >= 0) & (h + dy < H) & (w + dx >= 0) & (w + dx < W)
            masks[j] = ok.astype(np.float32)
            j += 1
    return masks


def _pool2x2_matrix(N, H, W):
    """(M, M//4) f32 matrix implementing avg_pool2d(kernel=2, stride=2)."""
    Ho, Wo = H // 2, W // 2
    P = np.zeros((N * H * W, N * Ho * Wo), np.float32)
    for n in range(N):
        for h in range(H):
            for w in range(W):
                P[(n * H + h) * W + w, (n * Ho + h // 2) * Wo + w // 2] = 0.25
    return P


def _global_pool_matrix(N, H, W):
    """(M, N) f32 matrix implementing the per-image global average pool."""
    P = np.zeros((N * H * W, N), np.float32)
    for n in range(N):
        P[n * H * W:(n + 1) * H * W, n] = 1.0 / (H * W)
    return P


# ----------------------- parameters: packed blobs + static plan ---------------

def build_model(key, *, growthRate=4, depth=10, n_layers=3, nClasses=16,
                batch=2, height=16, width=16):
    """Mirrors Model.__init__ (bottleneck=False -> reduction=1.0, dropout=0).
    Returns (plan, packed_inputs): `plan` is a static Python structure of row
    offsets / shapes; `packed_inputs` is 5 big arrays (few DMAs)."""
    nDense = (depth - 4) // n_layers
    nCh = 2 * growthRate
    N = batch
    keys = iter(jax.random.split(key, 8 + n_layers * (nDense + 1)))

    w_list, bn_list, pool_list, mask_list = [], [], [], []

    def add_w(arr):                       # arr: (cout, K) f32 -> row offset
        row = sum(int(a.shape[0]) for a in w_list)
        w_list.append(np.asarray(arr, np.float32))
        return row

    def add_bn(c):                        # eval-mode BN fold, default stats
        row = sum(int(a.shape[0]) for a in bn_list)
        sb = np.zeros((c, 2), np.float32)
        sb[:, 0] = 1.0 / math.sqrt(1.0 + EPS)   # scale ; bias stays 0
        bn_list.append(sb)
        return row

    def add_pool(mat):
        row = sum(int(a.shape[0]) for a in pool_list)
        pool_list.append(np.asarray(mat, np.float32))
        return row

    def conv3x3(k, cin, cout):
        # PyTorch init: normal(0, sqrt(2/(3*3*cout))), layout (cout, cin, ky, kx)
        n = 3 * 3 * cout
        w = jax.random.normal(k, (cout, cin, 3, 3), jnp.float32) * math.sqrt(2.0 / n)
        # -> kernel layout (cout, 9*cin), col = (ky*3+kx)*cin + cin_idx
        #    (matches the in-kernel tap-stacking order).
        return np.asarray(jnp.transpose(w, (0, 2, 3, 1)).reshape(cout, 9 * cin))

    def conv1x1(k, cin, cout):
        n = cout
        return np.asarray(jax.random.normal(k, (cout, cin), jnp.float32)
                          * math.sqrt(2.0 / n))

    H, W = height, width
    plan = {'N': N, 'nClasses': nClasses}
    plan['conv1'] = dict(cin=3, cout=nCh, w_row=add_w(conv3x3(next(keys), 3, nCh)))

    stages = []
    for li in range(n_layers):
        M = N * H * W
        mask_list.append(_conv_masks(N, H, W))          # (9, M)
        layers = []
        for _ in range(int(nDense)):
            layers.append(dict(cin=nCh, cout=growthRate,
                               bn_row=add_bn(nCh),
                               w_row=add_w(conv3x3(next(keys), nCh, growthRate))))
            nCh += growthRate
        st = dict(M=M, W=W, mask_row=9 * li, layers=layers, c_end=nCh, trans=None)
        if li < n_layers - 1:
            nOut = int(math.floor(nCh * 1.0))           # reduction = 1.0
            st['trans'] = dict(cin=nCh, cout=nOut,
                               bn_row=add_bn(nCh),
                               w_row=add_w(conv1x1(next(keys), nCh, nOut)),
                               pool_row=add_pool(_pool2x2_matrix(N, H, W)),
                               M_out=M // 4)
            nCh = nOut
            H, W = H // 2, W // 2
        stages.append(st)
    plan['stages'] = stages

    M = N * H * W
    plan['final'] = dict(c=nCh, M=M, bn_row=add_bn(nCh),
                         gpool_row=add_pool(_global_pool_matrix(N, H, W)))

    # fc: weight uniform(-1/sqrt(C), 1/sqrt(C)) (nn.Linear default), bias zeroed
    bound = 1.0 / math.sqrt(nCh)
    fc_w = jax.random.uniform(next(keys), (nClasses, nCh), jnp.float32, -bound, bound)
    fc_blob = jnp.concatenate([fc_w, jnp.zeros((nClasses, 1), jnp.float32)], axis=1)

    # ---- pack blobs (pad to common widths; row offsets already recorded) ----
    def pack(rows, width, dtype):
        R = sum(int(r.shape[0]) for r in rows)
        out = np.zeros((max(8, -(-R // 8) * 8), width), np.float32)
        r0 = 0
        for r in rows:
            out[r0:r0 + r.shape[0], :r.shape[1]] = r
            r0 += r.shape[0]
        return jnp.asarray(out).astype(dtype)

    w_blob = pack(w_list, max(r.shape[1] for r in w_list), jnp.bfloat16)
    bn_blob = pack(bn_list, 2, jnp.float32)                       # col0=scale col1=bias
    mask_blob = pack(mask_list, max(m.shape[1] for m in mask_list), jnp.float32)
    pool_blob = pack(pool_list, max(p.shape[1] for p in pool_list), jnp.bfloat16)

    return plan, (w_blob, bn_blob, mask_blob, pool_blob, fc_blob)


# ----------------------- in-kernel building blocks ----------------------------

def _shift_pixels(y, s, M):
    """y[:, r] <- y[:, r + s] (circular; masks kill every wrapped / cross-row tap)."""
    if s == 0:
        return y
    if M % 128 == 0:
        return pltpu.roll(y, shift=(-s) % M, axis=1)   # XLU lane rotate, no relayout
    # sub-128-lane stage (M = 32): slices stay inside one vreg tile
    return jnp.roll(y, -s, axis=1)


def _bn_relu(bn_ref, x, row, c):
    scale = bn_ref[row:row + c, 0:1]
    bias = bn_ref[row:row + c, 1:2]
    return jnp.maximum(x * scale + bias, 0.0)


def _conv3x3_fused(y, w_ref, mask_ref, *, w_row, cout, mask_row, M, W):
    """3x3 same-padding conv in (Cin, M=N*H*W) layout as ONE MXU matmul:
    stack 9 rolled + masked copies of y into (9*Cin, M) bf16, multiply by the
    (Cout, 9*Cin) bf16 weight slice, accumulate in f32."""
    cin = y.shape[0]
    pieces = []
    j = 0
    for dy in (-1, 0, 1):
        for dx in (-1, 0, 1):
            s = dy * W + dx
            sh = _shift_pixels(y, s, M)
            # mask multiply in f32 (v5e VPU has no bf16 path); cast afterwards
            pieces.append(sh * mask_ref[mask_row + j:mask_row + j + 1, 0:M])
            j += 1
    stack = jnp.concatenate(pieces, axis=0).astype(jnp.bfloat16)   # (9*cin, M)
    return jnp.dot(w_ref[w_row:w_row + cout, 0:9 * cin], stack,
                   preferred_element_type=jnp.float32)             # (cout, M) f32


# ----------------------- the fused whole-network kernel -----------------------

def _densenet_kernel(plan, x_ref, w_ref, bn_ref, mask_ref, pool_ref, fc_ref,
                     o_ref, *slabs):
    st0 = plan['stages'][0]
    c1 = plan['conv1']

    # conv1: 3x3, 3 -> 2*growthRate, on the raw image (stage-0 geometry/masks)
    out = _conv3x3_fused(x_ref[...], w_ref, mask_ref,
                         w_row=c1['w_row'], cout=c1['cout'],
                         mask_row=st0['mask_row'], M=st0['M'], W=st0['W'])
    slabs[0][pl.ds(0, c1['cout']), :] = out
    cur = c1['cout']

    for li, st in enumerate(plan['stages']):
        slab = slabs[li]
        M, W = st['M'], st['W']
        # dense block of SingleLayers: BN -> ReLU -> conv3x3 -> in-place append
        for layer in st['layers']:
            y = _bn_relu(bn_ref, slab[pl.ds(0, cur), :], layer['bn_row'], cur)
            new = _conv3x3_fused(y, w_ref, mask_ref,
                                 w_row=layer['w_row'], cout=layer['cout'],
                                 mask_row=st['mask_row'], M=M, W=W)
            slab[pl.ds(cur, layer['cout']), :] = new      # torch.cat((x, out), 1)
            cur += layer['cout']
        tr = st['trans']
        if tr is not None:
            # Transition: BN -> ReLU -> 1x1 conv -> 2x2 avg pool (both MXU, bf16)
            y = _bn_relu(bn_ref, slab[pl.ds(0, cur), :], tr['bn_row'], cur)
            z = jnp.dot(w_ref[tr['w_row']:tr['w_row'] + tr['cout'], 0:cur],
                        y.astype(jnp.bfloat16),
                        preferred_element_type=jnp.float32)               # (cout, M)
            pooled = jnp.dot(z.astype(jnp.bfloat16),
                             pool_ref[tr['pool_row']:tr['pool_row'] + M,
                                      0:tr['M_out']],
                             preferred_element_type=jnp.float32)          # (cout, M/4)
            slabs[li + 1][pl.ds(0, tr['cout']), :] = pooled
            cur = tr['cout']

    # head: BN -> ReLU -> global avg pool -> fc -> log_softmax (classes on axis 0)
    f = plan['final']
    M, N = f['M'], plan['N']
    y = _bn_relu(bn_ref, slabs[-1][pl.ds(0, cur), :], f['bn_row'], cur)       # (C, M)
    pooled = jnp.dot(y.astype(jnp.bfloat16),
                     pool_ref[f['gpool_row']:f['gpool_row'] + M, 0:N],
                     preferred_element_type=jnp.float32)                      # (C, N)
    logits = jnp.dot(fc_ref[:, 0:cur], pooled,
                     preferred_element_type=jnp.float32) + fc_ref[:, cur:cur + 1]
    mx = jnp.max(logits, axis=0, keepdims=True)
    zl = logits - mx
    # TODO(synk): output is (nClasses=16, N=2); a lane-dense (N, nClasses) store
    # would drop the wrapper transpose, negligible at this size.
    o_ref[...] = zl - jnp.log(jnp.sum(jnp.exp(zl), axis=0, keepdims=True))


# ----------------------- wrapper ----------------------------------------------

def make_forward(plan):
    vmem = pl.BlockSpec(memory_space=pltpu.MemorySpace.VMEM)
    # one persistent VMEM slab per stage: channels are appended in place
    scratch = [pltpu.VMEM((st['c_end'], st['M']), jnp.float32)
               for st in plan['stages']]

    call = pl.pallas_call(
        partial(_densenet_kernel, plan),
        out_shape=jax.ShapeDtypeStruct((plan['nClasses'], plan['N']), jnp.float32),
        in_specs=[vmem] * 6,
        out_specs=vmem,
        scratch_shapes=scratch,
    )

    def forward(x_nchw, packed):
        # PyTorch NCHW input -> lane-dense transposed (C, N*H*W) layout.
        cin = x_nchw.shape[1]
        xt = jnp.transpose(x_nchw, (1, 0, 2, 3)).reshape(cin, -1).astype(jnp.float32)
        out_cn = call(xt, *packed)          # (nClasses, N)
        return out_cn.T                     # (N, nClasses), like the module

    return forward


# ----------------------- main --------------------------------------------------

if __name__ == "__main__":
    key = jax.random.PRNGKey(0)
    k_x, k_p = jax.random.split(key)

    # small but structurally faithful config:
    #   growthRate=4, depth=10, n_layers=3 -> 2 SingleLayers per dense block
    growthRate, depth, n_layers, nClasses = 4, 10, 3, 16
    N, Hin, Win = 2, 16, 16
    x = jax.random.normal(k_x, (N, 3, Hin, Win), jnp.float32)    # NCHW like PyTorch

    plan, packed = build_model(k_p, growthRate=growthRate, depth=depth,
                               n_layers=n_layers, nClasses=nClasses,
                               batch=N, height=Hin, width=Win)
    forward = make_forward(plan)

    fwd = jax.jit(forward)
    out = fwd(x, packed)
    jax.block_until_ready(out)

    assert out.shape == (N, nClasses), out.shape
    assert bool(jnp.all(jnp.isfinite(out)))
    # log_softmax rows should sum (in prob space) to ~1
    assert bool(jnp.all(jnp.abs(jnp.sum(jnp.exp(out), axis=-1) - 1.0) < 1e-3))
    print("KERNEL_OK")
</pallas_src>

<mosaic_0001>
module attributes {stable_mosaic.version = 11 : i64} {
  func.func @_densenet_kernel(%arg0: memref<3x512xf32, #tpu.memory_space<vmem>>, %arg1: memref<72x252xbf16, #tpu.memory_space<vmem>>, %arg2: memref<184x2xf32, #tpu.memory_space<vmem>>, %arg3: memref<32x512xf32, #tpu.memory_space<vmem>>, %arg4: memref<672x128xbf16, #tpu.memory_space<vmem>>, %arg5: memref<16x33xf32, #tpu.memory_space<vmem>>, %arg6: memref<16x2xf32, #tpu.memory_space<vmem>>, %arg7: memref<16x512xf32, #tpu.memory_space<vmem>>, %arg8: memref<24x128xf32, #tpu.memory_space<vmem>>, %arg9: memref<32x32xf32, #tpu.memory_space<vmem>>) attributes {dimension_semantics = [], scalar_prefetch = 0 : i64, scratch_operands = 3 : i64, tpu.core_type = #tpu.core_type<tc>} {
    %c0 = arith.constant 0 : index
    %c0_0 = arith.constant 0 : index
    %0 = vector.load %arg0[%c0, %c0_0] : memref<3x512xf32, #tpu.memory_space<vmem>>, vector<3x512xf32>
    %c17_i32 = arith.constant 17 : i32
    %1 = tpu.dynamic_rotate %0 by %c17_i32 dim 1 : vector<3x512xf32>, i32 -> vector<3x512xf32>
    %c0_1 = arith.constant 0 : index
    %c0_2 = arith.constant 0 : index
    %2 = vector.load %arg3[%c0_1, %c0_2] : memref<32x512xf32, #tpu.memory_space<vmem>>, vector<1x512xf32>
    %3 = vector.broadcast %2 : vector<1x512xf32> to vector<3x512xf32>
    %4 = arith.mulf %1, %3 : vector<3x512xf32>
    %c16_i32 = arith.constant 16 : i32
    %5 = tpu.dynamic_rotate %0 by %c16_i32 dim 1 : vector<3x512xf32>, i32 -> vector<3x512xf32>
    %c1 = arith.constant 1 : index
    %c0_3 = arith.constant 0 : index
    %6 = vector.load %arg3[%c1, %c0_3] : memref<32x512xf32, #tpu.memory_space<vmem>>, vector<1x512xf32>
    %7 = vector.broadcast %6 : vector<1x512xf32> to vector<3x512xf32>
    %8 = arith.mulf %5, %7 : vector<3x512xf32>
    %c15_i32 = arith.constant 15 : i32
    %9 = tpu.dynamic_rotate %0 by %c15_i32 dim 1 : vector<3x512xf32>, i32 -> vector<3x512xf32>
    %c2 = arith.constant 2 : index
    %c0_4 = arith.constant 0 : index
    %10 = vector.load %arg3[%c2, %c0_4] : memref<32x512xf32, #tpu.memory_space<vmem>>, vector<1x512xf32>
    %11 = vector.broadcast %10 : vector<1x512xf32> to vector<3x512xf32>
    %12 = arith.mulf %9, %11 : vector<3x512xf32>
    %c1_i32 = arith.constant 1 : i32
    %13 = tpu.dynamic_rotate %0 by %c1_i32 dim 1 : vector<3x512xf32>, i32 -> vector<3x512xf32>
    %c3 = arith.constant 3 : index
    %c0_5 = arith.constant 0 : index
    %14 = vector.load %arg3[%c3, %c0_5] : memref<32x512xf32, #tpu.memory_space<vmem>>, vector<1x512xf32>
    %15 = vector.broadcast %14 : vector<1x512xf32> to vector<3x512xf32>
    %16 = arith.mulf %13, %15 : vector<3x512xf32>
    %c4 = arith.constant 4 : index
    %c0_6 = arith.constant 0 : index
    %17 = vector.load %arg3[%c4, %c0_6] : memref<32x512xf32, #tpu.memory_space<vmem>>, vector<1x512xf32>
    %18 = vector.broadcast %17 : vector<1x512xf32> to vector<3x512xf32>
    %19 = arith.mulf %0, %18 : vector<3x512xf32>
    %c511_i32 = arith.constant 511 : i32
    %20 = tpu.dynamic_rotate %0 by %c511_i32 dim 1 : vector<3x512xf32>, i32 -> vector<3x512xf32>
    %c5 = arith.constant 5 : index
    %c0_7 = arith.constant 0 : index
    %21 = vector.load %arg3[%c5, %c0_7] : memref<32x512xf32, #tpu.memory_space<vmem>>, vector<1x512xf32>
    %22 = vector.broadcast %21 : vector<1x512xf32> to vector<3x512xf32>
    %23 = arith.mulf %20, %22 : vector<3x512xf32>
    %c497_i32 = arith.constant 497 : i32
    %24 = tpu.dynamic_rotate %0 by %c497_i32 dim 1 : vector<3x512xf32>, i32 -> vector<3x512xf32>
    %c6 = arith.constant 6 : index
    %c0_8 = arith.constant 0 : index
    %25 = vector.load %arg3[%c6, %c0_8] : memref<32x512xf32, #tpu.memory_space<vmem>>, vector<1x512xf32>
    %26 = vector.broadcast %25 : vector<1x512xf32> to vector<3x512xf32>
    %27 = arith.mulf %24, %26 : vector<3x512xf32>
    %c496_i32 = arith.constant 496 : i32
    %28 = tpu.dynamic_rotate %0 by %c496_i32 dim 1 : vector<3x512xf32>, i32 -> vector<3x512xf32>
    %c7 = arith.constant 7 : index
    %c0_9 = arith.constant 0 : index
    %29 = vector.load %arg3[%c7, %c0_9] : memref<32x512xf32, #tpu.memory_space<vmem>>, vector<1x512xf32>
    %30 = vector.broadcast %29 : vector<1x512xf32> to vector<3x512xf32>
    %31 = arith.mulf %28, %30 : vector<3x512xf32>
    %c495_i32 = arith.constant 495 : i32
    %32 = tpu.dynamic_rotate %0 by %c495_i32 dim 1 : vector<3x512xf32>, i32 -> vector<3x512xf32>
    %c8 = arith.constant 8 : index
    %c0_10 = arith.constant 0 : index
    %33 = vector.load %arg3[%c8, %c0_10] : memref<32x512xf32, #tpu.memory_space<vmem>>, vector<1x512xf32>
    %34 = vector.broadcast %33 : vector<1x512xf32> to vector<3x512xf32>
    %35 = arith.mulf %32, %34 : vector<3x512xf32>
    %36 = tpu.concatenate %4, %8, %12, %16, %19, %23, %27, %31, %35 in 0 : vector<3x512xf32>, vector<3x512xf32>, vector<3x512xf32>, vector<3x512xf32>, vector<3x512xf32>, vector<3x512xf32>, vector<3x512xf32>, vector<3x512xf32>, vector<3x512xf32> -> vector<27x512xf32>
    %37 = arith.truncf %36 : vector<27x512xf32> to vector<27x512xbf16>
    %c0_11 = arith.constant 0 : index
    %c0_12 = arith.constant 0 : index
    %38 = vector.load %arg1[%c0_11, %c0_12] : memref<72x252xbf16, #tpu.memory_space<vmem>>, vector<8x27xbf16>
    %cst = arith.constant dense<0.000000e+00> : vector<8x512xf32>
    %39 = tpu.matmul %38, %37, %cst {dimension_numbers = #tpu.dot_dimension_numbers<[1], [0], [0], [1], [0, 0, 1, 1], [], []>} : vector<8x27xbf16>, vector<27x512xbf16>, vector<8x512xf32> -> vector<8x512xf32>
    %c0_13 = arith.constant 0 : index
    %c0_14 = arith.constant 0 : index
    %40 = vector.load %arg7[%c0_13, %c0_14] : memref<16x512xf32, #tpu.memory_space<vmem>>, vector<8x512xf32>
    tpu.vector_store %arg7[%c0_13, %c0_14], %39 {strides = array<i32>} : memref<16x512xf32, #tpu.memory_space<vmem>>, vector<8x512xf32>,
    %c0_15 = arith.constant 0 : index
    %c0_16 = arith.constant 0 : index
    %41 = vector.load %arg7[%c0_15, %c0_16] : memref<16x512xf32, #tpu.memory_space<vmem>>, vector<8x512xf32>
    %c0_17 = arith.constant 0 : index
    %c0_18 = arith.constant 0 : index
    %42 = vector.load %arg2[%c0_17, %c0_18] : memref<184x2xf32, #tpu.memory_space<vmem>>, vector<8x1xf32>
    %c0_19 = arith.constant 0 : index
    %c1_20 = arith.constant 1 : index
    %43 = vector.load %arg2[%c0_19, %c1_20] : memref<184x2xf32, #tpu.memory_space<vmem>>, vector<8x1xf32>
    %44 = vector.broadcast %42 : vector<8x1xf32> to vector<8x512xf32>
    %45 = arith.mulf %41, %44 : vector<8x512xf32>
    %46 = vector.broadcast %43 : vector<8x1xf32> to vector<8x512xf32>
    %47 = arith.addf %45, %46 : vector<8x512xf32>
    %cst_21 = arith.constant 0.000000e+00 : f32
    %48 = vector.broadcast %cst_21 : f32 to vector<8x512xf32>
    %49 = arith.maximumf %47, %48 : vector<8x512xf32>
    %c17_i32_22 = arith.constant 17 : i32
    %50 = tpu.dynamic_rotate %49 by %c17_i32_22 dim 1 : vector<8x512xf32>, i32 -> vector<8x512xf32>
    %c0_23 = arith.constant 0 : index
    %c0_24 = arith.constant 0 : index
    %51 = vector.load %arg3[%c0_23, %c0_24] : memref<32x512xf32, #tpu.memory_space<vmem>>, vector<1x512xf32>
    %52 = vector.broadcast %51 : vector<1x512xf32> to vector<8x512xf32>
    %53 = arith.mulf %50, %52 : vector<8x512xf32>
    %c16_i32_25 = arith.constant 16 : i32
    %54 = tpu.dynamic_rotate %49 by %c16_i32_25 dim 1 : vector<8x512xf32>, i32 -> vector<8x512xf32>
    %c1_26 = arith.constant 1 : index
    %c0_27 = arith.constant 0 : index
    %55 = vector.load %arg3[%c1_26, %c0_27] : memref<32x512xf32, #tpu.memory_space<vmem>>, vector<1x512xf32>
    %56 = vector.broadcast %55 : vector<1x512xf32> to vector<8x512xf32>
    %57 = arith.mulf %54, %56 : vector<8x512xf32>
    %c15_i32_28 = arith.constant 15 : i32
    %58 = tpu.dynamic_rotate %49 by %c15_i32_28 dim 1 : vector<8x512xf32>, i32 -> vector<8x512xf32>
    %c2_29 = arith.constant 2 : index
    %c0_30 = arith.constant 0 : index
    %59 = vector.load %arg3[%c2_29, %c0_30] : memref<32x512xf32, #tpu.memory_space<vmem>>, vector<1x512xf32>
    %60 = vector.broadcast %59 : vector<1x512xf32> to vector<8x512xf32>
    %61 = arith.mulf %58, %60 : vector<8x512xf32>
    %c1_i32_31 = arith.constant 1 : i32
    %62 = tpu.dynamic_rotate %49 by %c1_i32_31 dim 1 : vector<8x512xf32>, i32 -> vector<8x512xf32>
    %c3_32 = arith.constant 3 : index
    %c0_33 = arith.constant 0 : index
    %63 = vector.load %arg3[%c3_32, %c0_33] : memref<32x512xf32, #tpu.memory_space<vmem>>, vector<1x512xf32>
    %64 = vector.broadcast %63 : vector<1x512xf32> to vector<8x512xf32>
    %65 = arith.mulf %62, %64 : vector<8x512xf32>
    %c4_34 = arith.constant 4 : index
    %c0_35 = arith.constant 0 : index
    %66 = vector.load %arg3[%c4_34, %c0_35] : memref<32x512xf32, #tpu.memory_space<vmem>>, vector<1x512xf32>
    %67 = vector.broadcast %66 : vector<1x512xf32> to vector<8x512xf32>
    %68 = arith.mulf %49, %67 : vector<8x512xf32>
    %c511_i32_36 = arith.constant 511 : i32
    %69 = tpu.dynamic_rotate %49 by %c511_i32_36 dim 1 : vector<8x512xf32>, i32 -> vector<8x512xf32>
    %c5_37 = arith.constant 5 : index
    %c0_38 = arith.constant 0 : index
    %70 = vector.load %arg3[%c5_37, %c0_38] : memref<32x512xf32, #tpu.memory_space<vmem>>, vector<1x512xf32>
    %71 = vector.broadcast %70 : vector<1x512xf32> to vector<8x512xf32>
    %72 = arith.mulf %69, %71 : vector<8x512xf32>
    %c497_i32_39 = arith.constant 497 : i32
    %73 = tpu.dynamic_rotate %49 by %c497_i32_39 dim 1 : vector<8x512xf32>, i32 -> vector<8x512xf32>
    %c6_40 = arith.constant 6 : index
    %c0_41 = arith.constant 0 : index
    %74 = vector.load %arg3[%c6_40, %c0_41] : memref<32x512xf32, #tpu.memory_space<vmem>>, vector<1x512xf32>
    %75 = vector.broadcast %74 : vector<1x512xf32> to vector<8x512xf32>
    %76 = arith.mulf %73, %75 : vector<8x512xf32>
    %c496_i32_42 = arith.constant 496 : i32
    %77 = tpu.dynamic_rotate %49 by %c496_i32_42 dim 1 : vector<8x512xf32>, i32 -> vector<8x512xf32>
    %c7_43 = arith.constant 7 : index
    %c0_44 = arith.constant 0 : index
    %78 = vector.load %arg3[%c7_43, %c0_44] : memref<32x512xf32, #tpu.memory_space<vmem>>, vector<1x512xf32>
    %79 = vector.broadcast %78 : vector<1x512xf32> to vector<8x512xf32>
    %80 = arith.mulf %77, %79 : vector<8x512xf32>
    %c495_i32_45 = arith.constant 495 : i32
    %81 = tpu.dynamic_rotate %49 by %c495_i32_45 dim 1 : vector<8x512xf32>, i32 -> vector<8x512xf32>
    %c8_46 = arith.constant 8 : index
    %c0_47 = arith.constant 0 : index
    %82 = vector.load %arg3[%c8_46, %c0_47] : memref<32x512xf32, #tpu.memory_space<vmem>>, vector<1x512xf32>
    %83 = vector.broadcast %82 : vector<1x512xf32> to vector<8x512xf32>
    %84 = arith.mulf %81, %83 : vector<8x512xf32>
    %85 = tpu.concatenate %53, %57, %61, %65, %68, %72, %76, %80, %84 in 0 : vector<8x512xf32>, vector<8x512xf32>, vector<8x512xf32>, vector<8x512xf32>, vector<8x512xf32>, vector<8x512xf32>, vector<8x512xf32>, vector<8x512xf32>, vector<8x512xf32> -> vector<72x512xf32>
    %86 = arith.truncf %85 : vector<72x512xf32> to vector<72x512xbf16>
    %c8_48 = arith.constant 8 : index
    %c0_49 = arith.constant 0 : index
    %87 = vector.load %arg1[%c8_48, %c0_49] : memref<72x252xbf16, #tpu.memory_space<vmem>>, vector<4x72xbf16>
    %cst_50 = arith.constant dense<0.000000e+00> : vector<4x512xf32>
    %88 = tpu.matmul %87, %86, %cst_50 {dimension_numbers = #tpu.dot_dimension_numbers<[1], [0], [0], [1], [0, 0, 1, 1], [], []>} : vector<4x72xbf16>, vector<72x512xbf16>, vector<4x512xf32> -> vector<4x512xf32>
    %c8_51 = arith.constant 8 : index
    %c0_52 = arith.constant 0 : index
    %89 = vector.load %arg7[%c8_51, %c0_52] : memref<16x512xf32, #tpu.memory_space<vmem>>, vector<4x512xf32>
    tpu.vector_store %arg7[%c8_51, %c0_52], %88 {strides = array<i32>} : memref<16x512xf32, #tpu.memory_space<vmem>>, vector<4x512xf32>,
    %c0_53 = arith.constant 0 : index
    %c0_54 = arith.constant 0 : index
    %90 = vector.load %arg7[%c0_53, %c0_54] : memref<16x512xf32, #tpu.memory_space<vmem>>, vector<12x512xf32>
    %c8_55 = arith.constant 8 : index
    %c0_56 = arith.constant 0 : index
    %91 = vector.load %arg2[%c8_55, %c0_56] : memref<184x2xf32, #tpu.memory_space<vmem>>, vector<12x1xf32>
    %c8_57 = arith.constant 8 : index
    %c1_58 = arith.constant 1 : index
    %92 = vector.load %arg2[%c8_57, %c1_58] : memref<184x2xf32, #tpu.memory_space<vmem>>, vector<12x1xf32>
    %93 = vector.broadcast %91 : vector<12x1xf32> to vector<12x512xf32>
    %94 = arith.mulf %90, %93 : vector<12x512xf32>
    %95 = vector.broadcast %92 : vector<12x1xf32> to vector<12x512xf32>
    %96 = arith.addf %94, %95 : vector<12x512xf32>
    %cst_59 = arith.constant 0.000000e+00 : f32
    %97 = vector.broadcast %cst_59 : f32 to vector<12x512xf32>
    %98 = arith.maximumf %96, %97 : vector<12x512xf32>
    %c17_i32_60 = arith.constant 17 : i32
    %99 = tpu.dynamic_rotate %98 by %c17_i32_60 dim 1 : vector<12x512xf32>, i32 -> vector<12x512xf32>
    %c0_61 = arith.constant 0 : index
    %c0_62 = arith.constant 0 : index
    %100 = vector.load %arg3[%c0_61, %c0_62] : memref<32x512xf32, #tpu.memory_space<vmem>>, vector<1x512xf32>
    %101 = vector.broadcast %100 : vector<1x512xf32> to vector<12x512xf32>
    %102 = arith.mulf %99, %101 : vector<12x512xf32>
    %c16_i32_63 = arith.constant 16 : i32
    %103 = tpu.dynamic_rotate %98 by %c16_i32_63 dim 1 : vector<12x512xf32>, i32 -> vector<12x512xf32>
    %c1_64 = arith.constant 1 : index
    %c0_65 = arith.constant 0 : index
    %104 = vector.load %arg3[%c1_64, %c0_65] : memref<32x512xf32, #tpu.memory_space<vmem>>, vector<1x512xf32>
    %105 = vector.broadcast %104 : vector<1x512xf32> to vector<12x512xf32>
    %106 = arith.mulf %103, %105 : vector<12x512xf32>
    %c15_i32_66 = arith.constant 15 : i32
    %107 = tpu.dynamic_rotate %98 by %c15_i32_66 dim 1 : vector<12x512xf32>, i32 -> vector<12x512xf32>
    %c2_67 = arith.constant 2 : index
    %c0_68 = arith.constant 0 : index
    %108 = vector.load %arg3[%c2_67, %c0_68] : memref<32x512xf32, #tpu.memory_space<vmem>>, vector<1x512xf32>
    %109 = vector.broadcast %108 : vector<1x512xf32> to vector<12x512xf32>
    %110 = arith.mulf %107, %109 : vector<12x512xf32>
    %c1_i32_69 = arith.constant 1 : i32
    %111 = tpu.dynamic_rotate %98 by %c1_i32_69 dim 1 : vector<12x512xf32>, i32 -> vector<12x512xf32>
    %c3_70 = arith.constant 3 : index
    %c0_71 = arith.constant 0 : index
    %112 = vector.load %arg3[%c3_70, %c0_71] : memref<32x512xf32, #tpu.memory_space<vmem>>, vector<1x512xf32>
    %113 = vector.broadcast %112 : vector<1x512xf32> to vector<12x512xf32>
    %114 = arith.mulf %111, %113 : vector<12x512xf32>
    %c4_72 = arith.constant 4 : index
    %c0_73 = arith.constant 0 : index
    %115 = vector.load %arg3[%c4_72, %c0_73] : memref<32x512xf32, #tpu.memory_space<vmem>>, vector<1x512xf32>
    %116 = vector.broadcast %115 : vector<1x512xf32> to vector<12x512xf32>
    %117 = arith.mulf %98, %116 : vector<12x512xf32>
    %c511_i32_74 = arith.constant 511 : i32
    %118 = tpu.dynamic_rotate %98 by %c511_i32_74 dim 1 : vector<12x512xf32>, i32 -> vector<12x512xf32>
    %c5_75 = arith.constant 5 : index
    %c0_76 = arith.constant 0 : index
    %119 = vector.load %arg3[%c5_75, %c0_76] : memref<32x512xf32, #tpu.memory_space<vmem>>, vector<1x512xf32>
    %120 = vector.broadcast %119 : vector<1x512xf32> to vector<12x512xf32>
    %121 = arith.mulf %118, %120 : vector<12x512xf32>
    %c497_i32_77 = arith.constant 497 : i32
    %122 = tpu.dynamic_rotate %98 by %c497_i32_77 dim 1 : vector<12x512xf32>, i32 -> vector<12x512xf32>
    %c6_78 = arith.constant 6 : index
    %c0_79 = arith.constant 0 : index
    %123 = vector.load %arg3[%c6_78, %c0_79] : memref<32x512xf32, #tpu.memory_space<vmem>>, vector<1x512xf32>
    %124 = vector.broadcast %123 : vector<1x512xf32> to vector<12x512xf32>
    %125 = arith.mulf %122, %124 : vector<12x512xf32>
    %c496_i32_80 = arith.constant 496 : i32
    %126 = tpu.dynamic_rotate %98 by %c496_i32_80 dim 1 : vector<12x512xf32>, i32 -> vector<12x512xf32>
    %c7_81 = arith.constant 7 : index
    %c0_82 = arith.constant 0 : index
    %127 = vector.load %arg3[%c7_81, %c0_82] : memref<32x512xf32, #tpu.memory_space<vmem>>, vector<1x512xf32>
    %128 = vector.broadcast %127 : vector<1x512xf32> to vector<12x512xf32>
    %129 = arith.mulf %126, %128 : vector<12x512xf32>
    %c495_i32_83 = arith.constant 495 : i32
    %130 = tpu.dynamic_rotate %98 by %c495_i32_83 dim 1 : vector<12x512xf32>, i32 -> vector<12x512xf32>
    %c8_84 = arith.constant 8 : index
    %c0_85 = arith.constant 0 : index
    %131 = vector.load %arg3[%c8_84, %c0_85] : memref<32x512xf32, #tpu.memory_space<vmem>>, vector<1x512xf32>
    %132 = vector.broadcast %131 : vector<1x512xf32> to vector<12x512xf32>
    %133 = arith.mulf %130, %132 : vector<12x512xf32>
    %134 = tpu.concatenate %102, %106, %110, %114, %117, %121, %125, %129, %133 in 0 : vector<12x512xf32>, vector<12x512xf32>, vector<12x512xf32>, vector<12x512xf32>, vector<12x512xf32>, vector<12x512xf32>, vector<12x512xf32>, vector<12x512xf32>, vector<12x512xf32> -> vector<108x512xf32>
    %135 = arith.truncf %134 : vector<108x512xf32> to vector<108x512xbf16>
    %c12 = arith.constant 12 : index
    %c0_86 = arith.constant 0 : index
    %136 = vector.load %arg1[%c12, %c0_86] : memref<72x252xbf16, #tpu.memory_space<vmem>>, vector<4x108xbf16>
    %cst_87 = arith.constant dense<0.000000e+00> : vector<4x512xf32>
    %137 = tpu.matmul %136, %135, %cst_87 {dimension_numbers = #tpu.dot_dimension_numbers<[1], [0], [0], [1], [0, 0, 1, 1], [], []>} : vector<4x108xbf16>, vector<108x512xbf16>, vector<4x512xf32> -> vector<4x512xf32>
    %c12_88 = arith.constant 12 : index
    %c0_89 = arith.constant 0 : index
    %138 = vector.load %arg7[%c12_88, %c0_89] : memref<16x512xf32, #tpu.memory_space<vmem>>, vector<4x512xf32>
    tpu.vector_store %arg7[%c12_88, %c0_89], %137 {strides = array<i32>} : memref<16x512xf32, #tpu.memory_space<vmem>>, vector<4x512xf32>,
    %c0_90 = arith.constant 0 : index
    %c0_91 = arith.constant 0 : index
    %139 = vector.load %arg7[%c0_90, %c0_91] : memref<16x512xf32, #tpu.memory_space<vmem>>, vector<16x512xf32>
    %c20 = arith.constant 20 : index
    %c0_92 = arith.constant 0 : index
    %140 = vector.load %arg2[%c20, %c0_92] : memref<184x2xf32, #tpu.memory_space<vmem>>, vector<16x1xf32>
    %c20_93 = arith.constant 20 : index
    %c1_94 = arith.constant 1 : index
    %141 = vector.load %arg2[%c20_93, %c1_94] : memref<184x2xf32, #tpu.memory_space<vmem>>, vector<16x1xf32>
    %142 = vector.broadcast %140 : vector<16x1xf32> to vector<16x512xf32>
    %143 = arith.mulf %139, %142 : vector<16x512xf32>
    %144 = vector.broadcast %141 : vector<16x1xf32> to vector<16x512xf32>
    %145 = arith.addf %143, %144 : vector<16x512xf32>
    %cst_95 = arith.constant 0.000000e+00 : f32
    %146 = vector.broadcast %cst_95 : f32 to vector<16x512xf32>
    %147 = arith.maximumf %145, %146 : vector<16x512xf32>
    %c16 = arith.constant 16 : index
    %c0_96 = arith.constant 0 : index
    %148 = vector.load %arg1[%c16, %c0_96] : memref<72x252xbf16, #tpu.memory_space<vmem>>, vector<16x16xbf16>
    %149 = arith.truncf %147 : vector<16x512xf32> to vector<16x512xbf16>
    %cst_97 = arith.constant dense<0.000000e+00> : vector<16x512xf32>
    %150 = tpu.matmul %148, %149, %cst_97 {dimension_numbers = #tpu.dot_dimension_numbers<[1], [0], [0], [1], [0, 0, 1, 1], [], []>} : vector<16x16xbf16>, vector<16x512xbf16>, vector<16x512xf32> -> vector<16x512xf32>
    %151 = arith.truncf %150 : vector<16x512xf32> to vector<16x512xbf16>
    %c0_98 = arith.constant 0 : index
    %c0_99 = arith.constant 0 : index
    %152 = vector.load %arg4[%c0_98, %c0_99] : memref<672x128xbf16, #tpu.memory_space<vmem>>, vector<512x128xbf16>
    %cst_100 = arith.constant dense<0.000000e+00> : vector<16x128xf32>
    %153 = tpu.matmul %151, %152, %cst_100 {dimension_numbers = #tpu.dot_dimension_numbers<[1], [0], [0], [1], [0, 0, 1, 1], [], []>} : vector<16x512xbf16>, vector<512x128xbf16>, vector<16x128xf32> -> vector<16x128xf32>
    %c0_101 = arith.constant 0 : index
    %c0_102 = arith.constant 0 : index
    %154 = vector.load %arg8[%c0_101, %c0_102] : memref<24x128xf32, #tpu.memory_space<vmem>>, vector<16x128xf32>
    tpu.vector_store %arg8[%c0_101, %c0_102], %153 {strides = array<i32>} : memref<24x128xf32, #tpu.memory_space<vmem>>, vector<16x128xf32>,
    %c0_103 = arith.constant 0 : index
    %c0_104 = arith.constant 0 : index
    %155 = vector.load %arg8[%c0_103, %c0_104] : memref<24x128xf32, #tpu.memory_space<vmem>>, vector<16x128xf32>
    %c36 = arith.constant 36 : index
    %c0_105 = arith.constant 0 : index
    %156 = vector.load %arg2[%c36, %c0_105] : memref<184x2xf32, #tpu.memory_space<vmem>>, vector<16x1xf32>
    %c36_106 = arith.constant 36 : index
    %c1_107 = arith.constant 1 : index
    %157 = vector.load %arg2[%c36_106, %c1_107] : memref<184x2xf32, #tpu.memory_space<vmem>>, vector<16x1xf32>
    %158 = vector.broadcast %156 : vector<16x1xf32> to vector<16x128xf32>
    %159 = arith.mulf %155, %158 : vector<16x128xf32>
    %160 = vector.broadcast %157 : vector<16x1xf32> to vector<16x128xf32>
    %161 = arith.addf %159, %160 : vector<16x128xf32>
    %cst_108 = arith.constant 0.000000e+00 : f32
    %162 = vector.broadcast %cst_108 : f32 to vector<16x128xf32>
    %163 = arith.maximumf %161, %162 : vector<16x128xf32>
    %c9_i32 = arith.constant 9 : i32
    %164 = tpu.dynamic_rotate %163 by %c9_i32 dim 1 : vector<16x128xf32>, i32 -> vector<16x128xf32>
    %c9 = arith.constant 9 : index
    %c0_109 = arith.constant 0 : index
    %165 = vector.load %arg3[%c9, %c0_109] : memref<32x512xf32, #tpu.memory_space<vmem>>, vector<1x128xf32>
    %166 = vector.broadcast %165 : vector<1x128xf32> to vector<16x128xf32>
    %167 = arith.mulf %164, %166 : vector<16x128xf32>
    %c8_i32 = arith.constant 8 : i32
    %168 = tpu.dynamic_rotate %163 by %c8_i32 dim 1 : vector<16x128xf32>, i32 -> vector<16x128xf32>
    %c10 = arith.constant 10 : index
    %c0_110 = arith.constant 0 : index
    %169 = vector.load %arg3[%c10, %c0_110] : memref<32x512xf32, #tpu.memory_space<vmem>>, vector<1x128xf32>
    %170 = vector.broadcast %169 : vector<1x128xf32> to vector<16x128xf32>
    %171 = arith.mulf %168, %170 : vector<16x128xf32>
    %c7_i32 = arith.constant 7 : i32
    %172 = tpu.dynamic_rotate %163 by %c7_i32 dim 1 : vector<16x128xf32>, i32 -> vector<16x128xf32>
    %c11 = arith.constant 11 : index
    %c0_111 = arith.constant 0 : index
    %173 = vector.load %arg3[%c11, %c0_111] : memref<32x512xf32, #tpu.memory_space<vmem>>, vector<1x128xf32>
    %174 = vector.broadcast %173 : vector<1x128xf32> to vector<16x128xf32>
    %175 = arith.mulf %172, %174 : vector<16x128xf32>
    %c1_i32_112 = arith.constant 1 : i32
    %176 = tpu.dynamic_rotate %163 by %c1_i32_112 dim 1 : vector<16x128xf32>, i32 -> vector<16x128xf32>
    %c12_113 = arith.constant 12 : index
    %c0_114 = arith.constant 0 : index
    %177 = vector.load %arg3[%c12_113, %c0_114] : memref<32x512xf32, #tpu.memory_space<vmem>>, vector<1x128xf32>
    %178 = vector.broadcast %177 : vector<1x128xf32> to vector<16x128xf32>
    %179 = arith.mulf %176, %178 : vector<16x128xf32>
    %c13 = arith.constant 13 : index
    %c0_115 = arith.constant 0 : index
    %180 = vector.load %arg3[%c13, %c0_115] : memref<32x512xf32, #tpu.memory_space<vmem>>, vector<1x128xf32>
    %181 = vector.broadcast %180 : vector<1x128xf32> to vector<16x128xf32>
    %182 = arith.mulf %163, %181 : vector<16x128xf32>
    %c127_i32 = arith.constant 127 : i32
    %183 = tpu.dynamic_rotate %163 by %c127_i32 dim 1 : vector<16x128xf32>, i32 -> vector<16x128xf32>
    %c14 = arith.constant 14 : index
    %c0_116 = arith.constant 0 : index
    %184 = vector.load %arg3[%c14, %c0_116] : memref<32x512xf32, #tpu.memory_space<vmem>>, vector<1x128xf32>
    %185 = vector.broadcast %184 : vector<1x128xf32> to vector<16x128xf32>
    %186 = arith.mulf %183, %185 : vector<16x128xf32>
    %c121_i32 = arith.constant 121 : i32
    %187 = tpu.dynamic_rotate %163 by %c121_i32 dim 1 : vector<16x128xf32>, i32 -> vector<16x128xf32>
    %c15 = arith.constant 15 : index
    %c0_117 = arith.constant 0 : index
    %188 = vector.load %arg3[%c15, %c0_117] : memref<32x512xf32, #tpu.memory_space<vmem>>, vector<1x128xf32>
    %189 = vector.broadcast %188 : vector<1x128xf32> to vector<16x128xf32>
    %190 = arith.mulf %187, %189 : vector<16x128xf32>
    %c120_i32 = arith.constant 120 : i32
    %191 = tpu.dynamic_rotate %163 by %c120_i32 dim 1 : vector<16x128xf32>, i32 -> vector<16x128xf32>
    %c16_118 = arith.constant 16 : index
    %c0_119 = arith.constant 0 : index
    %192 = vector.load %arg3[%c16_118, %c0_119] : memref<32x512xf32, #tpu.memory_space<vmem>>, vector<1x128xf32>
    %193 = vector.broadcast %192 : vector<1x128xf32> to vector<16x128xf32>
    %194 = arith.mulf %191, %193 : vector<16x128xf32>
    %c119_i32 = arith.constant 119 : i32
    %195 = tpu.dynamic_rotate %163 by %c119_i32 dim 1 : vector<16x128xf32>, i32 -> vector<16x128xf32>
    %c17 = arith.constant 17 : index
    %c0_120 = arith.constant 0 : index
    %196 = vector.load %arg3[%c17, %c0_120] : memref<32x512xf32, #tpu.memory_space<vmem>>, vector<1x128xf32>
    %197 = vector.broadcast %196 : vector<1x128xf32> to vector<16x128xf32>
    %198 = arith.mulf %195, %197 : vector<16x128xf32>
    %199 = tpu.concatenate %167, %171, %175, %179, %182, %186, %190, %194, %198 in 0 : vector<16x128xf32>, vector<16x128xf32>, vector<16x128xf32>, vector<16x128xf32>, vector<16x128xf32>, vector<16x128xf32>, vector<16x128xf32>, vector<16x128xf32>, vector<16x128xf32> -> vector<144x128xf32>
    %200 = arith.truncf %199 : vector<144x128xf32> to vector<144x128xbf16>
    %c32 = arith.constant 32 : index
    %c0_121 = arith.constant 0 : index
    %201 = vector.load %arg1[%c32, %c0_121] : memref<72x252xbf16, #tpu.memory_space<vmem>>, vector<4x144xbf16>
    %cst_122 = arith.constant dense<0.000000e+00> : vector<4x128xf32>
    %202 = tpu.matmul %201, %200, %cst_122 {dimension_numbers = #tpu.dot_dimension_numbers<[1], [0], [0], [1], [0, 0, 1, 1], [], []>} : vector<4x144xbf16>, vector<144x128xbf16>, vector<4x128xf32> -> vector<4x128xf32>
    %c16_123 = arith.constant 16 : index
    %c0_124 = arith.constant 0 : index
    %203 = vector.load %arg8[%c16_123, %c0_124] : memref<24x128xf32, #tpu.memory_space<vmem>>, vector<4x128xf32>
    tpu.vector_store %arg8[%c16_123, %c0_124], %202 {strides = array<i32>} : memref<24x128xf32, #tpu.memory_space<vmem>>, vector<4x128xf32>,
    %c0_125 = arith.constant 0 : index
    %c0_126 = arith.constant 0 : index
    %204 = vector.load %arg8[%c0_125, %c0_126] : memref<24x128xf32, #tpu.memory_space<vmem>>, vector<20x128xf32>
    %c52 = arith.constant 52 : index
    %c0_127 = arith.constant 0 : index
    %205 = vector.load %arg2[%c52, %c0_127] : memref<184x2xf32, #tpu.memory_space<vmem>>, vector<20x1xf32>
    %c52_128 = arith.constant 52 : index
    %c1_129 = arith.constant 1 : index
    %206 = vector.load %arg2[%c52_128, %c1_129] : memref<184x2xf32, #tpu.memory_space<vmem>>, vector<20x1xf32>
    %207 = vector.broadcast %205 : vector<20x1xf32> to vector<20x128xf32>
    %208 = arith.mulf %204, %207 : vector<20x128xf32>
    %209 = vector.broadcast %206 : vector<20x1xf32> to vector<20x128xf32>
    %210 = arith.addf %208, %209 : vector<20x128xf32>
    %cst_130 = arith.constant 0.000000e+00 : f32
    %211 = vector.broadcast %cst_130 : f32 to vector<20x128xf32>
    %212 = arith.maximumf %210, %211 : vector<20x128xf32>
    %c9_i32_131 = arith.constant 9 : i32
    %213 = tpu.dynamic_rotate %212 by %c9_i32_131 dim 1 : vector<20x128xf32>, i32 -> vector<20x128xf32>
    %c9_132 = arith.constant 9 : index
    %c0_133 = arith.constant 0 : index
    %214 = vector.load %arg3[%c9_132, %c0_133] : memref<32x512xf32, #tpu.memory_space<vmem>>, vector<1x128xf32>
    %215 = vector.broadcast %214 : vector<1x128xf32> to vector<20x128xf32>
    %216 = arith.mulf %213, %215 : vector<20x128xf32>
    %c8_i32_134 = arith.constant 8 : i32
    %217 = tpu.dynamic_rotate %212 by %c8_i32_134 dim 1 : vector<20x128xf32>, i32 -> vector<20x128xf32>
    %c10_135 = arith.constant 10 : index
    %c0_136 = arith.constant 0 : index
    %218 = vector.load %arg3[%c10_135, %c0_136] : memref<32x512xf32, #tpu.memory_space<vmem>>, vector<1x128xf32>
    %219 = vector.broadcast %218 : vector<1x128xf32> to vector<20x128xf32>
    %220 = arith.mulf %217, %219 : vector<20x128xf32>
    %c7_i32_137 = arith.constant 7 : i32
    %221 = tpu.dynamic_rotate %212 by %c7_i32_137 dim 1 : vector<20x128xf32>, i32 -> vector<20x128xf32>
    %c11_138 = arith.constant 11 : index
    %c0_139 = arith.constant 0 : index
    %222 = vector.load %arg3[%c11_138, %c0_139] : memref<32x512xf32, #tpu.memory_space<vmem>>, vector<1x128xf32>
    %223 = vector.broadcast %222 : vector<1x128xf32> to vector<20x128xf32>
    %224 = arith.mulf %221, %223 : vector<20x128xf32>
    %c1_i32_140 = arith.constant 1 : i32
    %225 = tpu.dynamic_rotate %212 by %c1_i32_140 dim 1 : vector<20x128xf32>, i32 -> vector<20x128xf32>
    %c12_141 = arith.constant 12 : index
    %c0_142 = arith.constant 0 : index
    %226 = vector.load %arg3[%c12_141, %c0_142] : memref<32x512xf32, #tpu.memory_space<vmem>>, vector<1x128xf32>
    %227 = vector.broadcast %226 : vector<1x128xf32> to vector<20x128xf32>
    %228 = arith.mulf %225, %227 : vector<20x128xf32>
    %c13_143 = arith.constant 13 : index
    %c0_144 = arith.constant 0 : index
    %229 = vector.load %arg3[%c13_143, %c0_144] : memref<32x512xf32, #tpu.memory_space<vmem>>, vector<1x128xf32>
    %230 = vector.broadcast %229 : vector<1x128xf32> to vector<20x128xf32>
    %231 = arith.mulf %212, %230 : vector<20x128xf32>
    %c127_i32_145 = arith.constant 127 : i32
    %232 = tpu.dynamic_rotate %212 by %c127_i32_145 dim 1 : vector<20x128xf32>, i32 -> vector<20x128xf32>
    %c14_146 = arith.constant 14 : index
    %c0_147 = arith.constant 0 : index
    %233 = vector.load %arg3[%c14_146, %c0_147] : memref<32x512xf32, #tpu.memory_space<vmem>>, vector<1x128xf32>
    %234 = vector.broadcast %233 : vector<1x128xf32> to vector<20x128xf32>
    %235 = arith.mulf %232, %234 : vector<20x128xf32>
    %c121_i32_148 = arith.constant 121 : i32
    %236 = tpu.dynamic_rotate %212 by %c121_i32_148 dim 1 : vector<20x128xf32>, i32 -> vector<20x128xf32>
    %c15_149 = arith.constant 15 : index
    %c0_150 = arith.constant 0 : index
    %237 = vector.load %arg3[%c15_149, %c0_150] : memref<32x512xf32, #tpu.memory_space<vmem>>, vector<1x128xf32>
    %238 = vector.broadcast %237 : vector<1x128xf32> to vector<20x128xf32>
    %239 = arith.mulf %236, %238 : vector<20x128xf32>
    %c120_i32_151 = arith.constant 120 : i32
    %240 = tpu.dynamic_rotate %212 by %c120_i32_151 dim 1 : vector<20x128xf32>, i32 -> vector<20x128xf32>
    %c16_152 = arith.constant 16 : index
    %c0_153 = arith.constant 0 : index
    %241 = vector.load %arg3[%c16_152, %c0_153] : memref<32x512xf32, #tpu.memory_space<vmem>>, vector<1x128xf32>
    %242 = vector.broadcast %241 : vector<1x128xf32> to vector<20x128xf32>
    %243 = arith.mulf %240, %242 : vector<20x128xf32>
    %c119_i32_154 = arith.constant 119 : i32
    %244 = tpu.dynamic_rotate %212 by %c119_i32_154 dim 1 : vector<20x128xf32>, i32 -> vector<20x128xf32>
    %c17_155 = arith.constant 17 : index
    %c0_156 = arith.constant 0 : index
    %245 = vector.load %arg3[%c17_155, %c0_156] : memref<32x512xf32, #tpu.memory_space<vmem>>, vector<1x128xf32>
    %246 = vector.broadcast %245 : vector<1x128xf32> to vector<20x128xf32>
    %247 = arith.mulf %244, %246 : vector<20x128xf32>
    %248 = tpu.concatenate %216, %220, %224, %228, %231, %235, %239, %243, %247 in 0 : vector<20x128xf32>, vector<20x128xf32>, vector<20x128xf32>, vector<20x128xf32>, vector<20x128xf32>, vector<20x128xf32>, vector<20x128xf32>, vector<20x128xf32>, vector<20x128xf32> -> vector<180x128xf32>
    %249 = arith.truncf %248 : vector<180x128xf32> to vector<180x128xbf16>
    %c36_157 = arith.constant 36 : index
    %c0_158 = arith.constant 0 : index
    %250 = vector.load %arg1[%c36_157, %c0_158] : memref<72x252xbf16, #tpu.memory_space<vmem>>, vector<4x180xbf16>
    %cst_159 = arith.constant dense<0.000000e+00> : vector<4x128xf32>
    %251 = tpu.matmul %250, %249, %cst_159 {dimension_numbers = #tpu.dot_dimension_numbers<[1], [0], [0], [1], [0, 0, 1, 1], [], []>} : vector<4x180xbf16>, vector<180x128xbf16>, vector<4x128xf32> -> vector<4x128xf32>
    %c20_160 = arith.constant 20 : index
    %c0_161 = arith.constant 0 : index
    %252 = vector.load %arg8[%c20_160, %c0_161] : memref<24x128xf32, #tpu.memory_space<vmem>>, vector<4x128xf32>
    tpu.vector_store %arg8[%c20_160, %c0_161], %251 {strides = array<i32>} : memref<24x128xf32, #tpu.memory_space<vmem>>, vector<4x128xf32>,
    %c0_162 = arith.constant 0 : index
    %c0_163 = arith.constant 0 : index
    %253 = vector.load %arg8[%c0_162, %c0_163] : memref<24x128xf32, #tpu.memory_space<vmem>>, vector<24x128xf32>
    %c72 = arith.constant 72 : index
    %c0_164 = arith.constant 0 : index
    %254 = vector.load %arg2[%c72, %c0_164] : memref<184x2xf32, #tpu.memory_space<vmem>>, vector<24x1xf32>
    %c72_165 = arith.constant 72 : index
    %c1_166 = arith.constant 1 : index
    %255 = vector.load %arg2[%c72_165, %c1_166] : memref<184x2xf32, #tpu.memory_space<vmem>>, vector<24x1xf32>
    %256 = vector.broadcast %254 : vector<24x1xf32> to vector<24x128xf32>
    %257 = arith.mulf %253, %256 : vector<24x128xf32>
    %258 = vector.broadcast %255 : vector<24x1xf32> to vector<24x128xf32>
    %259 = arith.addf %257, %258 : vector<24x128xf32>
    %cst_167 = arith.constant 0.000000e+00 : f32
    %260 = vector.broadcast %cst_167 : f32 to vector<24x128xf32>
    %261 = arith.maximumf %259, %260 : vector<24x128xf32>
    %c40 = arith.constant 40 : index
    %c0_168 = arith.constant 0 : index
    %262 = vector.load %arg1[%c40, %c0_168] : memref<72x252xbf16, #tpu.memory_space<vmem>>, vector<24x24xbf16>
    %263 = arith.truncf %261 : vector<24x128xf32> to vector<24x128xbf16>
    %cst_169 = arith.constant dense<0.000000e+00> : vector<24x128xf32>
    %264 = tpu.matmul %262, %263, %cst_169 {dimension_numbers = #tpu.dot_dimension_numbers<[1], [0], [0], [1], [0, 0, 1, 1], [], []>} : vector<24x24xbf16>, vector<24x128xbf16>, vector<24x128xf32> -> vector<24x128xf32>
    %265 = arith.truncf %264 : vector<24x128xf32> to vector<24x128xbf16>
    %c512 = arith.constant 512 : index
    %c0_170 = arith.constant 0 : index
    %266 = vector.load %arg4[%c512, %c0_170] : memref<672x128xbf16, #tpu.memory_space<vmem>>, vector<128x32xbf16>
    %cst_171 = arith.constant dense<0.000000e+00> : vector<24x32xf32>
    %267 = tpu.matmul %265, %266, %cst_171 {dimension_numbers = #tpu.dot_dimension_numbers<[1], [0], [0], [1], [0, 0, 1, 1], [], []>} : vector<24x128xbf16>, vector<128x32xbf16>, vector<24x32xf32> -> vector<24x32xf32>
    %c0_172 = arith.constant 0 : index
    %c0_173 = arith.constant 0 : index
    %268 = vector.load %arg9[%c0_172, %c0_173] : memref<32x32xf32, #tpu.memory_space<vmem>>, vector<24x32xf32>
    tpu.vector_store %arg9[%c0_172, %c0_173], %267 {strides = array<i32>} : memref<32x32xf32, #tpu.memory_space<vmem>>, vector<24x32xf32>,
    %c0_174 = arith.constant 0 : index
    %c0_175 = arith.constant 0 : index
    %269 = vector.load %arg9[%c0_174, %c0_175] : memref<32x32xf32, #tpu.memory_space<vmem>>, vector<24x32xf32>
    %c96 = arith.constant 96 : index
    %c0_176 = arith.constant 0 : index
    %270 = vector.load %arg2[%c96, %c0_176] : memref<184x2xf32, #tpu.memory_space<vmem>>, vector<24x1xf32>
    %c96_177 = arith.constant 96 : index
    %c1_178 = arith.constant 1 : index
    %271 = vector.load %arg2[%c96_177, %c1_178] : memref<184x2xf32, #tpu.memory_space<vmem>>, vector<24x1xf32>
    %272 = vector.broadcast %270 : vector<24x1xf32> to vector<24x32xf32>
    %273 = arith.mulf %269, %272 : vector<24x32xf32>
    %274 = vector.broadcast %271 : vector<24x1xf32> to vector<24x32xf32>
    %275 = arith.addf %273, %274 : vector<24x32xf32>
    %cst_179 = arith.constant 0.000000e+00 : f32
    %276 = vector.broadcast %cst_179 : f32 to vector<24x32xf32>
    %277 = arith.maximumf %275, %276 : vector<24x32xf32>
    %278 = vector.extract_strided_slice %277 {offsets = [0, 27], sizes = [24, 5], strides = [1, 1]} : vector<24x32xf32> to vector<24x5xf32>
    %279 = vector.extract_strided_slice %277 {offsets = [0, 0], sizes = [24, 27], strides = [1, 1]} : vector<24x32xf32> to vector<24x27xf32>
    %280 = tpu.concatenate %278, %279 in 1 : vector<24x5xf32>, vector<24x27xf32> -> vector<24x32xf32>
    %c18 = arith.constant 18 : index
    %c0_180 = arith.constant 0 : index
    %281 = vector.load %arg3[%c18, %c0_180] : memref<32x512xf32, #tpu.memory_space<vmem>>, vector<1x32xf32>
    %282 = vector.broadcast %281 : vector<1x32xf32> to vector<24x32xf32>
    %283 = arith.mulf %280, %282 : vector<24x32xf32>
    %284 = vector.extract_strided_slice %277 {offsets = [0, 28], sizes = [24, 4], strides = [1, 1]} : vector<24x32xf32> to vector<24x4xf32>
    %285 = vector.extract_strided_slice %277 {offsets = [0, 0], sizes = [24, 28], strides = [1, 1]} : vector<24x32xf32> to vector<24x28xf32>
    %286 = tpu.concatenate %284, %285 in 1 : vector<24x4xf32>, vector<24x28xf32> -> vector<24x32xf32>
    %c19 = arith.constant 19 : index
    %c0_181 = arith.constant 0 : index
    %287 = vector.load %arg3[%c19, %c0_181] : memref<32x512xf32, #tpu.memory_space<vmem>>, vector<1x32xf32>
    %288 = vector.broadcast %287 : vector<1x32xf32> to vector<24x32xf32>
    %289 = arith.mulf %286, %288 : vector<24x32xf32>
    %290 = vector.extract_strided_slice %277 {offsets = [0, 29], sizes = [24, 3], strides = [1, 1]} : vector<24x32xf32> to vector<24x3xf32>
    %291 = vector.extract_strided_slice %277 {offsets = [0, 0], sizes = [24, 29], strides = [1, 1]} : vector<24x32xf32> to vector<24x29xf32>
    %292 = tpu.concatenate %290, %291 in 1 : vector<24x3xf32>, vector<24x29xf32> -> vector<24x32xf32>
    %c20_182 = arith.constant 20 : index
    %c0_183 = arith.constant 0 : index
    %293 = vector.load %arg3[%c20_182, %c0_183] : memref<32x512xf32, #tpu.memory_space<vmem>>, vector<1x32xf32>
    %294 = vector.broadcast %293 : vector<1x32xf32> to vector<24x32xf32>
    %295 = arith.mulf %292, %294 : vector<24x32xf32>
    %296 = vector.extract_strided_slice %277 {offsets = [0, 31], sizes = [24, 1], strides = [1, 1]} : vector<24x32xf32> to vector<24x1xf32>
    %297 = vector.extract_strided_slice %277 {offsets = [0, 0], sizes = [24, 31], strides = [1, 1]} : vector<24x32xf32> to vector<24x31xf32>
    %298 = tpu.concatenate %296, %297 in 1 : vector<24x1xf32>, vector<24x31xf32> -> vector<24x32xf32>
    %c21 = arith.constant 21 : index
    %c0_184 = arith.constant 0 : index
    %299 = vector.load %arg3[%c21, %c0_184] : memref<32x512xf32, #tpu.memory_space<vmem>>, vector<1x32xf32>
    %300 = vector.broadcast %299 : vector<1x32xf32> to vector<24x32xf32>
    %301 = arith.mulf %298, %300 : vector<24x32xf32>
    %c22 = arith.constant 22 : index
    %c0_185 = arith.constant 0 : index
    %302 = vector.load %arg3[%c22, %c0_185] : memref<32x512xf32, #tpu.memory_space<vmem>>, vector<1x32xf32>
    %303 = vector.broadcast %302 : vector<1x32xf32> to vector<24x32xf32>
    %304 = arith.mulf %277, %303 : vector<24x32xf32>
    %305 = vector.extract_strided_slice %277 {offsets = [0, 1], sizes = [24, 31], strides = [1, 1]} : vector<24x32xf32> to vector<24x31xf32>
    %306 = vector.extract_strided_slice %277 {offsets = [0, 0], sizes = [24, 1], strides = [1, 1]} : vector<24x32xf32> to vector<24x1xf32>
    %307 = tpu.concatenate %305, %306 in 1 : vector<24x31xf32>, vector<24x1xf32> -> vector<24x32xf32>
    %c23 = arith.constant 23 : index
    %c0_186 = arith.constant 0 : index
    %308 = vector.load %arg3[%c23, %c0_186] : memref<32x512xf32, #tpu.memory_space<vmem>>, vector<1x32xf32>
    %309 = vector.broadcast %308 : vector<1x32xf32> to vector<24x32xf32>
    %310 = arith.mulf %307, %309 : vector<24x32xf32>
    %311 = vector.extract_strided_slice %277 {offsets = [0, 3], sizes = [24, 29], strides = [1, 1]} : vector<24x32xf32> to vector<24x29xf32>
    %312 = vector.extract_strided_slice %277 {offsets = [0, 0], sizes = [24, 3], strides = [1, 1]} : vector<24x32xf32> to vector<24x3xf32>
    %313 = tpu.concatenate %311, %312 in 1 : vector<24x29xf32>, vector<24x3xf32> -> vector<24x32xf32>
    %c24 = arith.constant 24 : index
    %c0_187 = arith.constant 0 : index
    %314 = vector.load %arg3[%c24, %c0_187] : memref<32x512xf32, #tpu.memory_space<vmem>>, vector<1x32xf32>
    %315 = vector.broadcast %314 : vector<1x32xf32> to vector<24x32xf32>
    %316 = arith.mulf %313, %315 : vector<24x32xf32>
    %317 = vector.extract_strided_slice %277 {offsets = [0, 4], sizes = [24, 28], strides = [1, 1]} : vector<24x32xf32> to vector<24x28xf32>
    %318 = vector.extract_strided_slice %277 {offsets = [0, 0], sizes = [24, 4], strides = [1, 1]} : vector<24x32xf32> to vector<24x4xf32>
    %319 = tpu.concatenate %317, %318 in 1 : vector<24x28xf32>, vector<24x4xf32> -> vector<24x32xf32>
    %c25 = arith.constant 25 : index
    %c0_188 = arith.constant 0 : index
    %320 = vector.load %arg3[%c25, %c0_188] : memref<32x512xf32, #tpu.memory_space<vmem>>, vector<1x32xf32>
    %321 = vector.broadcast %320 : vector<1x32xf32> to vector<24x32xf32>
    %322 = arith.mulf %319, %321 : vector<24x32xf32>
    %323 = vector.extract_strided_slice %277 {offsets = [0, 5], sizes = [24, 27], strides = [1, 1]} : vector<24x32xf32> to vector<24x27xf32>
    %324 = vector.extract_strided_slice %277 {offsets = [0, 0], sizes = [24, 5], strides = [1, 1]} : vector<24x32xf32> to vector<24x5xf32>
    %325 = tpu.concatenate %323, %324 in 1 : vector<24x27xf32>, vector<24x5xf32> -> vector<24x32xf32>
    %c26 = arith.constant 26 : index
    %c0_189 = arith.constant 0 : index
    %326 = vector.load %arg3[%c26, %c0_189] : memref<32x512xf32, #tpu.memory_space<vmem>>, vector<1x32xf32>
    %327 = vector.broadcast %326 : vector<1x32xf32> to vector<24x32xf32>
    %328 = arith.mulf %325, %327 : vector<24x32xf32>
    %329 = tpu.concatenate %283, %289, %295, %301, %304, %310, %316, %322, %328 in 0 : vector<24x32xf32>, vector<24x32xf32>, vector<24x32xf32>, vector<24x32xf32>, vector<24x32xf32>, vector<24x32xf32>, vector<24x32xf32>, vector<24x32xf32>, vector<24x32xf32> -> vector<216x32xf32>
    %330 = arith.truncf %329 : vector<216x32xf32> to vector<216x32xbf16>
    %c64 = arith.constant 64 : index
    %c0_190 = arith.constant 0 : index
    %331 = vector.load %arg1[%c64, %c0_190] : memref<72x252xbf16, #tpu.memory_space<vmem>>, vector<4x216xbf16>
    %cst_191 = arith.constant dense<0.000000e+00> : vector<4x32xf32>
    %332 = tpu.matmul %331, %330, %cst_191 {dimension_numbers = #tpu.dot_dimension_numbers<[1], [0], [0], [1], [0, 0, 1, 1], [], []>} : vector<4x216xbf16>, vector<216x32xbf16>, vector<4x32xf32> -> vector<4x32xf32>
    %c24_192 = arith.constant 24 : index
    %c0_193 = arith.constant 0 : index
    %333 = vector.load %arg9[%c24_192, %c0_193] : memref<32x32xf32, #tpu.memory_space<vmem>>, vector<4x32xf32>
    tpu.vector_store %arg9[%c24_192, %c0_193], %332 {strides = array<i32>} : memref<32x32xf32, #tpu.memory_space<vmem>>, vector<4x32xf32>,
    %c0_194 = arith.constant 0 : index
    %c0_195 = arith.constant 0 : index
    %334 = vector.load %arg9[%c0_194, %c0_195] : memref<32x32xf32, #tpu.memory_space<vmem>>, vector<28x32xf32>
    %c120 = arith.constant 120 : index
    %c0_196 = arith.constant 0 : index
    %335 = vector.load %arg2[%c120, %c0_196] : memref<184x2xf32, #tpu.memory_space<vmem>>, vector<28x1xf32>
    %c120_197 = arith.constant 120 : index
    %c1_198 = arith.constant 1 : index
    %336 = vector.load %arg2[%c120_197, %c1_198] : memref<184x2xf32, #tpu.memory_space<vmem>>, vector<28x1xf32>
    %337 = vector.broadcast %335 : vector<28x1xf32> to vector<28x32xf32>
    %338 = arith.mulf %334, %337 : vector<28x32xf32>
    %339 = vector.broadcast %336 : vector<28x1xf32> to vector<28x32xf32>
    %340 = arith.addf %338, %339 : vector<28x32xf32>
    %cst_199 = arith.constant 0.000000e+00 : f32
    %341 = vector.broadcast %cst_199 : f32 to vector<28x32xf32>
    %342 = arith.maximumf %340, %341 : vector<28x32xf32>
    %343 = vector.extract_strided_slice %342 {offsets = [0, 27], sizes = [28, 5], strides = [1, 1]} : vector<28x32xf32> to vector<28x5xf32>
    %344 = vector.extract_strided_slice %342 {offsets = [0, 0], sizes = [28, 27], strides = [1, 1]} : vector<28x32xf32> to vector<28x27xf32>
    %345 = tpu.concatenate %343, %344 in 1 : vector<28x5xf32>, vector<28x27xf32> -> vector<28x32xf32>
    %c18_200 = arith.constant 18 : index
    %c0_201 = arith.constant 0 : index
    %346 = vector.load %arg3[%c18_200, %c0_201] : memref<32x512xf32, #tpu.memory_space<vmem>>, vector<1x32xf32>
    %347 = vector.broadcast %346 : vector<1x32xf32> to vector<28x32xf32>
    %348 = arith.mulf %345, %347 : vector<28x32xf32>
    %349 = vector.extract_strided_slice %342 {offsets = [0, 28], sizes = [28, 4], strides = [1, 1]} : vector<28x32xf32> to vector<28x4xf32>
    %350 = vector.extract_strided_slice %342 {offsets = [0, 0], sizes = [28, 28], strides = [1, 1]} : vector<28x32xf32> to vector<28x28xf32>
    %351 = tpu.concatenate %349, %350 in 1 : vector<28x4xf32>, vector<28x28xf32> -> vector<28x32xf32>
    %c19_202 = arith.constant 19 : index
    %c0_203 = arith.constant 0 : index
    %352 = vector.load %arg3[%c19_202, %c0_203] : memref<32x512xf32, #tpu.memory_space<vmem>>, vector<1x32xf32>
    %353 = vector.broadcast %352 : vector<1x32xf32> to vector<28x32xf32>
    %354 = arith.mulf %351, %353 : vector<28x32xf32>
    %355 = vector.extract_strided_slice %342 {offsets = [0, 29], sizes = [28, 3], strides = [1, 1]} : vector<28x32xf32> to vector<28x3xf32>
    %356 = vector.extract_strided_slice %342 {offsets = [0, 0], sizes = [28, 29], strides = [1, 1]} : vector<28x32xf32> to vector<28x29xf32>
    %357 = tpu.concatenate %355, %356 in 1 : vector<28x3xf32>, vector<28x29xf32> -> vector<28x32xf32>
    %c20_204 = arith.constant 20 : index
    %c0_205 = arith.constant 0 : index
    %358 = vector.load %arg3[%c20_204, %c0_205] : memref<32x512xf32, #tpu.memory_space<vmem>>, vector<1x32xf32>
    %359 = vector.broadcast %358 : vector<1x32xf32> to vector<28x32xf32>
    %360 = arith.mulf %357, %359 : vector<28x32xf32>
    %361 = vector.extract_strided_slice %342 {offsets = [0, 31], sizes = [28, 1], strides = [1, 1]} : vector<28x32xf32> to vector<28x1xf32>
    %362 = vector.extract_strided_slice %342 {offsets = [0, 0], sizes = [28, 31], strides = [1, 1]} : vector<28x32xf32> to vector<28x31xf32>
    %363 = tpu.concatenate %361, %362 in 1 : vector<28x1xf32>, vector<28x31xf32> -> vector<28x32xf32>
    %c21_206 = arith.constant 21 : index
    %c0_207 = arith.constant 0 : index
    %364 = vector.load %arg3[%c21_206, %c0_207] : memref<32x512xf32, #tpu.memory_space<vmem>>, vector<1x32xf32>
    %365 = vector.broadcast %364 : vector<1x32xf32> to vector<28x32xf32>
    %366 = arith.mulf %363, %365 : vector<28x32xf32>
    %c22_208 = arith.constant 22 : index
    %c0_209 = arith.constant 0 : index
    %367 = vector.load %arg3[%c22_208, %c0_209] : memref<32x512xf32, #tpu.memory_space<vmem>>, vector<1x32xf32>
    %368 = vector.broadcast %367 : vector<1x32xf32> to vector<28x32xf32>
    %369 = arith.mulf %342, %368 : vector<28x32xf32>
    %370 = vector.extract_strided_slice %342 {offsets = [0, 1], sizes = [28, 31], strides = [1, 1]} : vector<28x32xf32> to vector<28x31xf32>
    %371 = vector.extract_strided_slice %342 {offsets = [0, 0], sizes = [28, 1], strides = [1, 1]} : vector<28x32xf32> to vector<28x1xf32>
    %372 = tpu.concatenate %370, %371 in 1 : vector<28x31xf32>, vector<28x1xf32> -> vector<28x32xf32>
    %c23_210 = arith.constant 23 : index
    %c0_211 = arith.constant 0 : index
    %373 = vector.load %arg3[%c23_210, %c0_211] : memref<32x512xf32, #tpu.memory_space<vmem>>, vector<1x32xf32>
    %374 = vector.broadcast %373 : vector<1x32xf32> to vector<28x32xf32>
    %375 = arith.mulf %372, %374 : vector<28x32xf32>
    %376 = vector.extract_strided_slice %342 {offsets = [0, 3], sizes = [28, 29], strides = [1, 1]} : vector<28x32xf32> to vector<28x29xf32>
    %377 = vector.extract_strided_slice %342 {offsets = [0, 0], sizes = [28, 3], strides = [1, 1]} : vector<28x32xf32> to vector<28x3xf32>
    %378 = tpu.concatenate %376, %377 in 1 : vector<28x29xf32>, vector<28x3xf32> -> vector<28x32xf32>
    %c24_212 = arith.constant 24 : index
    %c0_213 = arith.constant 0 : index
    %379 = vector.load %arg3[%c24_212, %c0_213] : memref<32x512xf32, #tpu.memory_space<vmem>>, vector<1x32xf32>
    %380 = vector.broadcast %379 : vector<1x32xf32> to vector<28x32xf32>
    %381 = arith.mulf %378, %380 : vector<28x32xf32>
    %382 = vector.extract_strided_slice %342 {offsets = [0, 4], sizes = [28, 28], strides = [1, 1]} : vector<28x32xf32> to vector<28x28xf32>
    %383 = vector.extract_strided_slice %342 {offsets = [0, 0], sizes = [28, 4], strides = [1, 1]} : vector<28x32xf32> to vector<28x4xf32>
    %384 = tpu.concatenate %382, %383 in 1 : vector<28x28xf32>, vector<28x4xf32> -> vector<28x32xf32>
    %c25_214 = arith.constant 25 : index
    %c0_215 = arith.constant 0 : index
    %385 = vector.load %arg3[%c25_214, %c0_215] : memref<32x512xf32, #tpu.memory_space<vmem>>, vector<1x32xf32>
    %386 = vector.broadcast %385 : vector<1x32xf32> to vector<28x32xf32>
    %387 = arith.mulf %384, %386 : vector<28x32xf32>
    %388 = vector.extract_strided_slice %342 {offsets = [0, 5], sizes = [28, 27], strides = [1, 1]} : vector<28x32xf32> to vector<28x27xf32>
    %389 = vector.extract_strided_slice %342 {offsets = [0, 0], sizes = [28, 5], strides = [1, 1]} : vector<28x32xf32> to vector<28x5xf32>
    %390 = tpu.concatenate %388, %389 in 1 : vector<28x27xf32>, vector<28x5xf32> -> vector<28x32xf32>
    %c26_216 = arith.constant 26 : index
    %c0_217 = arith.constant 0 : index
    %391 = vector.load %arg3[%c26_216, %c0_217] : memref<32x512xf32, #tpu.memory_space<vmem>>, vector<1x32xf32>
    %392 = vector.broadcast %391 : vector<1x32xf32> to vector<28x32xf32>
    %393 = arith.mulf %390, %392 : vector<28x32xf32>
    %394 = tpu.concatenate %348, %354, %360, %366, %369, %375, %381, %387, %393 in 0 : vector<28x32xf32>, vector<28x32xf32>, vector<28x32xf32>, vector<28x32xf32>, vector<28x32xf32>, vector<28x32xf32>, vector<28x32xf32>, vector<28x32xf32>, vector<28x32xf32> -> vector<252x32xf32>
    %395 = arith.truncf %394 : vector<252x32xf32> to vector<252x32xbf16>
    %c68 = arith.constant 68 : index
    %c0_218 = arith.constant 0 : index
    %396 = vector.load %arg1[%c68, %c0_218] : memref<72x252xbf16, #tpu.memory_space<vmem>>, vector<4x252xbf16>
    %cst_219 = arith.constant dense<0.000000e+00> : vector<4x32xf32>
    %397 = tpu.matmul %396, %395, %cst_219 {dimension_numbers = #tpu.dot_dimension_numbers<[1], [0], [0], [1], [0, 0, 1, 1], [], []>} : vector<4x252xbf16>, vector<252x32xbf16>, vector<4x32xf32> -> vector<4x32xf32>
    %c28 = arith.constant 28 : index
    %c0_220 = arith.constant 0 : index
    %398 = vector.load %arg9[%c28, %c0_220] : memref<32x32xf32, #tpu.memory_space<vmem>>, vector<4x32xf32>
    tpu.vector_store %arg9[%c28, %c0_220], %397 {strides = array<i32>} : memref<32x32xf32, #tpu.memory_space<vmem>>, vector<4x32xf32>,
    %c0_221 = arith.constant 0 : index
    %c0_222 = arith.constant 0 : index
    %399 = vector.load %arg9[%c0_221, %c0_222] : memref<32x32xf32, #tpu.memory_space<vmem>>, vector<32x32xf32>
    %c148 = arith.constant 148 : index
    %c0_223 = arith.constant 0 : index
    %400 = vector.load %arg2[%c148, %c0_223] : memref<184x2xf32, #tpu.memory_space<vmem>>, vector<32x1xf32>
    %c148_224 = arith.constant 148 : index
    %c1_225 = arith.constant 1 : index
    %401 = vector.load %arg2[%c148_224, %c1_225] : memref<184x2xf32, #tpu.memory_space<vmem>>, vector<32x1xf32>
    %402 = vector.broadcast %400 : vector<32x1xf32> to vector<32x32xf32>
    %403 = arith.mulf %399, %402 : vector<32x32xf32>
    %404 = vector.broadcast %401 : vector<32x1xf32> to vector<32x32xf32>
    %405 = arith.addf %403, %404 : vector<32x32xf32>
    %cst_226 = arith.constant 0.000000e+00 : f32
    %406 = vector.broadcast %cst_226 : f32 to vector<32x32xf32>
    %407 = arith.maximumf %405, %406 : vector<32x32xf32>
    %408 = arith.truncf %407 : vector<32x32xf32> to vector<32x32xbf16>
    %c640 = arith.constant 640 : index
    %c0_227 = arith.constant 0 : index
    %409 = vector.load %arg4[%c640, %c0_227] : memref<672x128xbf16, #tpu.memory_space<vmem>>, vector<32x2xbf16>
    %cst_228 = arith.constant dense<0.000000e+00> : vector<32x2xf32>
    %410 = tpu.matmul %408, %409, %cst_228 {dimension_numbers = #tpu.dot_dimension_numbers<[1], [0], [0], [1], [0, 0, 1, 1], [], []>} : vector<32x32xbf16>, vector<32x2xbf16>, vector<32x2xf32> -> vector<32x2xf32>
    %c0_229 = arith.constant 0 : index
    %c0_230 = arith.constant 0 : index
    %411 = vector.load %arg5[%c0_229, %c0_230] : memref<16x33xf32, #tpu.memory_space<vmem>>, vector<16x32xf32>
    %cst_231 = arith.constant dense<0.000000e+00> : vector<16x2xf32>
    %412 = tpu.matmul %411, %410, %cst_231 {dimension_numbers = #tpu.dot_dimension_numbers<[1], [0], [0], [1], [0, 0, 1, 1], [], []>} : vector<16x32xf32>, vector<32x2xf32>, vector<16x2xf32> -> vector<16x2xf32>
    %c0_232 = arith.constant 0 : index
    %c32_233 = arith.constant 32 : index
    %413 = vector.load %arg5[%c0_232, %c32_233] : memref<16x33xf32, #tpu.memory_space<vmem>>, vector<16x1xf32>
    %414 = vector.broadcast %413 : vector<16x1xf32> to vector<16x2xf32>
    %415 = arith.addf %412, %414 : vector<16x2xf32>
    %cst_234 = arith.constant dense<0xFF800000> : vector<2xf32>
    %416 = vector.multi_reduction <maximumf>, %415, %cst_234 [0] : vector<16x2xf32> to vector<2xf32>
    %417 = vector.shape_cast %416 : vector<2xf32> to vector<1x2xf32>
    %418 = vector.broadcast %417 : vector<1x2xf32> to vector<16x2xf32>
    %419 = arith.subf %415, %418 : vector<16x2xf32>
    %420 = math.exp %419 : vector<16x2xf32>
    %cst_235 = arith.constant dense<0.000000e+00> : vector<2xf32>
    %421 = vector.multi_reduction <add>, %420, %cst_235 [0] : vector<16x2xf32> to vector<2xf32>
    %422 = vector.shape_cast %421 : vector<2xf32> to vector<1x2xf32>
    %423 = math.log %422 : vector<1x2xf32>
    %424 = vector.broadcast %423 : vector<1x2xf32> to vector<16x2xf32>
    %425 = arith.subf %419, %424 : vector<16x2xf32>
    %c0_236 = arith.constant 0 : index
    %c0_237 = arith.constant 0 : index
    %426 = vector.load %arg6[%c0_236, %c0_237] : memref<16x2xf32, #tpu.memory_space<vmem>>, vector<16x2xf32>
    tpu.vector_store %arg6[%c0_236, %c0_237], %425 {strides = array<i32>} : memref<16x2xf32, #tpu.memory_space<vmem>>, vector<16x2xf32>,
    return
  }
}

</mosaic_0001>

<bundles_post_ra>
// kernel: forward.1
= control target key start
LH: loop header
LB: loop body
LE: loop exit
PB: predicated region body
PF: predicated region fallthrough
CT: control target
= control target key end

     0   :  { %11 = vsyncpa [#allocation6], 0  ;;  %s4458_s21 = smov [#allocation5]   ;;  %s6844_s0 = inlined_call_operand.vmem [shape: f32[3,512], index: 0, kind: input, shape index: {}]   ;;  %s6845_s1 = inlined_call_operand.hbm [shape: bf16[72,252], index: 1, kind: input, shape index: {}]   ;;  %s6846_s2 = inlined_call_operand.vmem [shape: f32[184,2], index: 2, kind: input, shape index: {}]   ;;  %s6847_s3 = inlined_call_operand.vmem [shape: f32[32,512], index: 3, kind: input, shape index: {}]   ;;  %s6848_s4 = inlined_call_operand.vmem [shape: bf16[672,128], index: 4, kind: input, shape index: {}]   ;;  %s6849_s5 = inlined_call_operand.vmem [shape: f32[16,33], index: 5, kind: input, shape index: {}]   ;;  %s6850_s6 = inlined_call_operand.vmem [shape: f32[16,2], index: 6, kind: output, shape index: {}]  }
   0x1   :  { %s19_s22 = sshll.u32 %s4458_s21, 4  ;;  %s4434_s25 = scalar_lea.hbm %s6845_s1, 1152  ;;  %s20_s22 = int_to_ptr.vmem [resolvable:$true] %s19_s22 }
   0x2   :  { %p4435_p0 = scmp.ne.s32.totalorder %s6845_s1, %s4434_s25  ;;  %p4438_p1 = scmp.lt.u32.totalorder %s4434_s25, %s6845_s1 }
   0x4   :  { %p4440_p2 = pnand %p4438_p1, %p4435_p0 }
   0x6   :  { %4443 = shalt.err (!%p4440_p2)
}
   0x7   :  { %s4444_s30 = scalar_lea.vmem %s20_s22, 1152  ;;  %p4449_p4 = scmp.lt.s32.totalorder %s20_s22, %s20_s22 }
   0x8   :  { %p4445_p3 = scmp.ne.s32.totalorder %s20_s22, %s4444_s30  ;;  %p4450_p5 = scmp.lt.s32.totalorder %s4444_s30, %s4444_s30 }
   0xa   :  { %p4451_p6 = por %p4450_p5, %p4449_p4 }
   0xc   :  { %p4452_p7 = pnand %p4451_p6, %p4445_p3 }
   0xe   :  { %4455 = shalt.err (!%p4452_p7)
}
   0xf   :  { %s4459_s7 = smov 128   ;;  %s4460_s8 = smov 8  }
  0x10   :  { %25 = dma.hbm_to_vmem [thread:$0]  %s6845_s1, 1152, %s20_s22, [#allocation6], %s4459_s7, %s4459_s7, %s4460_s8  }
  0x11   :  { %4456 = dma.done.wait [#allocation6], 1152  }
  0x12   :  { %4457 = vsyncadd [#allocation6], 4294966144  ;;  %v4543_v0 = vld [vmem:[%s6844_s0 + $0x8] sm:$0x77]  ;;  %v4548_v1 = vld [vmem:[%s6844_s0] sm:$0x77]  ;;  %v54_v7 = vlaneseq }
  0x13   :  { %s4461_s15 = smov 15   ;;  %v43_v2 = vcombine.high %v4543_v0, %v4543_v0  ;;  %s4462_s1 = smov 1   ;;  %v42_v3 = vcombine.high %v4548_v1, %v4548_v1  ;;  %v6853_v4 = vmov 0   ;;  %v6851_v5 = vmov 1   ;;  %v622_v6 = vld [vmem:[%s6846_s2] sm:$0xff] }
  0x14   :  { %131 = vrot.lane.b32.xlu1 %v4543_v0, %s4461_s15  ;;  %127 = vrot.lane.b32.xlu0 %v4548_v1, %s4461_s15  ;;  %s4463_s0 = smov 16   ;;  %s4464_s16 = smov 127   ;;  %v64_v10 = vshrl.u32 %v54_v7, 7  ;;  %v4055_v16 = vld [vmem:[%s6847_s3 + $0x4] ss:$8 sm:$0xf] }
  0x15   :  { %s4465_s17 = smov 17   ;;  %s4466_s18 = smov 113   ;;  %564 = vmatprep.mubr.bf16.mxu0 %v6853_v4  ;;  %605 = vmatprep.mubr.bf16.mxu1 %v6853_v4  ;;  %v4628_v24 = vand.u32 127, %v54_v7  ;;  %v4633_v25 = vld [vmem:[%s6847_s3 + $0x2] ss:$8 sm:$0xf] }
  0x16   :  { %s4467_s19 = smov 112   ;;  %s4468_s20 = smov 111   ;;  %4333 = vset.pattern.permute.xlu0 %v6853_v4  ;;  %4334 = vset.pattern.permute.xlu1 %v6851_v5  ;;  %v4613_v13 = vsub.s32 1, %v64_v10  ;;  %v4615_v14 = vsub.s32 2, %v64_v10  ;;  %v4617_v15 = vsub.s32 3, %v64_v10  ;;  %v4622_v17 = vsub.s32 0, %v64_v10 }
  0x17   :  { %v4638_v26 = vld [vmem:[%s6847_s3 + $0x3] ss:$8 sm:$0xf]  ;;  %vm175_vm0 = vcmp.lt.s32.totalorder %v4628_v24, 1  ;;  %vm135_vm1 = vcmp.lt.s32.totalorder %v4628_v24, 15  ;;  %vm480_vm2 = vcmask 1040384  }
  0x18   :  { %133 = vrot.lane.b32.xlu1 %v43_v2, %s4461_s15  ;;  %167 = vrot.lane.b32.xlu0 %v4548_v1, %s4462_s1  ;;  %v221_v20 = vrot.slane %v4055_v16, %v4615_v14  ;;  %v225_v21 = vrot.slane %v4055_v16, %v4617_v15  ;;  %v213_v22 = vrot.slane %v4055_v16, %v4622_v17  ;;  %v4651_v34 = vld [vmem:[%s6847_s3 + $0x1] ss:$8 sm:$0xf]  ;;  %vm95_vm3 = vcmp.lt.s32.totalorder %v4628_v24, 16  ;;  %s4472_s29 = smov 9   ;;  %s4473_s30 = smov 7  }
  0x19   :  { %v217_v23 = vrot.slane %v4055_v16, %v4613_v13  ;;  %v146_v31 = vrot.slane %v4633_v25, %v4622_v17  ;;  %v190_v32 = vrot.slane %v4638_v26, %v4613_v13  ;;  %v150_v33 = vrot.slane %v4633_v25, %v4613_v13  ;;  %v4678_v47 = vld [vmem:[%s6847_s3 + $0x5] ss:$8 sm:$0xf]  ;;  %v4706_v61 = vld [vmem:[%s6847_s3] ss:$8 sm:$0xf] }
  0x1a   :  { %v227_v29 = vcombine.low %v221_v20, %v225_v21  ;;  %v158_v35 = vrot.slane %v4633_v25, %v4617_v15  ;;  %v154_v37 = vrot.slane %v4633_v25, %v4615_v14  ;;  %v186_v41 = vrot.slane %v4638_v26, %v4622_v17  ;;  %s4474_s7 = smov 121   ;;  %s4475_s9 = smov 120  }
  0x1b   :  { %v226_v30 = vcombine.low %v213_v22, %v217_v23  ;;  %v194_v42 = vrot.slane %v4638_v26, %v4615_v14  ;;  %v198_v43 = vrot.slane %v4638_v26, %v4617_v15  ;;  %v110_v45 = vrot.slane %v4651_v34, %v4613_v13  ;;  %s4482_s12 = smov 3   ;;  %s4483_s13 = smov 97  }
  0x1c   :  { %169 = vrot.lane.b32.xlu1 %v42_v3, %s4462_s1  ;;  %129 = vrot.lane.b32.xlu0 %v42_v3, %s4461_s15  ;;  %v4668_v44 = vmul.f32 %v227_v29, %v4543_v0  ;;  %v106_v46 = vrot.slane %v4651_v34, %v4622_v17  ;;  %v114_v55 = vrot.slane %v4651_v34, %v4615_v14  ;;  %vm240_vm4 = vcmp.lt.s32.totalorder %v4628_v24, 127  ;;  %s4484_s14 = smov 31   ;;  %s4485_s21 = smov 125  }
  0x1d   :  { %v4681_v48 = vmul.f32 %v226_v30, %v4548_v1  ;;  %v118_v56 = vrot.slane %v4651_v34, %v4617_v15  ;;  %v251_v59 = vrot.slane %v4678_v47, %v4622_v17  ;;  %v263_v60 = vrot.slane %v4678_v47, %v4617_v15  ;;  %s4486_s22 = smov 29   ;;  %s4487_s23 = smov 124  }
  0x1e   :  { %v431_v62 = vcombine.low %v4668_v44, %v4668_v44  ;;  %vm485_vm5 = vcmask 1043456   ;;  %v259_v16 = vrot.slane %v4678_v47, %v4615_v14  ;;  %vm56_vm6 = vcmp.lt.s32.totalorder %v4628_v24, 17  ;;  %s4488_s24 = smov 28   ;;  %s4489_s25 = smov 123  }
  0x1f   :  { %v430_v58 = vcombine.low %v4681_v48, %v4681_v48  ;;  %v70_v20 = vrot.slane %v4706_v61, %v4613_v13  ;;  %v66_v22 = vrot.slane %v4706_v61, %v4622_v17  ;;  %vm470_vm7 = vcmask 1042432   ;;  %s4490_s26 = smov 27  }
  0x20   :  { %173 = vrot.lane.b32.xlu1 %v43_v2, %s4462_s1  ;;  %171 = vrot.lane.b32.xlu0 %v4543_v0, %s4462_s1  ;;  %v78_v25 = vrot.slane %v4706_v61, %v4617_v15  ;;  %vm490_vm8 = vcmask 1046528   ;;  %vm475_vm9 = vcmask 1045504   ;;  %vm280_vm10 = vcmp.lt.s32.totalorder %v4628_v24, 113 }
  0x21   :  { %vm320_vm11 = vcmp.lt.s32.totalorder %v4628_v24, 112  ;;  %vm360_vm12 = vcmp.lt.s32.totalorder %v4628_v24, 111  ;;  %vm495_vm13 = vcmask 1041408   ;;  %vm500_vm14 = vcmask 1044480  }
  0x22   :  { %vm514_vm15 = vcmask 220160   ;;  %v6920_v24 = vmov 0  }
  0x24   :  { %89 = vrot.lane.b32.xlu1 %v42_v3, %s4463_s0  ;;  %87 = vrot.lane.b32.xlu0 %v4548_v1, %s4463_s0 }
  0x28   :  { %93 = vrot.lane.b32.xlu1 %v43_v2, %s4463_s0  ;;  %91 = vrot.lane.b32.xlu0 %v4543_v0, %s4463_s0 }
  0x2c   :  { %234 = vrot.lane.b32.xlu1 %v42_v3, %s4464_s16  ;;  %232 = vrot.lane.b32.xlu0 %v4548_v1, %s4464_s16 }
  0x30   :  { %238 = vrot.lane.b32.xlu1 %v43_v2, %s4464_s16  ;;  %236 = vrot.lane.b32.xlu0 %v4543_v0, %s4464_s16 }
  0x34   :  { %48 = vrot.lane.b32.xlu1 %v42_v3, %s4465_s17  ;;  %46 = vrot.lane.b32.xlu0 %v4548_v1, %s4465_s17 }
  0x38   :  { %52 = vrot.lane.b32.xlu1 %v43_v2, %s4465_s17  ;;  %50 = vrot.lane.b32.xlu0 %v4543_v0, %s4465_s17 }
  0x3c   :  { %274 = vrot.lane.b32.xlu1 %v42_v3, %s4466_s18  ;;  %272 = vrot.lane.b32.xlu0 %v4548_v1, %s4466_s18 }
  0x40   :  { %278 = vrot.lane.b32.xlu1 %v43_v2, %s4466_s18  ;;  %276 = vrot.lane.b32.xlu0 %v4543_v0, %s4466_s18 }
  0x44   :  { %314 = vrot.lane.b32.xlu1 %v42_v3, %s4467_s19  ;;  %312 = vrot.lane.b32.xlu0 %v4548_v1, %s4467_s19 }
  0x48   :  { %318 = vrot.lane.b32.xlu1 %v43_v2, %s4467_s19  ;;  %316 = vrot.lane.b32.xlu0 %v4543_v0, %s4467_s19 }
  0x4c   :  { %354 = vrot.lane.b32.xlu1 %v42_v3, %s4468_s20  ;;  %352 = vrot.lane.b32.xlu0 %v4548_v1, %s4468_s20 }
  0x50   :  { %358 = vrot.lane.b32.xlu1 %v43_v2, %s4468_s20  ;;  %356 = vrot.lane.b32.xlu0 %v4543_v0, %s4468_s20  ;;  %v255_v2 = vrot.slane %v4678_v47, %v4613_v13 }
  0x54   :  { %625 = vperm.xlu0 %4333, %v622_v6   ;;  %633 = vperm.xlu1 %4334, %v622_v6  }
  0x58   :  { %4335 = vset.pattern.permute.xlu1 %v6853_v4  ;;  %4337 = vset.pattern.permute.xlu0 %v6851_v5 }
  0x86   :  { %v4611_v8 = vpop.permute.xlu1 %131  ;;  %v128_v9 = vpop.permute.xlu0 %127 }
  0x8a   :  { %v134_v11 = vpop.permute.xlu1 %133  ;;  %v168_v12 = vpop.permute.xlu0 %167 }
  0x8b   :  { %v139_v49 = vsel %vm135_vm1, %v134_v11, %v128_v9  ;;  %v136_v53 = vsel %vm135_vm1, %v4611_v8, %v134_v11 }
  0x8c   :  { %v4710_v63 = vmul.f32 %v146_v31, %v139_v49  ;;  %v4716_v3 = vmul.f32 %v158_v35, %v136_v53 }
  0x8e   :  { %v170_v18 = vpop.permute.xlu1 %169  ;;  %v130_v19 = vpop.permute.xlu0 %129  ;;  %v411_v26 = vrot.slane %v4716_v3, 2  ;;  %v4058_v3 = vld [vmem:[%s6847_s3 + $0x7] ss:$8 sm:$0xf] }
  0x8f   :  { %v178_v36 = vsel %vm175_vm0, %v168_v12, %v170_v18  ;;  %v138_v38 = vsel %vm135_vm1, %v128_v9, %v130_v19  ;;  %v137_v10 = vsel %vm135_vm1, %v130_v19, %v4611_v8  ;;  %v408_v8 = vrot.slane %v4710_v63, 2  ;;  %v4057_v63 = vld [vmem:[%s6847_s3 + $0x6] ss:$8 sm:$0xf] }
  0x90   :  { %v204_v50 = vmul.f32 %v190_v32, %v178_v36  ;;  %v4685_v51 = vmul.f32 %v150_v33, %v138_v38 }
  0x92   :  { %v174_v27 = vpop.permute.xlu1 %173  ;;  %v172_v28 = vpop.permute.xlu0 %171  ;;  %v421_v6 = vrot.slane %v204_v50, 7  ;;  %v409_v7 = vrot.slane %v4685_v51, 2 }
  0x93   :  { %v179_v52 = vsel %vm175_vm0, %v174_v27, %v168_v12  ;;  %v176_v1 = vsel %vm175_vm0, %v172_v28, %v174_v27  ;;  %v177_v9 = vsel %vm175_vm0, %v170_v18, %v172_v28  ;;  %v74_v18 = vrot.slane %v4706_v61, %v4615_v14 }
  0x94   :  { %v203_v0 = vmul.f32 %v186_v41, %v179_v52  ;;  %v206_v21 = vmul.f32 %v198_v43, %v176_v1  ;;  %v205_v23 = vmul.f32 %v194_v42, %v177_v9  ;;  %v4737_v27 = vmul.f32 %v154_v37, %v137_v10 }
  0x95   :  { %v482_v29 = vsel %vm480_vm2, %v409_v7, %v421_v6 }
  0x96   :  { %v90_v39 = vpop.permute.xlu1 %89  ;;  %v88_v40 = vpop.permute.xlu0 %87  ;;  %v420_v19 = vrot.slane %v203_v0, 7  ;;  %v423_v36 = vrot.slane %v206_v21, 7  ;;  %v422_v41 = vrot.slane %v205_v23, 7  ;;  %v410_v53 = vrot.slane %v4737_v27, 2 }
  0x97   :  { %v98_v28 = vsel %vm95_vm3, %v88_v40, %v90_v39 }
  0x98   :  { %v124_v42 = vmul.f32 %v110_v45, %v98_v28 }
  0x9a   :  { %v94_v54 = vpop.permute.xlu1 %93  ;;  %v92_v57 = vpop.permute.xlu0 %91 }
  0x9b   :  { %v99_v30 = vsel %vm95_vm3, %v94_v54, %v88_v40  ;;  %v96_v31 = vsel %vm95_vm3, %v92_v57, %v94_v54  ;;  %v97_v32 = vsel %vm95_vm3, %v90_v39, %v92_v57  ;;  %v481_v39 = vsel %vm480_vm2, %v408_v8, %v420_v19 }
  0x9c   :  { %v123_v47 = vmul.f32 %v106_v46, %v99_v30  ;;  %v125_v49 = vmul.f32 %v114_v55, %v97_v32  ;;  %v126_v50 = vmul.f32 %v118_v56, %v96_v31  ;;  %v487_v46 = vsel %vm485_vm5, %v482_v29, %v4681_v48 }
  0x9d   :  { %v484_v55 = vsel %vm480_vm2, %v411_v26, %v423_v36  ;;  %v397_v56 = vrot.slane %v124_v42, 5 }
  0x9e   :  { %v235_v11 = vpop.permute.xlu1 %234  ;;  %v233_v12 = vpop.permute.xlu0 %232  ;;  %v396_v6 = vrot.slane %v123_v47, 5  ;;  %v398_v9 = vrot.slane %v125_v49, 5  ;;  %v399_v10 = vrot.slane %v126_v50, 5  ;;  %v295_v49 = vrot.slane %v4057_v63, %v4613_v13 }
  0x9f   :  { %v243_v33 = vsel %vm240_vm4, %v233_v12, %v235_v11 }
  0xa0   :  { %v4763_v52 = vmul.f32 %v251_v59, %v243_v33 }
  0xa2   :  { %v239_v34 = vpop.permute.xlu1 %238  ;;  %v237_v35 = vpop.permute.xlu0 %236 }
  0xa3   :  { %v244_v37 = vsel %vm240_vm4, %v239_v34, %v233_v12  ;;  %v241_v38 = vsel %vm240_vm4, %v237_v35, %v239_v34  ;;  %v242_v40 = vsel %vm240_vm4, %v235_v11, %v237_v35  ;;  %v438_v11 = vrot.slane %v4763_v52, 1 }
  0xa4   :  { %v4758_v43 = vmul.f32 %v255_v2, %v242_v40  ;;  %v4766_v54 = vmul.f32 %v263_v60, %v244_v37  ;;  %v4768_v57 = vmul.f32 %v259_v16, %v241_v38  ;;  %v486_v60 = vsel %vm485_vm5, %v481_v39, %v430_v58 }
  0xa5   :  { %v483_v2 = vsel %vm480_vm2, %v410_v53, %v422_v41  ;;  %v491_v33 = vsel %vm490_vm8, %v486_v60, %v438_v11  ;;  %v489_v34 = vsel %vm485_vm5, %v484_v55, %v4668_v44  ;;  %v343_v60 = vrot.slane %v4058_v3, %v4617_v15 }
  0xa6   :  { %v439_v61 = vrot.slane %v4758_v43, 1  ;;  %v49_v45 = vpop.permute.xlu1 %48  ;;  %v47_v0 = vpop.permute.xlu0 %46  ;;  %v441_v12 = vrot.slane %v4766_v54, 1  ;;  %v440_v16 = vrot.slane %v4768_v57, 1  ;;  %v488_v35 = vsel %vm485_vm5, %v483_v2, %v431_v62 }
  0xa7   :  { %v59_v1 = vsel %vm56_vm6, %v47_v0, %v49_v45  ;;  %v335_v2 = vrot.slane %v4058_v3, %v4613_v13  ;;  %vm995_vm2 = vcmask 588800  }
  0xa8   :  { %v84_v59 = vmul.f32 %v70_v20, %v59_v1  ;;  %v492_v48 = vsel %vm490_vm8, %v487_v46, %v439_v61  ;;  %v493_v38 = vsel %vm490_vm8, %v488_v35, %v440_v16  ;;  %v299_v1 = vrot.slane %v4057_v63, %v4615_v14 }
  0xaa   :  { %v53_v21 = vpop.permute.xlu1 %52  ;;  %v51_v19 = vpop.permute.xlu0 %50  ;;  %v472_v20 = vsel %vm470_vm7, %v84_v59, %v397_v56  ;;  %v331_v56 = vrot.slane %v4058_v3, %v4622_v17 }
  0xab   :  { %v60_v58 = vsel %vm56_vm6, %v53_v21, %v47_v0  ;;  %v57_v23 = vsel %vm56_vm6, %v51_v19, %v53_v21  ;;  %v58_v27 = vsel %vm56_vm6, %v49_v45, %v51_v19  ;;  %v477_v28 = vsel %vm475_vm9, %v472_v20, %v409_v7 }
  0xac   :  { %v83_v29 = vmul.f32 %v66_v22, %v60_v58  ;;  %v85_v30 = vmul.f32 %v74_v18, %v58_v27  ;;  %v86_v31 = vmul.f32 %v78_v25, %v57_v23  ;;  %v506_v32 = vpack.c.bf16 %v492_v48, %v477_v28  ;;  %v4059_v48 = vld [vmem:[%s6847_s3 + $0x20] ss:$8 sm:$0xf] }
  0xad   :  { %v494_v18 = vsel %vm490_vm8, %v489_v34, %v441_v12  ;;  %vm3067_vm8 = vcmask 39936  }
  0xae   :  { %v275_v36 = vpop.permute.xlu1 %274  ;;  %532 = vmatprep.subr.bf16.mxu0 %v506_v32  ;;  %v273_v51 = vpop.permute.xlu0 %272  ;;  %v471_v7 = vsel %vm470_vm7, %v83_v29, %v396_v6  ;;  %v474_v22 = vsel %vm470_vm7, %v86_v31, %v399_v10  ;;  %v473_v25 = vsel %vm470_vm7, %v85_v30, %v398_v9  ;;  %v339_v6 = vrot.slane %v4058_v3, %v4615_v14 }
  0xaf   :  { %v476_v37 = vsel %vm475_vm9, %v471_v7, %v408_v8  ;;  %v479_v44 = vsel %vm475_vm9, %v474_v22, %v411_v26  ;;  %v478_v62 = vsel %vm475_vm9, %v473_v25, %v410_v53  ;;  %v291_v8 = vrot.slane %v4057_v63, %v4622_v17 }
  0xb0   :  { %v505_v40 = vpack.c.bf16 %v491_v33, %v476_v37  ;;  %v508_v41 = vpack.c.bf16 %v494_v18, %v479_v44  ;;  %v507_v42 = vpack.c.bf16 %v493_v38, %v478_v62  ;;  %v303_v26 = vrot.slane %v4057_v63, %v4617_v15 }
  0xb1   :  { %v283_v45 = vsel %vm280_vm10, %v273_v51, %v275_v36  ;;  %v371_v33 = vrot.slane %v4059_v48, %v4622_v17  ;;  %v383_v37 = vrot.slane %v4059_v48, %v4617_v15  ;;  %v375_v44 = vrot.slane %v4059_v48, %v4613_v13 }
  0xb2   :  { %v279_v39 = vpop.permute.xlu1 %278  ;;  %533 = vmatpush1.bf16.msra.mxu0 %v505_v40  ;;  %573 = vmatprep.subr.bf16.mxu1 %v508_v41  ;;  %v277_v47 = vpop.permute.xlu0 %276  ;;  %v308_v9 = vmul.f32 %v291_v8, %v283_v45  ;;  %v379_v62 = vrot.slane %v4059_v48, %v4615_v14  ;;  %v4471_v3 = vmov 65535   ;;  %vm3281_vm7 = vcmask 719872  }
  0xb3   :  { %574 = vmatpush1.bf16.msra.mxu1 %v507_v42  ;;  %v284_v0 = vsel %vm280_vm10, %v279_v39, %v273_v51  ;;  %v282_v46 = vsel %vm280_vm10, %v275_v36, %v277_v47  ;;  %v281_v55 = vsel %vm280_vm10, %v277_v47, %v279_v39  ;;  %v518_v8 = vsel %vm500_vm14, 4294967295, %v4471_v3 }
  0xb4   :  { %v311_v10 = vmul.f32 %v303_v26, %v284_v0  ;;  %v309_v21 = vmul.f32 %v295_v49, %v282_v46  ;;  %v310_v58 = vmul.f32 %v299_v1, %v281_v55  ;;  %v450_v34 = vrot.slane %v308_v9, 6  ;;  %v513_v9 = vld [vmem:[#allocation5] sm:$0xf] }
  0xb6   :  { %v315_v50 = vpop.permute.xlu1 %314  ;;  %v313_v53 = vpop.permute.xlu0 %312  ;;  %v453_v35 = vrot.slane %v311_v10, 6  ;;  %v451_v36 = vrot.slane %v309_v21, 6  ;;  %v452_v22 = vrot.slane %v310_v58, 6  ;;  %v496_v49 = vsel %vm495_vm13, %v438_v11, %v450_v34 }
  0xb7   :  { %v323_v59 = vsel %vm320_vm11, %v313_v53, %v315_v50 }
  0xb8   :  { %v348_v29 = vmul.f32 %v331_v56, %v323_v59  ;;  %v497_v63 = vsel %vm495_vm13, %v439_v61, %v451_v36  ;;  %v499_v26 = vsel %vm495_vm13, %v441_v12, %v453_v35  ;;  %v498_v61 = vsel %vm495_vm13, %v440_v16, %v452_v22 }
  0xb9   :  { %v519_v56 = vsel %vm475_vm9, %v518_v8, 0 }
  0xba   :  { %v319_v19 = vpop.permute.xlu1 %318  ;;  %v317_v20 = vpop.permute.xlu0 %316  ;;  %v462_v25 = vrot.slane %v348_v29, 3 }
  0xbb   :  { %v324_v23 = vsel %vm320_vm11, %v319_v19, %v313_v53  ;;  %v321_v27 = vsel %vm320_vm11, %v317_v20, %v319_v19  ;;  %v322_v28 = vsel %vm320_vm11, %v315_v50, %v317_v20 }
  0xbc   :  { %v351_v30 = vmul.f32 %v343_v60, %v324_v23  ;;  %v349_v31 = vmul.f32 %v335_v2, %v322_v28  ;;  %v350_v32 = vmul.f32 %v339_v6, %v321_v27  ;;  %v501_v52 = vsel %vm500_vm14, %v496_v49, %v462_v25 }
  0xbe   :  { %v355_v51 = vpop.permute.xlu1 %354  ;;  %v353_v7 = vpop.permute.xlu0 %352  ;;  %v465_v38 = vrot.slane %v351_v30, 3  ;;  %v463_v40 = vrot.slane %v349_v31, 3  ;;  %v464_v41 = vrot.slane %v350_v32, 3 }
  0xbf   :  { %v363_v18 = vsel %vm360_vm12, %v353_v7, %v355_v51 }
  0xc0   :  { %v388_v42 = vmul.f32 %v371_v33, %v363_v18  ;;  %v502_v11 = vsel %vm500_vm14, %v497_v63, %v463_v40  ;;  %v504_v0 = vsel %vm500_vm14, %v499_v26, %v465_v38  ;;  %v503_v46 = vsel %vm500_vm14, %v498_v61, %v464_v41  ;;  %v656_v40 = vld [vmem:[%s6847_s3] ss:$8 sm:$0xf] }
  0xc1   :  { %v661_v49 = vrot.slane %v656_v40, %v4622_v17  ;;  %vm3201_vm14 = vcmask 236544  }
  0xc2   :  { %v359_v39 = vpop.permute.xlu1 %358  ;;  %v357_v47 = vpop.permute.xlu0 %356  ;;  %v509_v1 = vpack.c.bf16 %v388_v42, %v501_v52  ;;  %v4062_v42 = vld [vmem:[%s6847_s3 + $0x1] ss:$8 sm:$0xf]  ;;  %v669_v52 = vrot.slane %v656_v40, %v4615_v14 }
  0xc3   :  { %v364_v50 = vsel %vm360_vm12, %v359_v39, %v353_v7  ;;  %v361_v53 = vsel %vm360_vm12, %v357_v47, %v359_v39  ;;  %v362_v43 = vsel %vm360_vm12, %v355_v51, %v357_v47  ;;  %v665_v47 = vrot.slane %v656_v40, %v4613_v13 }
  0xc4   :  { %v391_v54 = vmul.f32 %v383_v37, %v364_v50  ;;  %v389_v45 = vmul.f32 %v375_v44, %v362_v43  ;;  %v390_v12 = vmul.f32 %v379_v62, %v361_v53  ;;  %v521_v6 = vand.u32 %v519_v56, %v509_v1  ;;  %v1105_v37 = vld [vmem:[%s6846_s2 + $0x8] sm:$0xff]  ;;  %v1106_v44 = vld [vmem:[%s6846_s2 + $0x10] sm:$0xf] }
  0xc5   :  { %v703_v63 = vrot.slane %v4062_v42, %v4613_v13  ;;  %v673_v50 = vrot.slane %v656_v40, %v4617_v15  ;;  %v707_v43 = vrot.slane %v4062_v42, %v4615_v14 }
  0xc6   :  { %v510_v55 = vpack.c.bf16 %v389_v45, %v502_v11  ;;  %v512_v59 = vpack.c.bf16 %v391_v54, %v504_v0  ;;  %v511_v60 = vpack.c.bf16 %v390_v12, %v503_v46  ;;  %v699_v45 = vrot.slane %v4062_v42, %v4622_v17 }
  0xc7   :  { %v711_v12 = vrot.slane %v4062_v42, %v4617_v15 }
  0xc8   :  { %v524_v57 = vand.u32 %v519_v56, %v510_v55  ;;  %v530_v2 = vand.u32 %v519_v56, %v512_v59  ;;  %v527_v16 = vand.u32 %v519_v56, %v511_v60 }
  0xca   :  { %534 = vmatprep.subr.bf16.mxu0 %v524_v57  ;;  %575 = vmatprep.subr.bf16.mxu1 %v530_v2 }
  0xcb   :  { %535 = vmatpush1.bf16.msra.mxu0 %v521_v6  ;;  %576 = vmatpush1.bf16.msra.mxu1 %v527_v16 }
  0xce   :  { %4060 = vmatmul.mubr.msk.bf16.vlgmr.msra.gmra.mrb[0].mxu0 %vm514_vm15, %v513_v9  ;;  %4061 = vmatmul.mubr.msk.bf16.vlgmr.msra.gmra.mrb[0].mxu1 %vm514_vm15, %v513_v9 }
  0xcf   :  { %1043 = vmatprep.mubr.bf16.mxu0 %v6853_v4  ;;  %1084 = vmatprep.mubr.bf16.mxu1 %v6853_v4 }
  0xd3   :  { %v626_v10 = vpop.permute.xlu0 %625  ;;  %v634_v21 = vpop.permute.xlu1 %633 }
 0x1a1   :  { %v4894_v19 = vpop.f32.mrb[0].mxu0  ;;  %v4896_v20 = vpop.f32.mrb[0].mxu1 }
 0x1a2   :  { %614 = vst [vmem:[#allocation2] sm:$0xff] %v4894_v19  ;;  %616 = vst [vmem:[#allocation2 + $0x10] sm:$0xff] %v4896_v20  ;;  %v4900_v48 = vpop.f32.mrb[1].mxu0  ;;  %v4902_v58 = vpop.f32.mrb[1].mxu1  ;;  %v628_v23 = vmul.f32 %v626_v10, %v4894_v19  ;;  %v630_v27 = vmul.f32 %v626_v10, %v4896_v20 }
 0x1a3   :  { %615 = vst [vmem:[#allocation2 + $0x8] sm:$0xff] %v4900_v48  ;;  %617 = vst [vmem:[#allocation2 + $0x18] sm:$0xff] %v4902_v58  ;;  %v570_v28 = vpop.f32.mrb[2].mxu0  ;;  %v611_v29 = vpop.f32.mrb[2].mxu1  ;;  %v629_v30 = vmul.f32 %v626_v10, %v4900_v48  ;;  %v631_v31 = vmul.f32 %v626_v10, %v4902_v58 }
 0x1a4   :  { %v571_v32 = vpop.f32.mrb[3].mxu0  ;;  %v612_v33 = vpop.f32.mrb[3].mxu1  ;;  %v636_v34 = vadd.f32 %v634_v21, %v628_v23  ;;  %v638_v36 = vadd.f32 %v634_v21, %v630_v27 }
 0x1a5   :  { %v637_v35 = vadd.f32 %v634_v21, %v629_v30  ;;  %v639_v7 = vadd.f32 %v634_v21, %v631_v31  ;;  %v4063_v31 = vld [vmem:[%s6847_s3 + $0x2] ss:$8 sm:$0xf]  ;;  %v4064_v33 = vld [vmem:[%s6847_s3 + $0x3] ss:$8 sm:$0xf] }
 0x1a6   :  { %v4910_v51 = vmax.f32 %v636_v34, 0.0  ;;  %v4918_v18 = vmax.f32 %v638_v36, 0.0  ;;  %v779_v36 = vrot.slane %v4064_v33, %v4613_v13 }
 0x1a7   :  { %v4912_v22 = vmax.f32 %v637_v35, 0.0  ;;  %v4920_v25 = vmax.f32 %v639_v7, 0.0  ;;  %v741_v35 = vrot.slane %v4063_v31, %v4613_v13 }
 0x1a8   :  { %644 = vrot.lane.b32.xlu1 %v4910_v51, %s4465_s17 }
 0x1a9   :  { %646 = vrot.lane.b32.xlu0 %v4912_v22, %s4465_s17 }
 0x1ac   :  { %648 = vrot.lane.b32.xlu1 %v4918_v18, %s4465_s17 }
 0x1ad   :  { %650 = vrot.lane.b32.xlu0 %v4920_v25, %s4465_s17 }
 0x1b0   :  { %682 = vrot.lane.b32.xlu1 %v4910_v51, %s4463_s0 }
 0x1b1   :  { %684 = vrot.lane.b32.xlu0 %v4912_v22, %s4463_s0 }
 0x1b4   :  { %686 = vrot.lane.b32.xlu1 %v4918_v18, %s4463_s0 }
 0x1b5   :  { %688 = vrot.lane.b32.xlu0 %v4920_v25, %s4463_s0 }
 0x1b8   :  { %720 = vrot.lane.b32.xlu1 %v4910_v51, %s4461_s15 }
 0x1b9   :  { %722 = vrot.lane.b32.xlu0 %v4912_v22, %s4461_s15 }
 0x1bc   :  { %724 = vrot.lane.b32.xlu1 %v4918_v18, %s4461_s15 }
 0x1bd   :  { %726 = vrot.lane.b32.xlu0 %v4920_v25, %s4461_s15 }
 0x1c0   :  { %758 = vrot.lane.b32.xlu1 %v4910_v51, %s4462_s1 }
 0x1c1   :  { %760 = vrot.lane.b32.xlu0 %v4912_v22, %s4462_s1 }
 0x1c4   :  { %762 = vrot.lane.b32.xlu1 %v4918_v18, %s4462_s1 }
 0x1c5   :  { %764 = vrot.lane.b32.xlu0 %v4920_v25, %s4462_s1 }
 0x1c8   :  { %822 = vrot.lane.b32.xlu1 %v4910_v51, %s4464_s16 }
 0x1c9   :  { %824 = vrot.lane.b32.xlu0 %v4912_v22, %s4464_s16 }
 0x1cc   :  { %826 = vrot.lane.b32.xlu1 %v4918_v18, %s4464_s16 }
 0x1cd   :  { %828 = vrot.lane.b32.xlu0 %v4920_v25, %s4464_s16 }
 0x1d0   :  { %860 = vrot.lane.b32.xlu1 %v4910_v51, %s4466_s18 }
 0x1d1   :  { %862 = vrot.lane.b32.xlu0 %v4912_v22, %s4466_s18 }
 0x1d4   :  { %864 = vrot.lane.b32.xlu1 %v4918_v18, %s4466_s18 }
 0x1d5   :  { %866 = vrot.lane.b32.xlu0 %v4920_v25, %s4466_s18 }
 0x1d8   :  { %898 = vrot.lane.b32.xlu1 %v4910_v51, %s4467_s19 }
 0x1d9   :  { %900 = vrot.lane.b32.xlu0 %v4912_v22, %s4467_s19 }
 0x1dc   :  { %902 = vrot.lane.b32.xlu1 %v4918_v18, %s4467_s19 }
 0x1dd   :  { %904 = vrot.lane.b32.xlu0 %v4920_v25, %s4467_s19 }
 0x1e0   :  { %936 = vrot.lane.b32.xlu1 %v4910_v51, %s4468_s20 }
 0x1e1   :  { %938 = vrot.lane.b32.xlu0 %v4912_v22, %s4468_s20 }
 0x1e4   :  { %940 = vrot.lane.b32.xlu1 %v4918_v18, %s4468_s20 }
 0x1e5   :  { %942 = vrot.lane.b32.xlu0 %v4920_v25, %s4468_s20 }
 0x1e8   :  { %1109 = vperm.xlu1 %4335, %v1105_v37  }
 0x1e9   :  { %1130 = vperm.xlu0 %4337, %v1106_v44  }
 0x1ec   :  { %4336 = vset.pattern.permute.xlu1 %v6851_v5 }
 0x1ed   :  { %1126 = vperm.xlu1 %4336, %v1105_v37   ;;  %4338 = vset.pattern.permute.xlu0 %v6853_v4 }
 0x1ee   :  { %1114 = vperm.xlu0 %4338, %v1106_v44  }
 0x1f1   :  { %4339 = vset.pattern.permute.xlu1 %v6853_v4 }
 0x21a   :  { %v645_v62 = vpop.permute.xlu1 %644 }
 0x21b   :  { %v647_v38 = vpop.permute.xlu0 %646 }
 0x21c   :  { %v654_v3 = vsel %vm56_vm6, %v645_v62, %v647_v38 }
 0x21d   :  { %v679_v61 = vmul.f32 %v665_v47, %v654_v3  ;;  %v775_v47 = vrot.slane %v4064_v33, %v4622_v17  ;;  %v745_v3 = vrot.slane %v4063_v31, %v4615_v14 }
 0x21e   :  { %v649_v41 = vpop.permute.xlu1 %648 }
 0x21f   :  { %v651_v39 = vpop.permute.xlu0 %650  ;;  %v653_v46 = vsel %vm56_vm6, %v647_v38, %v649_v41  ;;  %v749_v38 = vrot.slane %v4063_v31, %v4617_v15 }
 0x220   :  { %v652_v11 = vsel %vm56_vm6, %v649_v41, %v651_v39  ;;  %v655_v0 = vsel %vm56_vm6, %v651_v39, %v645_v62  ;;  %v680_v21 = vmul.f32 %v669_v52, %v653_v46  ;;  %v737_v62 = vrot.slane %v4063_v31, %v4622_v17 }
 0x221   :  { %v678_v16 = vmul.f32 %v661_v49, %v655_v0  ;;  %v681_v6 = vmul.f32 %v673_v50, %v652_v11  ;;  %v783_v41 = vrot.slane %v4064_v33, %v4615_v14  ;;  %v4066_v11 = vld [vmem:[%s6847_s3 + $0x5] ss:$8 sm:$0xf] }
 0x222   :  { %v683_v8 = vpop.permute.xlu1 %682 }
 0x223   :  { %v685_v26 = vpop.permute.xlu0 %684 }
 0x224   :  { %v692_v53 = vsel %vm95_vm3, %v683_v8, %v685_v26 }
 0x225   :  { %v717_v54 = vmul.f32 %v703_v63, %v692_v53  ;;  %v787_v63 = vrot.slane %v4064_v33, %v4617_v15 }
 0x226   :  { %v687_v1 = vpop.permute.xlu1 %686 }
 0x227   :  { %v691_v55 = vsel %vm95_vm3, %v685_v26, %v687_v1  ;;  %v689_v56 = vpop.permute.xlu0 %688  ;;  %v975_v59 = vpack.c.bf16 %v717_v54, %v679_v61  ;;  %v4065_v54 = vld [vmem:[%s6847_s3 + $0x4] ss:$8 sm:$0xf] }
 0x228   :  { %v718_v60 = vmul.f32 %v707_v43, %v691_v55  ;;  %v690_v57 = vsel %vm95_vm3, %v687_v1, %v689_v56  ;;  %v693_v2 = vsel %vm95_vm3, %v689_v56, %v683_v8 }
 0x229   :  { %v716_v9 = vmul.f32 %v699_v45, %v693_v2  ;;  %v719_v10 = vmul.f32 %v711_v12, %v690_v57  ;;  %1011 = vmatprep.subr.bf16.mxu0 %v975_v59  ;;  %v839_v2 = vrot.slane %v4066_v11, %v4622_v17 }
 0x22a   :  { %v721_v23 = vpop.permute.xlu1 %720  ;;  %v976_v30 = vpack.c.bf16 %v718_v60, %v680_v21  ;;  %v801_v60 = vrot.slane %v4065_v54, %v4622_v17 }
 0x22b   :  { %v974_v27 = vpack.c.bf16 %v716_v9, %v678_v16  ;;  %v723_v28 = vpop.permute.xlu0 %722  ;;  %v977_v29 = vpack.c.bf16 %v719_v10, %v681_v6  ;;  %v809_v9 = vrot.slane %v4065_v54, %v4615_v14 }
 0x22c   :  { %v730_v7 = vsel %vm135_vm1, %v721_v23, %v723_v28 }
 0x22d   :  { %1012 = vmatpush1.bf16.msra.mxu0 %v974_v27  ;;  %1052 = vmatprep.subr.bf16.mxu1 %v977_v29  ;;  %v755_v42 = vmul.f32 %v741_v35, %v730_v7  ;;  %v805_v27 = vrot.slane %v4065_v54, %v4613_v13  ;;  %v851_v29 = vrot.slane %v4066_v11, %v4617_v15 }
 0x22e   :  { %1053 = vmatpush1.bf16.msra.mxu1 %v976_v30  ;;  %v725_v32 = vpop.permute.xlu1 %724  ;;  %v813_v30 = vrot.slane %v4065_v54, %v4617_v15 }
 0x22f   :  { %v727_v34 = vpop.permute.xlu0 %726  ;;  %v729_v50 = vsel %vm135_vm1, %v723_v28, %v725_v32  ;;  %v847_v28 = vrot.slane %v4066_v11, %v4615_v14 }
 0x230   :  { %v728_v8 = vsel %vm135_vm1, %v725_v32, %v727_v34  ;;  %v731_v26 = vsel %vm135_vm1, %v727_v34, %v721_v23  ;;  %v756_v56 = vmul.f32 %v745_v3, %v729_v50  ;;  %v843_v23 = vrot.slane %v4066_v11, %v4613_v13 }
 0x231   :  { %v754_v0 = vmul.f32 %v737_v62, %v731_v26  ;;  %v757_v1 = vmul.f32 %v749_v38, %v728_v8  ;;  %v818_v32 = vmul.f32 %v801_v60, %v4910_v51  ;;  %v820_v62 = vmul.f32 %v809_v9, %v4918_v18  ;;  %v4068_v18 = vld [vmem:[%s6847_s3 + $0x7] ss:$8 sm:$0xf] }
 0x232   :  { %v759_v37 = vpop.permute.xlu1 %758  ;;  %v821_v51 = vmul.f32 %v813_v30, %v4920_v25 }
 0x233   :  { %v761_v44 = vpop.permute.xlu0 %760 }
 0x234   :  { %v768_v40 = vsel %vm175_vm0, %v759_v37, %v761_v44 }
 0x235   :  { %v793_v39 = vmul.f32 %v779_v36, %v768_v40 }
 0x236   :  { %v763_v49 = vpop.permute.xlu1 %762 }
 0x237   :  { %v767_v53 = vsel %vm175_vm0, %v761_v44, %v763_v49  ;;  %v765_v43 = vpop.permute.xlu0 %764  ;;  %v979_v61 = vpack.c.bf16 %v793_v39, %v755_v42  ;;  %v819_v44 = vmul.f32 %v805_v27, %v4912_v22  ;;  %v4067_v22 = vld [vmem:[%s6847_s3 + $0x6] ss:$8 sm:$0xf] }
 0x238   :  { %v794_v45 = vmul.f32 %v783_v41, %v767_v53  ;;  %v766_v12 = vsel %vm175_vm0, %v763_v49, %v765_v43  ;;  %v769_v52 = vsel %vm175_vm0, %v765_v43, %v759_v37  ;;  %v877_v49 = vrot.slane %v4067_v22, %v4622_v17 }
 0x239   :  { %v792_v46 = vmul.f32 %v775_v47, %v769_v52  ;;  %v795_v55 = vmul.f32 %v787_v63, %v766_v12  ;;  %1013 = vmatprep.subr.bf16.mxu0 %v979_v61  ;;  %v881_v50 = vrot.slane %v4067_v22, %v4613_v13  ;;  %v915_v53 = vrot.slane %v4068_v18, %v4622_v17  ;;  %v4069_v52 = vld [vmem:[%s6847_s3 + $0x20] ss:$8 sm:$0xf] }
 0x23a   :  { %v823_v59 = vpop.permute.xlu1 %822  ;;  %v980_v10 = vpack.c.bf16 %v794_v45, %v756_v56  ;;  %v885_v54 = vrot.slane %v4067_v22, %v4615_v14  ;;  %v919_v12 = vrot.slane %v4068_v18, %v4613_v13 }
 0x23b   :  { %v978_v57 = vpack.c.bf16 %v792_v46, %v754_v0  ;;  %v825_v16 = vpop.permute.xlu0 %824  ;;  %v981_v6 = vpack.c.bf16 %v795_v55, %v757_v1  ;;  %v889_v0 = vrot.slane %v4067_v22, %v4617_v15  ;;  %v923_v1 = vrot.slane %v4068_v18, %v4615_v14 }
 0x23c   :  { %v832_v21 = vsel %vm240_vm4, %v823_v59, %v825_v16  ;;  %v927_v46 = vrot.slane %v4068_v18, %v4617_v15 }
 0x23d   :  { %1014 = vmatpush1.bf16.msra.mxu0 %v978_v57  ;;  %1054 = vmatprep.subr.bf16.mxu1 %v981_v6  ;;  %v856_v33 = vmul.f32 %v839_v2, %v832_v21  ;;  %v953_v6 = vrot.slane %v4069_v52, %v4622_v17 }
 0x23e   :  { %1055 = vmatpush1.bf16.msra.mxu1 %v980_v10  ;;  %v827_v31 = vpop.permute.xlu1 %826 }
 0x23f   :  { %v831_v34 = vsel %vm240_vm4, %v825_v16, %v827_v31  ;;  %v829_v35 = vpop.permute.xlu0 %828  ;;  %v982_v39 = vpack.c.bf16 %v856_v33, %v818_v32 }
 0x240   :  { %v857_v36 = vmul.f32 %v843_v23, %v831_v34  ;;  %v830_v7 = vsel %vm240_vm4, %v827_v31, %v829_v35  ;;  %v833_v37 = vsel %vm240_vm4, %v829_v35, %v823_v59 }
 0x241   :  { %v858_v38 = vmul.f32 %v847_v28, %v830_v7  ;;  %v859_v40 = vmul.f32 %v851_v29, %v833_v37  ;;  %v957_v37 = vrot.slane %v4069_v52, %v4613_v13 }
 0x242   :  { %v861_v41 = vpop.permute.xlu1 %860  ;;  %v983_v42 = vpack.c.bf16 %v857_v36, %v819_v44 }
 0x243   :  { %v984_v47 = vpack.c.bf16 %v858_v38, %v820_v62  ;;  %v863_v63 = vpop.permute.xlu0 %862  ;;  %v985_v3 = vpack.c.bf16 %v859_v40, %v821_v51  ;;  %v961_v62 = vrot.slane %v4069_v52, %v4615_v14  ;;  %v965_v38 = vrot.slane %v4069_v52, %v4617_v15 }
 0x244   :  { %1015 = vmatprep.subr.bf16.mxu0 %v983_v42  ;;  %v870_v61 = vsel %vm280_vm10, %v861_v41, %v863_v63 }
 0x245   :  { %1016 = vmatpush1.bf16.msra.mxu0 %v982_v39  ;;  %1056 = vmatprep.subr.bf16.mxu1 %v985_v3  ;;  %v894_v60 = vmul.f32 %v877_v49, %v870_v61 }
 0x246   :  { %1057 = vmatpush1.bf16.msra.mxu1 %v984_v47  ;;  %v865_v8 = vpop.permute.xlu1 %864 }
 0x247   :  { %v867_v26 = vpop.permute.xlu0 %866  ;;  %v869_v11 = vsel %vm280_vm10, %v863_v63, %v865_v8 }
 0x248   :  { %v868_v55 = vsel %vm280_vm10, %v865_v8, %v867_v26  ;;  %v871_v56 = vsel %vm280_vm10, %v867_v26, %v861_v41  ;;  %v895_v9 = vmul.f32 %v881_v50, %v869_v11  ;;  %v994_v50 = vld [vmem:[#allocation5 + $0x8] sm:$0x3] }
 0x249   :  { %v896_v27 = vmul.f32 %v885_v54, %v868_v55  ;;  %v897_v28 = vmul.f32 %v889_v0, %v871_v56 }
 0x24a   :  { %v899_v25 = vpop.permute.xlu1 %898 }
 0x24b   :  { %v901_v43 = vpop.permute.xlu0 %900 }
 0x24c   :  { %v908_v45 = vsel %vm320_vm11, %v899_v25, %v901_v43 }
 0x24d   :  { %v932_v57 = vmul.f32 %v915_v53, %v908_v45 }
 0x24e   :  { %v903_v59 = vpop.permute.xlu1 %902 }
 0x24f   :  { %v907_v2 = vsel %vm320_vm11, %v901_v43, %v903_v59  ;;  %v905_v16 = vpop.permute.xlu0 %904  ;;  %v986_v33 = vpack.c.bf16 %v932_v57, %v894_v60 }
 0x250   :  { %v933_v10 = vmul.f32 %v919_v12, %v907_v2  ;;  %v906_v21 = vsel %vm320_vm11, %v903_v59, %v905_v16  ;;  %v909_v23 = vsel %vm320_vm11, %v905_v16, %v899_v25 }
 0x251   :  { %v934_v29 = vmul.f32 %v923_v1, %v906_v21  ;;  %v935_v30 = vmul.f32 %v927_v46, %v909_v23 }
 0x252   :  { %v937_v31 = vpop.permute.xlu1 %936  ;;  %v987_v32 = vpack.c.bf16 %v933_v10, %v895_v9 }
 0x253   :  { %v988_v34 = vpack.c.bf16 %v934_v29, %v896_v27  ;;  %v939_v35 = vpop.permute.xlu0 %938  ;;  %v989_v36 = vpack.c.bf16 %v935_v30, %v897_v28 }
 0x254   :  { %v946_v7 = vsel %vm360_vm12, %v937_v31, %v939_v35  ;;  %1017 = vmatprep.subr.bf16.mxu0 %v987_v32 }
 0x255   :  { %v970_v44 = vmul.f32 %v953_v6, %v946_v7  ;;  %1018 = vmatpush1.bf16.msra.mxu0 %v986_v33  ;;  %1058 = vmatprep.subr.bf16.mxu1 %v989_v36  ;;  %v5233_v7 = vld [vmem:[%s6847_s3 + $0x5] ss:$8 sm:$0xf] }
 0x256   :  { %1059 = vmatpush1.bf16.msra.mxu1 %v988_v34  ;;  %v941_v40 = vpop.permute.xlu1 %940 }
 0x257   :  { %v945_v51 = vsel %vm360_vm12, %v939_v35, %v941_v40  ;;  %v943_v41 = vpop.permute.xlu0 %942  ;;  %v990_v42 = vpack.c.bf16 %v970_v44, %v970_v44 }
 0x258   :  { %v971_v39 = vmul.f32 %v957_v37, %v945_v51  ;;  %v944_v47 = vsel %vm360_vm12, %v941_v40, %v943_v41  ;;  %v947_v63 = vsel %vm360_vm12, %v943_v41, %v937_v31 }
 0x259   :  { %v972_v3 = vmul.f32 %v961_v62, %v944_v47  ;;  %v973_v8 = vmul.f32 %v965_v38, %v947_v63  ;;  %v1000_v25 = vsel %vm485_vm5, %v990_v42, 0  ;;  %v5241_v38 = vrot.slane %v5233_v7, %v4622_v17 }
 0x25a   :  { %v991_v26 = vpack.c.bf16 %v971_v39, %v971_v39  ;;  %v5250_v39 = vld [vmem:[%s6847_s3 + $0x4] ss:$8 sm:$0xf] }
 0x25b   :  { %v992_v22 = vpack.c.bf16 %v972_v3, %v972_v3  ;;  %v993_v18 = vpack.c.bf16 %v973_v8, %v973_v8  ;;  %6874 = vst [vmem:[#allocation8_spill] sm:$0xff] %v5241_v38  ;;  %v1370_v8 = vrot.slane %v5250_v39, %v4622_v17 }
 0x25c   :  { %4070 = vmatprep.subr.msk.bf16.mxu0 %vm485_vm5, %v991_v26 }
 0x25d   :  { %1020 = vmatpush1.bf16.msra.mxu0 %v1000_v25  ;;  %4072 = vmatprep.subr.msk.bf16.mxu1 %vm485_vm5, %v993_v18  ;;  %v1006_v49 = vsel %vm485_vm5, %v992_v22, 0 }
 0x25e   :  { %1061 = vmatpush1.bf16.msra.mxu1 %v1006_v49 }
 0x260   :  { %4071 = vmatmul.mubr.msk.bf16.vlgmr.msra.gmra.mrb[4].mxu0 %vm995_vm2, %v994_v50 }
 0x261   :  { %4073 = vmatmul.mubr.msk.bf16.vlgmr.msra.gmra.mrb[4].mxu1 %vm995_vm2, %v994_v50  ;;  %1820 = vmatprep.mubr.bf16.mxu0 %v6853_v4  ;;  %vm3227_vm2 = vcmask 228352  }
 0x262   :  { %1861 = vmatprep.mubr.bf16.mxu1 %v6853_v4 }
 0x267   :  { %v1110_v53 = vpop.permute.xlu1 %1109 }
 0x268   :  { %v1117_v43 = vmul.f32 %v1110_v53, %v4894_v19  ;;  %v1119_v61 = vmul.f32 %v1110_v53, %v4896_v20  ;;  %v1118_v45 = vmul.f32 %v1110_v53, %v4900_v48  ;;  %v1120_v46 = vmul.f32 %v1110_v53, %v4902_v58  ;;  %v5200_v58 = vpop.permute.xlu0 %1130 }
 0x26c   :  { %v1127_v54 = vpop.permute.xlu1 %1126 }
 0x26d   :  { %v1133_v12 = vadd.f32 %v1127_v54, %v1117_v43  ;;  %v1135_v52 = vadd.f32 %v1127_v54, %v1119_v61  ;;  %v1134_v11 = vadd.f32 %v1127_v54, %v1118_v45  ;;  %v1136_v19 = vadd.f32 %v1127_v54, %v1120_v46  ;;  %v1115_v55 = vpop.permute.xlu0 %1114 }
 0x26f   :  { %v5131_v0 = vmax.f32 %v1133_v12, 0.0  ;;  %v5133_v1 = vmax.f32 %v1135_v52, 0.0  ;;  %v5140_v20 = vmax.f32 %v1134_v11, 0.0  ;;  %v5146_v48 = vmax.f32 %v1136_v19, 0.0  ;;  %v1894_v19 = vld [vmem:[%s6846_s2 + $0x14] sm:$0xff] }
 0x271   :  { %1211 = vrot.lane.b32.xlu0 %v5133_v1, %s4463_s0  ;;  %1203 = vrot.lane.b32.xlu1 %v5131_v0, %s4463_s0  ;;  %v5263_v49 = vmul.f32 %v1370_v8, %v5131_v0 }
 0x273   :  { %6876 = vst [vmem:[#allocation10_spill] sm:$0xff] %v5263_v49 }
 0x275   :  { %1149 = vrot.lane.b32.xlu0 %v5131_v0, %s4465_s17  ;;  %1207 = vrot.lane.b32.xlu1 %v5140_v20, %s4463_s0 }
 0x279   :  { %1157 = vrot.lane.b32.xlu0 %v5133_v1, %s4465_s17  ;;  %1215 = vrot.lane.b32.xlu1 %v5146_v48, %s4463_s0 }
 0x27d   :  { %1257 = vrot.lane.b32.xlu0 %v5131_v0, %s4461_s15  ;;  %1153 = vrot.lane.b32.xlu1 %v5140_v20, %s4465_s17 }
 0x281   :  { %1265 = vrot.lane.b32.xlu0 %v5133_v1, %s4461_s15  ;;  %1161 = vrot.lane.b32.xlu1 %v5146_v48, %s4465_s17 }
 0x285   :  { %1311 = vrot.lane.b32.xlu0 %v5131_v0, %s4462_s1  ;;  %1261 = vrot.lane.b32.xlu1 %v5140_v20, %s4461_s15 }
 0x289   :  { %1319 = vrot.lane.b32.xlu0 %v5133_v1, %s4462_s1  ;;  %1269 = vrot.lane.b32.xlu1 %v5146_v48, %s4461_s15 }
 0x28d   :  { %1395 = vrot.lane.b32.xlu0 %v5131_v0, %s4464_s16  ;;  %1399 = vrot.lane.b32.xlu1 %v5140_v20, %s4464_s16 }
 0x291   :  { %1403 = vrot.lane.b32.xlu0 %v5133_v1, %s4464_s16  ;;  %1407 = vrot.lane.b32.xlu1 %v5146_v48, %s4464_s16 }
 0x295   :  { %1449 = vrot.lane.b32.xlu0 %v5131_v0, %s4466_s18  ;;  %1453 = vrot.lane.b32.xlu1 %v5140_v20, %s4466_s18 }
 0x299   :  { %1457 = vrot.lane.b32.xlu0 %v5133_v1, %s4466_s18  ;;  %1461 = vrot.lane.b32.xlu1 %v5146_v48, %s4466_s18 }
 0x29d   :  { %1503 = vrot.lane.b32.xlu0 %v5131_v0, %s4467_s19 }
 0x2a1   :  { %1511 = vrot.lane.b32.xlu0 %v5133_v1, %s4467_s19 }
 0x2a5   :  { %1557 = vrot.lane.b32.xlu0 %v5131_v0, %s4468_s20 }
 0x2a9   :  { %1315 = vrot.lane.b32.xlu0 %v5140_v20, %s4462_s1 }
 0x2ad   :  { %1323 = vrot.lane.b32.xlu0 %v5146_v48, %s4462_s1 }
 0x2b1   :  { %1507 = vrot.lane.b32.xlu0 %v5140_v20, %s4467_s19 }
 0x2b5   :  { %1515 = vrot.lane.b32.xlu0 %v5146_v48, %s4467_s19 }
 0x2b9   :  { %1561 = vrot.lane.b32.xlu0 %v5140_v20, %s4468_s20 }
 0x2e3   :  { %v5202_v56 = vpop.permute.xlu0 %1211  ;;  %v5204_v59 = vpop.permute.xlu1 %1203 }
 0x2e7   :  { %v5206_v60 = vpop.permute.xlu0 %1149  ;;  %v5208_v57 = vpop.permute.xlu1 %1207 }
 0x2e8   :  { %v1221_v43 = vsel %vm95_vm3, %v5208_v57, %v5202_v56 }
 0x2eb   :  { %v5210_v2 = vpop.permute.xlu0 %1157  ;;  %v5212_v16 = vpop.permute.xlu1 %1215 }
 0x2ef   :  { %v5214_v6 = vpop.permute.xlu0 %1257  ;;  %v5216_v9 = vpop.permute.xlu1 %1153 }
 0x2f3   :  { %v5218_v10 = vpop.permute.xlu0 %1265  ;;  %v5220_v21 = vpop.permute.xlu1 %1161 }
 0x2f7   :  { %v5222_v23 = vpop.permute.xlu0 %1311  ;;  %v5224_v27 = vpop.permute.xlu1 %1261 }
 0x2fb   :  { %v5226_v28 = vpop.permute.xlu0 %1319  ;;  %v5228_v29 = vpop.permute.xlu1 %1269 }
 0x2ff   :  { %v5235_v44 = vpop.permute.xlu0 %1395  ;;  %v5237_v62 = vpop.permute.xlu1 %1399 }
 0x300   :  { %v1415_v40 = vsel %vm240_vm4, %v5235_v44, %v5237_v62 }
 0x301   :  { %v5253_v63 = vmul.f32 %v5241_v38, %v1415_v40  ;;  %v5515_v38 = vrot.slane %v5233_v7, %v4615_v14 }
 0x303   :  { %6875 = vst [vmem:[#allocation9_spill] sm:$0xff] %v5253_v63  ;;  %v6855_v18 = vrot.slane %v5253_v63, 4 }
 0x333   :  { %v1045_v30 = vpop.f32.mrb[4].mxu0 }
 0x334   :  { %1093 = vst [vmem:[#allocation2 + $0x20] sm:$0xf] %v1045_v30  ;;  %v1047_v31 = vpop.f32.mrb[5].mxu0  ;;  %v1086_v32 = vpop.f32.mrb[4].mxu1 }
 0x335   :  { %1094 = vst [vmem:[#allocation2 + $0x28] sm:$0xf] %v1047_v31  ;;  %1095 = vst [vmem:[#allocation2 + $0x30] sm:$0xf] %v1086_v32  ;;  %v1049_v33 = vpop.f32.mrb[6].mxu0  ;;  %v1088_v34 = vpop.f32.mrb[5].mxu1 }
 0x336   :  { %1096 = vst [vmem:[#allocation2 + $0x38] sm:$0xf] %v1088_v34  ;;  %v1050_v35 = vpop.f32.mrb[7].mxu0  ;;  %v1090_v36 = vpop.f32.mrb[6].mxu1 }
 0x337   :  { %v1091_v37 = vpop.f32.mrb[7].mxu1  ;;  %v2385_v35 = vld [vmem:[%s6846_s2 + $0x24] sm:$0xff]  ;;  %v5362_v36 = vpop.permute.xlu1 %1407 }
 0x33b   :  { %v1101_v51 = vld [vmem:[#allocation2 + $0x20] sm:$0xf]  ;;  %v5367_v40 = vpop.permute.xlu1 %1453 }
 0x33c   :  { %v1121_v41 = vmul.f32 %v1115_v55, %v1101_v51  ;;  %v1103_v42 = vld [vmem:[#allocation2 + $0x30] sm:$0xf]  ;;  %v1102_v61 = vld [vmem:[#allocation2 + $0x28] sm:$0xf]  ;;  %6883 = vst [vmem:[#allocation17_spill] sm:$0xff] %v5367_v40 }
 0x33d   :  { %v1123_v47 = vmul.f32 %v1115_v55, %v1103_v42  ;;  %v1122_v54 = vmul.f32 %v1115_v55, %v1102_v61  ;;  %v1104_v45 = vld [vmem:[#allocation2 + $0x38] sm:$0xf] }
 0x33e   :  { %v1137_v3 = vadd.f32 %v5200_v58, %v1121_v41  ;;  %v1124_v52 = vmul.f32 %v1115_v55, %v1104_v45  ;;  %v5333_v55 = vpop.permute.xlu0 %1403 }
 0x33f   :  { %v1139_v22 = vadd.f32 %v5200_v58, %v1123_v47  ;;  %v1138_v12 = vadd.f32 %v5200_v58, %v1122_v54  ;;  %v5371_v41 = vpop.permute.xlu1 %1461  ;;  %v4074_v54 = vld [vmem:[%s6847_s3 + $0x1] ss:$8 sm:$0xf] }
 0x340   :  { %v1145_v26 = vmax.f32 %v1137_v3, 0.0  ;;  %v1140_v0 = vadd.f32 %v5200_v58, %v1124_v52  ;;  %v1895_v58 = vld [vmem:[%s6846_s2 + $0x1c] sm:$0xff]  ;;  %6884 = vst [vmem:[#allocation18_spill] sm:$0xff] %v5371_v41 }
 0x341   :  { %v5265_v50 = vmax.f32 %v1139_v22, 0.0  ;;  %v5291_v11 = vmax.f32 %v1138_v12, 0.0  ;;  %v5393_v12 = vrot.slane %v4074_v54, %v4613_v13  ;;  %v1173_v52 = vld [vmem:[%s6847_s3] ss:$8 sm:$0xf] }
 0x342   :  { %1313 = vrot.lane.b32.xlu1 %v1145_v26, %s4462_s1  ;;  %1151 = vrot.lane.b32.xlu0 %v1145_v26, %s4465_s17  ;;  %v1391_v25 = vmul.f32 %v1370_v8, %v1145_v26  ;;  %v5297_v46 = vmax.f32 %v1140_v0, 0.0  ;;  %v5339_v30 = vpop.permute.xlu0 %1449  ;;  %v5400_v0 = vrot.slane %v5250_v39, %v4613_v13 }
 0x343   :  { %6878 = vst [vmem:[#allocation12_spill] sm:$0xff] %v5339_v30 }
 0x344   :  { %v5270_v53 = vsel %vm485_vm5, %v1391_v25, %v6855_v18 }
 0x345   :  { %6877 = vst [vmem:[#allocation11_spill] sm:$0xff] %v5270_v53 }
 0x346   :  { %1321 = vrot.lane.b32.xlu1 %v5265_v50, %s4462_s1  ;;  %1159 = vrot.lane.b32.xlu0 %v5265_v50, %s4465_s17  ;;  %v5343_v31 = vpop.permute.xlu0 %1457 }
 0x347   :  { %6879 = vst [vmem:[#allocation13_spill] sm:$0xff] %v5343_v31 }
 0x34a   :  { %1505 = vrot.lane.b32.xlu1 %v1145_v26, %s4467_s19  ;;  %1205 = vrot.lane.b32.xlu0 %v1145_v26, %s4463_s0  ;;  %v5349_v32 = vpop.permute.xlu0 %1503 }
 0x34b   :  { %6880 = vst [vmem:[#allocation14_spill] sm:$0xff] %v5349_v32 }
 0x34e   :  { %1513 = vrot.lane.b32.xlu1 %v5265_v50, %s4467_s19  ;;  %1213 = vrot.lane.b32.xlu0 %v5265_v50, %s4463_s0  ;;  %v5353_v33 = vpop.permute.xlu0 %1511 }
 0x34f   :  { %6881 = vst [vmem:[#allocation15_spill] sm:$0xff] %v5353_v33 }
 0x352   :  { %1559 = vrot.lane.b32.xlu1 %v1145_v26, %s4468_s20  ;;  %1259 = vrot.lane.b32.xlu0 %v1145_v26, %s4461_s15  ;;  %v5356_v34 = vpop.permute.xlu0 %1557 }
 0x353   :  { %6882 = vst [vmem:[#allocation16_spill] sm:$0xff] %v5356_v34  ;;  %v5427_v34 = vrot.slane %v4074_v54, %v4617_v15 }
 0x356   :  { %1567 = vrot.lane.b32.xlu1 %v5265_v50, %s4468_s20  ;;  %1267 = vrot.lane.b32.xlu0 %v5265_v50, %s4461_s15  ;;  %v5364_v37 = vpop.permute.xlu0 %1315 }
 0x35a   :  { %1397 = vrot.lane.b32.xlu0 %v1145_v26, %s4464_s16  ;;  %1155 = vrot.lane.b32.xlu1 %v5291_v11, %s4465_s17  ;;  %v5369_v51 = vpop.permute.xlu0 %1323 }
 0x35e   :  { %1405 = vrot.lane.b32.xlu0 %v5265_v50, %s4464_s16  ;;  %1163 = vrot.lane.b32.xlu1 %v5297_v46, %s4465_s17  ;;  %v5373_v42 = vpop.permute.xlu0 %1507  ;;  %s4476_s17 = smov 119  }
 0x35f   :  { %6885 = vst [vmem:[#allocation19_spill] sm:$0xff] %v5373_v42  ;;  %v1178_v42 = vrot.slane %v1173_v52, %v4622_v17 }
 0x362   :  { %1451 = vrot.lane.b32.xlu0 %v1145_v26, %s4466_s18  ;;  %1209 = vrot.lane.b32.xlu1 %v5291_v11, %s4463_s0  ;;  %v5377_v3 = vpop.permute.xlu0 %1515 }
 0x363   :  { %6886 = vst [vmem:[#allocation20_spill] sm:$0xff] %v5377_v3 }
 0x366   :  { %1459 = vrot.lane.b32.xlu0 %v5265_v50, %s4466_s18  ;;  %1217 = vrot.lane.b32.xlu1 %v5297_v46, %s4463_s0  ;;  %v5383_v22 = vpop.permute.xlu0 %1561 }
 0x367   :  { %6888 = vst [vmem:[#allocation22_spill] sm:$0xff] %v5383_v22  ;;  %v1182_v22 = vrot.slane %v1173_v52, %v4613_v13 }
 0x36a   :  { %1565 = vrot.lane.b32.xlu0 %v5133_v1, %s4468_s20  ;;  %1317 = vrot.lane.b32.xlu1 %v5291_v11, %s4462_s1 }
 0x36e   :  { %1569 = vrot.lane.b32.xlu0 %v5146_v48, %s4468_s20  ;;  %1325 = vrot.lane.b32.xlu1 %v5297_v46, %s4462_s1 }
 0x372   :  { %1898 = vperm.xlu0 %4338, %v1894_v19   ;;  %1263 = vrot.lane.b32.xlu1 %v5291_v11, %s4461_s15 }
 0x376   :  { %1271 = vrot.lane.b32.xlu1 %v5297_v46, %s4461_s15  ;;  %4341 = vset.pattern.permute.xlu0 %v6851_v5 }
 0x377   :  { %1919 = vperm.xlu0 %4341, %v1895_v58  }
 0x37a   :  { %1401 = vrot.lane.b32.xlu1 %v5291_v11, %s4464_s16 }
 0x37b   :  { %2400 = vperm.xlu0 %4341, %v2385_v35  }
 0x37e   :  { %1409 = vrot.lane.b32.xlu1 %v5297_v46, %s4464_s16 }
 0x37f   :  { %4344 = vset.pattern.permute.xlu0 %v6853_v4 }
 0x382   :  { %1509 = vrot.lane.b32.xlu1 %v5291_v11, %s4467_s19 }
 0x386   :  { %1517 = vrot.lane.b32.xlu1 %v5297_v46, %s4467_s19  ;;  %s4478_s19 = smov 101  }
 0x38a   :  { %1455 = vrot.lane.b32.xlu1 %v5291_v11, %s4466_s18 }
 0x38e   :  { %1463 = vrot.lane.b32.xlu1 %v5297_v46, %s4466_s18  ;;  %s4480_s18 = smov 99  }
 0x392   :  { %1563 = vrot.lane.b32.xlu1 %v5291_v11, %s4468_s20 }
 0x396   :  { %1571 = vrot.lane.b32.xlu1 %v5297_v46, %s4468_s20  ;;  %s4481_s20 = smov 4  }
 0x39a   :  { %1903 = vperm.xlu1 %4339, %v1895_v58   ;;  %v1223_v58 = vsel %vm95_vm3, %v5204_v59, %v5208_v57  ;;  %v5439_v57 = vmul.f32 %v5400_v0, %v5140_v20 }
 0x39b   :  { %v5434_v3 = vmul.f32 %v5393_v12, %v1223_v58  ;;  %v1225_v58 = vsel %vm95_vm3, %v5212_v16, %v5204_v59 }
 0x39c   :  { %6892 = vst [vmem:[#allocation26_spill] sm:$0xff] %v5439_v57 }
 0x39d   :  { %v1620_v49 = vrot.slane %v5434_v3, 4  ;;  %v1165_v3 = vsel %vm56_vm6, %v5210_v2, %v5220_v21 }
 0x39e   :  { %4340 = vset.pattern.permute.xlu1 %v6851_v5  ;;  %v5412_v5 = vrot.slane %v5250_v39, %v4615_v14 }
 0x39f   :  { %1915 = vperm.xlu1 %4340, %v1894_v19   ;;  %v5404_v19 = vrot.slane %v5250_v39, %v4617_v15  ;;  %v4075_v39 = vld [vmem:[%s6847_s3 + $0x2] ss:$8 sm:$0xf] }
 0x3a0   :  { %v5456_v20 = vmul.f32 %v5412_v5, %v5133_v1  ;;  %v5473_v1 = vrot.slane %v4075_v39, %v4622_v17  ;;  %v5487_v30 = vrot.slane %v4075_v39, %v4617_v15 }
 0x3a1   :  { %v5443_v32 = vmul.f32 %v5404_v19, %v5146_v48  ;;  %v1169_v48 = vsel %vm56_vm6, %v5206_v60, %v5216_v9 }
 0x3a2   :  { %6894 = vst [vmem:[#allocation28_spill] sm:$0xff] %v5456_v20  ;;  %v1196_v41 = vmul.f32 %v1182_v22, %v1169_v48 }
 0x3a3   :  { %4342 = vset.pattern.permute.xlu1 %v6853_v4  ;;  %v5415_v4 = vrot.slane %v4074_v54, %v4615_v14  ;;  %6893 = vst [vmem:[#allocation27_spill] sm:$0xff] %v5443_v32  ;;  %v5491_v32 = vrot.slane %v5233_v7, %v4613_v13 }
 0x3a4   :  { %2389 = vperm.xlu1 %4342, %v2385_v35  }
 0x3a5   :  { %v5459_v33 = vmul.f32 %v5415_v4, %v1221_v43 }
 0x3b4   :  { %v5375_v47 = vpop.permute.xlu1 %1313  ;;  %v1152_v61 = vpop.permute.xlu0 %1151 }
 0x3b8   :  { %v5379_v8 = vpop.permute.xlu1 %1321  ;;  %v1160_v35 = vpop.permute.xlu0 %1159 }
 0x3bc   :  { %v5381_v26 = vpop.permute.xlu1 %1505 }
 0x3bd   :  { %6887 = vst [vmem:[#allocation21_spill] sm:$0xff] %v5381_v26  ;;  %v5467_v26 = vrot.slane %v4075_v39, %v4613_v13 }
 0x3c0   :  { %v5385_v25 = vpop.permute.xlu1 %1513 }
 0x3c1   :  { %6889 = vst [vmem:[#allocation23_spill] sm:$0xff] %v5385_v25  ;;  %v1206_v25 = vpop.permute.xlu0 %1205 }
 0x3c4   :  { %v5390_v45 = vpop.permute.xlu1 %1559 }
 0x3c5   :  { %6890 = vst [vmem:[#allocation24_spill] sm:$0xff] %v5390_v45  ;;  %v5424_v45 = vrot.slane %v4074_v54, %v4622_v17  ;;  %v1219_v54 = vsel %vm95_vm3, %v5202_v56, %v5212_v16  ;;  %v1190_v56 = vrot.slane %v1173_v52, %v4617_v15  ;;  %v5470_v16 = vrot.slane %v4075_v39, %v4615_v14 }
 0x3c6   :  { %v5484_v53 = vmul.f32 %v5427_v34, %v1219_v54  ;;  %v1167_v54 = vsel %vm56_vm6, %v5216_v9, %v5210_v2  ;;  %v1214_v2 = vpop.permute.xlu0 %1213  ;;  %v6895_v9 = vrot.slane %v5459_v33, 4 }
 0x3c8   :  { %v5417_v18 = vpop.permute.xlu1 %1567  ;;  %v1622_v31 = vrot.slane %v5484_v53, 4 }
 0x3c9   :  { %6891 = vst [vmem:[#allocation25_spill] sm:$0xff] %v5417_v18  ;;  %v1186_v18 = vrot.slane %v1173_v52, %v4615_v14  ;;  %v5481_v52 = vmul.f32 %v5424_v45, %v1225_v58 }
 0x3cc   :  { %v1156_v59 = vpop.permute.xlu1 %1155 }
 0x3cd   :  { %v1168_v43 = vsel %vm56_vm6, %v1156_v59, %v1160_v35  ;;  %v1170_v63 = vsel %vm56_vm6, %v1152_v61, %v1156_v59  ;;  %v1619_v59 = vrot.slane %v5481_v52, 4 }
 0x3ce   :  { %v1200_v20 = vmul.f32 %v1182_v22, %v1170_v63  ;;  %v1201_v40 = vmul.f32 %v1186_v18, %v1168_v43  ;;  %v1171_v63 = vsel %vm56_vm6, %v5220_v21, %v5206_v60 }
 0x3cf   :  { %v1195_v57 = vmul.f32 %v1178_v42, %v1171_v63 }
 0x3d0   :  { %v1164_v22 = vpop.permute.xlu1 %1163  ;;  %v1724_v39 = vsel %vm485_vm5, %v1200_v20, %v1620_v49  ;;  %v1198_v20 = vmul.f32 %v1190_v56, %v1165_v3 }
 0x3d1   :  { %v1166_v58 = vsel %vm56_vm6, %v1160_v35, %v1164_v22  ;;  %v1172_v48 = vsel %vm56_vm6, %v1164_v22, %v1152_v61  ;;  %v1740_v43 = vpack.c.bf16 %v1724_v39, %v1196_v41  ;;  %v1725_v35 = vsel %vm485_vm5, %v1201_v40, %v6895_v9 }
 0x3d2   :  { %v1199_v60 = vmul.f32 %v1178_v42, %v1172_v48  ;;  %v1202_v21 = vmul.f32 %v1190_v56, %v1166_v58  ;;  %v1197_v61 = vmul.f32 %v1186_v18, %v1167_v54  ;;  %v1277_v41 = vsel %vm135_vm1, %v5214_v6, %v5224_v27  ;;  %v4079_v42 = vld [vmem:[%s6847_s3 + $0x6] ss:$8 sm:$0xf] }
 0x3d3   :  { %1788 = vmatprep.subr.bf16.mxu0 %v1740_v43  ;;  %v5537_v39 = vrot.slane %v5233_v7, %v4617_v15  ;;  %v5542_v43 = vrot.slane %v4079_v42, %v4622_v17  ;;  %v1275_v7 = vsel %vm135_vm1, %v5224_v27, %v5218_v10  ;;  %v1279_v27 = vsel %vm135_vm1, %v5228_v29, %v5214_v6 }
 0x3d4   :  { %v1210_v56 = vpop.permute.xlu1 %1209  ;;  %v1723_v52 = vsel %vm485_vm5, %v1199_v60, %v1619_v59  ;;  %v1726_v3 = vsel %vm485_vm5, %v1202_v21, %v1622_v31  ;;  %v1741_v48 = vpack.c.bf16 %v1725_v35, %v1197_v61  ;;  %v5545_v60 = vrot.slane %v4079_v42, %v4613_v13  ;;  %v5569_v61 = vpop.permute.xlu0 %1259 }
 0x3d5   :  { %v1222_v40 = vsel %vm95_vm3, %v1210_v56, %v1214_v2  ;;  %v1224_v18 = vsel %vm95_vm3, %v1206_v25, %v1210_v56  ;;  %v1739_v63 = vpack.c.bf16 %v1723_v52, %v1195_v57  ;;  %v1742_v22 = vpack.c.bf16 %v1726_v3, %v1198_v20  ;;  %v4076_v57 = vld [vmem:[%s6847_s3 + $0x3] ss:$8 sm:$0xf] }
 0x3d6   :  { %v1254_v54 = vmul.f32 %v5393_v12, %v1224_v18  ;;  %v1255_v58 = vmul.f32 %v5415_v4, %v1222_v40  ;;  %v5548_v21 = vrot.slane %v4079_v42, %v4615_v14  ;;  %v1304_v12 = vmul.f32 %v5467_v26, %v1277_v41 }
 0x3d7   :  { %1789 = vmatpush1.bf16.msra.mxu0 %v1739_v63  ;;  %1829 = vmatprep.subr.bf16.mxu1 %v1742_v22  ;;  %v5556_v4 = vrot.slane %v4079_v42, %v4617_v15  ;;  %v1273_v35 = vsel %vm135_vm1, %v5218_v10, %v5228_v29  ;;  %v1413_v6 = vsel %vm240_vm4, %v5237_v62, %v5333_v55  ;;  %vm3000_vm6 = vcmask 261120  }
 0x3d8   :  { %v1625_v20 = vrot.slane %v1254_v54, 4  ;;  %1830 = vmatpush1.bf16.msra.mxu1 %v1741_v48  ;;  %v1218_v9 = vpop.permute.xlu1 %1217  ;;  %v1627_v56 = vrot.slane %v1255_v58, 4  ;;  %v1344_v29 = vrot.slane %v4076_v57, %v4613_v13  ;;  %v1348_v40 = vrot.slane %v4076_v57, %v4615_v14 }
 0x3d9   :  { %v1220_v41 = vsel %vm95_vm3, %v1214_v2, %v1218_v9  ;;  %v1226_v42 = vsel %vm95_vm3, %v1218_v9, %v1206_v25  ;;  %v1305_v18 = vmul.f32 %v5470_v16, %v1275_v7  ;;  %v1340_v25 = vrot.slane %v4076_v57, %v4622_v17 }
 0x3da   :  { %v1253_v52 = vmul.f32 %v5424_v45, %v1226_v42  ;;  %v1256_v3 = vmul.f32 %v5427_v34, %v1220_v41  ;;  %v1626_v10 = vsel %vm485_vm5, %v1620_v49, %v1625_v20  ;;  %v1303_v34 = vmul.f32 %v5473_v1, %v1279_v27 }
 0x3db   :  { %v1744_v2 = vpack.c.bf16 %v1304_v12, %v1626_v10  ;;  %v1306_v49 = vmul.f32 %v5487_v30, %v1273_v35  ;;  %v1411_v62 = vsel %vm240_vm4, %v5333_v55, %v5362_v36  ;;  %v5596_v58 = vmul.f32 %v5491_v32, %v1413_v6  ;;  %v1268_v35 = vpop.permute.xlu0 %1267 }
 0x3dc   :  { %v1623_v63 = vrot.slane %v1253_v52, 4  ;;  %v1629_v45 = vrot.slane %v1256_v3, 4  ;;  %v1318_v22 = vpop.permute.xlu1 %1317  ;;  %v1417_v48 = vsel %vm240_vm4, %v5362_v36, %v5235_v44  ;;  %v6896_v12 = vrot.slane %v5459_v33, 4  ;;  %v5623_v36 = vld [vmem:[%s6847_s3 + $0x7] ss:$8 sm:$0xf] }
 0x3dd   :  { %v1332_v54 = vsel %vm175_vm0, %v5375_v47, %v1318_v22  ;;  %1790 = vmatprep.subr.bf16.mxu0 %v1744_v2  ;;  %v1329_v55 = vsel %vm175_vm0, %v5364_v37, %v5226_v28  ;;  %v1331_v9 = vsel %vm175_vm0, %v5222_v23, %v5364_v37  ;;  %v5618_v33 = vmul.f32 %v5515_v38, %v1411_v62 }
 0x3de   :  { %v1624_v7 = vsel %vm485_vm5, %v1619_v59, %v1623_v63  ;;  %v1628_v20 = vsel %vm485_vm5, %v6896_v12, %v1627_v56  ;;  %v1630_v44 = vsel %vm485_vm5, %v1622_v31, %v1629_v45  ;;  %v1330_v59 = vsel %vm175_vm0, %v1318_v22, %v5379_v8 }
 0x3df   :  { %v1743_v27 = vpack.c.bf16 %v1303_v34, %v1624_v7  ;;  %v1362_v41 = vmul.f32 %v1344_v29, %v1332_v54  ;;  %v1746_v42 = vpack.c.bf16 %v1306_v49, %v1630_v44  ;;  %v5629_v56 = vmul.f32 %v5537_v39, %v1417_v48  ;;  %v1398_v62 = vpop.permute.xlu0 %1397 }
 0x3e0   :  { %v1326_v37 = vpop.permute.xlu1 %1325  ;;  %v1745_v52 = vpack.c.bf16 %v1305_v18, %v1628_v20  ;;  %v1358_v3 = vmul.f32 %v1344_v29, %v1331_v9  ;;  %v1359_v10 = vmul.f32 %v1348_v40, %v1329_v55  ;;  %v1352_v6 = vrot.slane %v4076_v57, %v4617_v15 }
 0x3e1   :  { %v1328_v53 = vsel %vm175_vm0, %v5379_v8, %v1326_v37  ;;  %v1334_v31 = vsel %vm175_vm0, %v1326_v37, %v5375_v47  ;;  %1791 = vmatpush1.bf16.msra.mxu0 %v1743_v27  ;;  %v1333_v2 = vsel %vm175_vm0, %v5369_v51, %v5222_v23  ;;  %1831 = vmatprep.subr.bf16.mxu1 %v1746_v42  ;;  %v1676_v63 = vrot.slane %v5596_v58, 4  ;;  %v6911_v58 = vld [vmem:[#allocation21_spill] sm:$0xff] }
 0x3e2   :  { %v1327_v8 = vsel %vm175_vm0, %v5226_v28, %v5369_v51  ;;  %v5649_v47 = vrot.slane %v5623_v36, %v4622_v17  ;;  %v1363_v29 = vmul.f32 %v1348_v40, %v1330_v59  ;;  %1832 = vmatpush1.bf16.msra.mxu1 %v1745_v52  ;;  %v1677_v57 = vrot.slane %v5618_v33, 4 }
 0x3e3   :  { %v1653_v18 = vrot.slane %v1362_v41, 4  ;;  %v1361_v45 = vmul.f32 %v1340_v25, %v1334_v31  ;;  %v1364_v22 = vmul.f32 %v1352_v6, %v1328_v53  ;;  %v1678_v34 = vrot.slane %v5629_v56, 4  ;;  %v1406_v53 = vpop.permute.xlu0 %1405 }
 0x3e4   :  { %v1264_v23 = vpop.permute.xlu1 %1263  ;;  %v1357_v49 = vmul.f32 %v1340_v25, %v1333_v2  ;;  %v1648_v51 = vrot.slane %v1358_v3, 4  ;;  %v1649_v40 = vrot.slane %v1359_v10, 4  ;;  %v1360_v48 = vmul.f32 %v1352_v6, %v1327_v8 }
 0x3e5   :  { %v1276_v54 = vsel %vm135_vm1, %v1264_v23, %v1268_v35  ;;  %v1278_v28 = vsel %vm135_vm1, %v5569_v61, %v1264_v23  ;;  %v1655_v12 = vrot.slane %v1363_v29, 4  ;;  %v1392_v55 = vmul.f32 %v5400_v0, %v5291_v11  ;;  %v6897_v29 = vld [vmem:[#allocation8_spill] sm:$0xff]  ;;  %v6898_v23 = vld [vmem:[#allocation26_spill] sm:$0xff] }
 0x3e6   :  { %v1308_v7 = vmul.f32 %v5467_v26, %v1278_v28  ;;  %v1309_v20 = vmul.f32 %v5470_v16, %v1276_v54  ;;  %v1394_v25 = vmul.f32 %v5404_v19, %v5297_v46  ;;  %v1651_v9 = vrot.slane %v1361_v45, 4  ;;  %v6899_v54 = vld [vmem:[#allocation13_spill] sm:$0xff] }
 0x3e7   :  { %v1657_v27 = vrot.slane %v1364_v22, 4  ;;  %v1654_v59 = vsel %vm485_vm5, %v1648_v51, %v1653_v18  ;;  %v1647_v37 = vrot.slane %v1357_v49, 4  ;;  %v1650_v11 = vrot.slane %v1360_v48, 4  ;;  %v6900_v28 = vld [vmem:[#allocation17_spill] sm:$0xff] }
 0x3e8   :  { %v1272_v44 = vpop.permute.xlu1 %1271  ;;  %v1728_v41 = vsel %vm485_vm5, %v1308_v7, %v1648_v51  ;;  %v1393_v19 = vmul.f32 %v5412_v5, %v5265_v50  ;;  %v1656_v31 = vsel %vm485_vm5, %v1649_v40, %v1655_v12  ;;  %v1729_v52 = vsel %vm485_vm5, %v1309_v20, %v1649_v40  ;;  %v6901_v40 = vld [vmem:[#allocation27_spill] sm:$0xff]  ;;  %v6902_v12 = vld [vmem:[#allocation12_spill] sm:$0xff] }
 0x3e9   :  { %v1274_v26 = vsel %vm135_vm1, %v1268_v35, %v1272_v44  ;;  %v1280_v16 = vsel %vm135_vm1, %v1272_v44, %v5569_v61  ;;  %v1748_v42 = vpack.c.bf16 %v1654_v59, %v1728_v41  ;;  %v1732_v35 = vsel %vm485_vm5, %v1392_v55, %v1676_v63  ;;  %v5716_v41 = vpop.permute.xlu0 %1451 }
 0x3ea   :  { %v1307_v0 = vmul.f32 %v5473_v1, %v1280_v16  ;;  %v1310_v46 = vmul.f32 %v5487_v30, %v1274_v26  ;;  %v1734_v61 = vsel %vm485_vm5, %v1394_v25, %v1678_v34  ;;  %v1652_v30 = vsel %vm485_vm5, %v1647_v37, %v1651_v9 }
 0x3eb   :  { %1792 = vmatprep.subr.bf16.mxu0 %v1748_v42  ;;  %v1658_v5 = vsel %vm485_vm5, %v1650_v11, %v1657_v27  ;;  %v1749_v22 = vpack.c.bf16 %v1656_v31, %v1729_v52  ;;  %v1752_v49 = vpack.c.bf16 %v1732_v35, %v6898_v23  ;;  %v1467_v51 = vsel %vm280_vm10, %v6900_v28, %v6899_v54  ;;  %v6903_v27 = vld [vmem:[#allocation18_spill] sm:$0xff]  ;;  %v6905_v52 = vld [vmem:[#allocation11_spill] sm:$0xff] }
 0x3ec   :  { %v1402_v1 = vpop.permute.xlu1 %1401  ;;  %v1727_v3 = vsel %vm485_vm5, %v1307_v0, %v1647_v37  ;;  %v1730_v50 = vsel %vm485_vm5, %v1310_v46, %v1650_v11  ;;  %v1754_v48 = vpack.c.bf16 %v1734_v61, %v6901_v40  ;;  %v1733_v7 = vsel %vm485_vm5, %v1393_v19, %v1677_v57  ;;  %v6904_v0 = vld [vmem:[#allocation28_spill] sm:$0xff]  ;;  %v6906_v35 = vld [vmem:[#allocation10_spill] sm:$0xff]  ;;  %v6908_v61 = vld [vmem:[#allocation9_spill] sm:$0xff] }
 0x3ed   :  { %v1414_v10 = vsel %vm240_vm4, %v1402_v1, %v1406_v53  ;;  %v1416_v6 = vsel %vm240_vm4, %v1398_v62, %v1402_v1  ;;  %v1747_v2 = vpack.c.bf16 %v1652_v30, %v1727_v3  ;;  %v1750_v8 = vpack.c.bf16 %v1658_v5, %v1730_v50 }
 0x3ee   :  { %v1445_v18 = vmul.f32 %v6897_v29, %v1416_v6  ;;  %v1446_v45 = vmul.f32 %v5491_v32, %v1414_v10  ;;  %v1469_v32 = vsel %vm280_vm10, %v6902_v12, %v6900_v28  ;;  %v1536_v20 = vrot.slane %v5623_v36, %v4613_v13  ;;  %v6910_v6 = vld [vmem:[#allocation23_spill] sm:$0xff]  ;;  %v1460_v28 = vpop.permute.xlu0 %1459 }
 0x3ef   :  { %1793 = vmatpush1.bf16.msra.mxu0 %v1747_v2  ;;  %1833 = vmatprep.subr.bf16.mxu1 %v1750_v8  ;;  %v1465_v44 = vsel %vm280_vm10, %v6899_v54, %v6903_v27  ;;  %v1471_v59 = vsel %vm280_vm10, %v6903_v27, %v6902_v12  ;;  %v1496_v16 = vmul.f32 %v5545_v60, %v1467_v51  ;;  %v6909_v1 = vrot.slane %v6908_v61, 4  ;;  %v6912_v29 = vld [vmem:[#allocation15_spill] sm:$0xff]  ;;  %v6915_v12 = vld [vmem:[#allocation20_spill] sm:$0xff] }
 0x3f0   :  { %v1679_v55 = vrot.slane %v1445_v18, 4  ;;  %v1681_v25 = vrot.slane %v1446_v45, 4  ;;  %1834 = vmatpush1.bf16.msra.mxu1 %v1749_v22  ;;  %v1410_v9 = vpop.permute.xlu1 %1409  ;;  %1794 = vmatprep.subr.bf16.mxu0 %v1752_v49  ;;  %v1753_v46 = vpack.c.bf16 %v1733_v7, %v6904_v0  ;;  %v1495_v19 = vmul.f32 %v5542_v43, %v1469_v32  ;;  %v6913_v18 = vld [vmem:[#allocation19_spill] sm:$0xff]  ;;  %v6914_v22 = vld [vmem:[#allocation14_spill] sm:$0xff] }
 0x3f1   :  { %v1412_v37 = vsel %vm240_vm4, %v1406_v53, %v1410_v9  ;;  %v1418_v26 = vsel %vm240_vm4, %v1410_v9, %v1398_v62  ;;  %1835 = vmatprep.subr.bf16.mxu1 %v1754_v48  ;;  %v1540_v31 = vrot.slane %v5623_v36, %v4615_v14  ;;  %v6907_v53 = vpack.c.bf16 %v6905_v52, %v6906_v35 }
 0x3f2   :  { %v1447_v42 = vmul.f32 %v5515_v38, %v1412_v37  ;;  %v1448_v11 = vmul.f32 %v5537_v39, %v1418_v26  ;;  %v1682_v62 = vsel %vm485_vm5, %v1676_v63, %v1681_v25  ;;  %v1680_v38 = vsel %vm485_vm5, %v6909_v1, %v1679_v55 }
 0x3f3   :  { %1795 = vmatpush1.bf16.msra.mxu0 %v6907_v53  ;;  %v1497_v39 = vmul.f32 %v5548_v21, %v1465_v44  ;;  %v1756_v50 = vpack.c.bf16 %v1496_v16, %v1682_v62  ;;  %v1498_v10 = vmul.f32 %v5556_v4, %v1471_v59  ;;  %v1755_v8 = vpack.c.bf16 %v1495_v19, %v1680_v38  ;;  %v6916_v53 = vld [vmem:[#allocation22_spill] sm:$0xff]  ;;  %v6917_v62 = vld [vmem:[#allocation16_spill] sm:$0xff] }
 0x3f4   :  { %v1683_v30 = vrot.slane %v1447_v42, 4  ;;  %v1685_v3 = vrot.slane %v1448_v11, 4  ;;  %1836 = vmatpush1.bf16.msra.mxu1 %v1753_v46  ;;  %v1510_v5 = vpop.permute.xlu1 %1509  ;;  %v1521_v45 = vsel %vm320_vm11, %v6913_v18, %v6912_v29  ;;  %v1523_v23 = vsel %vm320_vm11, %v6914_v22, %v6913_v18  ;;  %v1566_v11 = vpop.permute.xlu0 %1565 }
 0x3f5   :  { %v1522_v2 = vsel %vm320_vm11, %v1510_v5, %v6910_v6  ;;  %v1524_v63 = vsel %vm320_vm11, %v6911_v58, %v1510_v5  ;;  %1796 = vmatprep.subr.bf16.mxu0 %v1756_v50  ;;  %v1519_v32 = vsel %vm320_vm11, %v6912_v29, %v6915_v12  ;;  %v1549_v56 = vmul.f32 %v5649_v47, %v1523_v23 }
 0x3f6   :  { %v1686_v49 = vsel %vm485_vm5, %v1678_v34, %v1685_v3  ;;  %v1684_v54 = vsel %vm485_vm5, %v1677_v57, %v1683_v30  ;;  %v1553_v51 = vmul.f32 %v5649_v47, %v1524_v63  ;;  %v1554_v40 = vmul.f32 %v1536_v20, %v1522_v2 }
 0x3f7   :  { %1797 = vmatpush1.bf16.msra.mxu0 %v1755_v8  ;;  %v1758_v48 = vpack.c.bf16 %v1498_v10, %v1686_v49  ;;  %v1757_v7 = vpack.c.bf16 %v1497_v39, %v1684_v54  ;;  %v1550_v34 = vmul.f32 %v1536_v20, %v1521_v45  ;;  %v1544_v25 = vrot.slane %v5623_v36, %v4617_v15  ;;  %v4081_v20 = vld [vmem:[%s6847_s3 + $0x20] ss:$8 sm:$0xf] }
 0x3f8   :  { %v1518_v55 = vpop.permute.xlu1 %1517  ;;  %v1525_v9 = vsel %vm320_vm11, %v6915_v12, %v6914_v22  ;;  %v1551_v47 = vmul.f32 %v1540_v31, %v1519_v32  ;;  %v1707_v27 = vrot.slane %v1553_v51, 4  ;;  %v1709_v44 = vrot.slane %v1554_v40, 4  ;;  %v1570_v22 = vpop.permute.xlu0 %1569  ;;  %v6918_v49 = vld [vmem:[#allocation25_spill] sm:$0xff]  ;;  %v4374_v40 = vld [vmem:[#allocation5 + $0x8] ss:$0 sps:$4 sm:$0xcc]  }
 0x3f9   :  { %v1520_v33 = vsel %vm320_vm11, %v6910_v6, %v1518_v55  ;;  %v1526_v57 = vsel %vm320_vm11, %v1518_v55, %v6911_v58  ;;  %1837 = vmatprep.subr.bf16.mxu1 %v1758_v48  ;;  %v1703_v16 = vrot.slane %v1549_v56, 4  ;;  %v1704_v42 = vrot.slane %v1550_v34, 4 }
 0x3fa   :  { %1838 = vmatpush1.bf16.msra.mxu1 %v1757_v7  ;;  %v1555_v59 = vmul.f32 %v1540_v31, %v1520_v33  ;;  %v1556_v37 = vmul.f32 %v1544_v25, %v1526_v57  ;;  %v1552_v46 = vmul.f32 %v1544_v25, %v1525_v9  ;;  %v1586_v19 = vrot.slane %v4081_v20, %v4622_v17 }
 0x3fb   :  { %v1705_v31 = vrot.slane %v1551_v47, 4  ;;  %v1577_v61 = vsel %vm360_vm12, %v6917_v62, %v6916_v53  ;;  %v1710_v1 = vsel %vm485_vm5, %v1704_v42, %v1709_v44  ;;  %v1708_v38 = vsel %vm485_vm5, %v1703_v16, %v1707_v27 }
 0x3fc   :  { %v1456_v26 = vpop.permute.xlu1 %1455  ;;  %v1711_v39 = vrot.slane %v1555_v59, 4  ;;  %v1713_v30 = vrot.slane %v1556_v37, 4  ;;  %v1706_v6 = vrot.slane %v1552_v46, 4  ;;  %v1590_v2 = vrot.slane %v4081_v20, %v4613_v13 }
 0x3fd   :  { %v1468_v36 = vsel %vm280_vm10, %v1456_v26, %v1460_v28  ;;  %v1470_v0 = vsel %vm280_vm10, %v5716_v41, %v1456_v26  ;;  %v1603_v8 = vmul.f32 %v1586_v19, %v1577_v61  ;;  %v1575_v29 = vsel %vm360_vm12, %v6916_v53, %v1566_v11 }
 0x3fe   :  { %v1499_v52 = vmul.f32 %v5542_v43, %v1470_v0  ;;  %v1500_v35 = vmul.f32 %v5545_v60, %v1468_v36  ;;  %v1594_v18 = vrot.slane %v4081_v20, %v4615_v14  ;;  %v1598_v45 = vrot.slane %v4081_v20, %v4617_v15 }
 0x3ff   :  { %v1714_v23 = vsel %vm485_vm5, %v1706_v6, %v1713_v30  ;;  %v1604_v48 = vmul.f32 %v1590_v2, %v1575_v29  ;;  %v1573_v7 = vsel %vm360_vm12, %v1566_v11, %v1570_v22  ;;  %v1579_v55 = vsel %vm360_vm12, %v1570_v22, %v6917_v62  ;;  %v1899_v62 = vpop.permute.xlu0 %1898  ;;  %v1887_v30 = vld [vmem:[#allocation2 + $0x8] sm:$0xff]  ;;  %v1888_v29 = vld [vmem:[#allocation2 + $0x10] sm:$0xff] }
 0x400   :  { %v1464_v3 = vpop.permute.xlu1 %1463  ;;  %v1736_v5 = vsel %vm485_vm5, %v1500_v35, %v1704_v42  ;;  %v1735_v17 = vsel %vm485_vm5, %v1499_v52, %v1703_v16  ;;  %v1605_v57 = vmul.f32 %v1594_v18, %v1573_v7  ;;  %v1771_v47 = vrot.slane %v4374_v40, 2  ;;  %v4376_v7 = vld [vmem:[%s6848_s4 + $0x40] sm:$0xff]  }
 0x401   :  { %v1466_v43 = vsel %vm280_vm10, %v1460_v28, %v1464_v3  ;;  %v1472_v60 = vsel %vm280_vm10, %v1464_v3, %v5716_v41  ;;  %v1760_v50 = vpack.c.bf16 %v1710_v1, %v1736_v5  ;;  %v1759_v10 = vpack.c.bf16 %v1708_v38, %v1735_v17  ;;  %v6919_v28 = vld [vmem:[#allocation24_spill] sm:$0xff] }
 0x402   :  { %v1501_v58 = vmul.f32 %v5548_v21, %v1466_v43  ;;  %v1502_v63 = vmul.f32 %v5556_v4, %v1472_v60  ;;  %v1712_v21 = vsel %vm485_vm5, %v1705_v31, %v1711_v39  ;;  %v1606_v20 = vmul.f32 %v1598_v45, %v1579_v55  ;;  %v1886_v3 = vld [vmem:[#allocation2] sm:$0xff] }
 0x403   :  { %1798 = vmatprep.subr.bf16.mxu0 %v1760_v50  ;;  %vm1772_vm0 = vcmask 883712   ;;  %v1920_v5 = vpop.permute.xlu0 %1919  ;;  %v1907_v43 = vmul.f32 %v1899_v62, %v1887_v30  ;;  %v1906_v60 = vmul.f32 %v1899_v62, %v1886_v3  ;;  %vm1949_vm1 = vcmask 130048   ;;  %v4401_v30 = vld [vmem:[%s6848_s4 + $0x30] sm:$0xff]  }
 0x404   :  { %v1564_v41 = vpop.permute.xlu1 %1563  ;;  %1799 = vmatpush1.bf16.msra.mxu0 %v1759_v10  ;;  %v1738_v13 = vsel %vm485_vm5, %v1502_v63, %v1706_v6  ;;  %v1737_v4 = vsel %vm485_vm5, %v1501_v58, %v1705_v31  ;;  %v4402_v3 = vld [vmem:[%s6848_s4 + $0xf0] sm:$0xff]   ;;  %vm2725_vm3 = vcmask 424960   ;;  %vm2828_vm4 = vcmask 195584  }
 0x405   :  { %v1576_v54 = vsel %vm360_vm12, %v1564_v41, %v6918_v49  ;;  %v1578_v14 = vsel %vm360_vm12, %v6919_v28, %v1564_v41  ;;  %v1762_v15 = vpack.c.bf16 %v1714_v23, %v1738_v13  ;;  %v1761_v51 = vpack.c.bf16 %v1712_v21, %v1737_v4 }
 0x406   :  { %v1607_v12 = vmul.f32 %v1586_v19, %v1578_v14  ;;  %v1608_v32 = vmul.f32 %v1590_v2, %v1576_v54  ;;  %v1908_v41 = vmul.f32 %v1899_v62, %v1888_v29  ;;  %vm3093_vm10 = vcmask 31744  }
 0x407   :  { %1839 = vmatprep.subr.bf16.mxu1 %v1762_v15  ;;  %vm3119_vm11 = vcmask 23552  }
 0x408   :  { %v1764_v56 = vpack.c.bf16 %v1608_v32, %v1604_v48  ;;  %1840 = vmatpush1.bf16.msra.mxu1 %v1761_v51  ;;  %v1572_v34 = vpop.permute.xlu1 %1571  ;;  %v1763_v33 = vpack.c.bf16 %v1607_v12, %v1603_v8  ;;  %v1889_v8 = vld [vmem:[#allocation2 + $0x18] sm:$0xff] }
 0x409   :  { %v1574_v25 = vsel %vm360_vm12, %v6918_v49, %v1572_v34  ;;  %v1580_v9 = vsel %vm360_vm12, %v1572_v34, %v6919_v28  ;;  %v1909_v22 = vmul.f32 %v1899_v62, %v1889_v8  ;;  %v4375_v34 = vld [vmem:[#allocation5 + $0x10] ss:$8 sps:$4 sm:$0xff]   ;;  %v4396_v62 = vld [vmem:[%s6848_s4 + $0xa0] sm:$0xff]   ;;  %vm3145_vm12 = vcmask 7168  }
 0x40a   :  { %v1609_v27 = vmul.f32 %v1594_v18, %v1574_v25  ;;  %v1610_v44 = vmul.f32 %v1598_v45, %v1580_v9  ;;  %4083 = vmatprep.subr.msk.bf16.mxu0 %vm475_vm9, %v1764_v56  ;;  %v1777_v59 = vsel %vm475_vm9, %v1763_v33, 0  ;;  %v4378_v9 = vld [vmem:[%s6848_s4 + $0xc0] sm:$0xff]  }
 0x40b   :  { %1801 = vmatpush1.bf16.msra.mxu0 %v1777_v59  ;;  %v4382_v59 = vld [vmem:[%s6848_s4 + $0xc8] sm:$0xff]  }
 0x40c   :  { %v1766_v37 = vpack.c.bf16 %v1610_v44, %v1606_v20  ;;  %v1765_v26 = vpack.c.bf16 %v1609_v27, %v1605_v57  ;;  %v4377_v57 = vld [vmem:[%s6848_s4] sm:$0xff]   ;;  %v4381_v44 = vld [vmem:[%s6848_s4 + $0x8] sm:$0xff]  }
 0x40d   :  { %v4380_v27 = vld [vmem:[%s6848_s4 + $0x80] sm:$0xff]  }
 0x40e   :  { %4084 = vmatmul.mubr.msk.bf16.vlgmr.msra.gmra.mrb[8].mxu0 %vm1772_vm0, %v1771_v47  ;;  %4085 = vmatprep.subr.msk.bf16.mxu1 %vm475_vm9, %v1766_v37  ;;  %v1783_v16 = vsel %vm475_vm9, %v1765_v26, 0  ;;  %v4383_v37 = vld [vmem:[%s6848_s4 + $0x50] sm:$0xff]   ;;  %v4384_v26 = vld [vmem:[%s6848_s4 + $0x88] sm:$0xff]  }
 0x40f   :  { %1842 = vmatpush1.bf16.msra.mxu1 %v1783_v16  ;;  %1985 = vmatprep.mubr.bf16.mxu0 %v6920_v24  ;;  %v4385_v16 = vld [vmem:[%s6848_s4 + $0x10] sm:$0xff]  }
 0x412   :  { %4086 = vmatmul.mubr.msk.bf16.vlgmr.msra.gmra.mrb[8].mxu1 %vm1772_vm0, %v1771_v47  ;;  %v4379_v47 = vld [vmem:[%s6848_s4 + $0x48] sm:$0xff]   ;;  %vm3328_vm0 = vcmask 257024  }
 0x413   :  { %2028 = vmatprep.mubr.bf16.mxu1 %v6920_v24 }
 0x419   :  { %v1904_v19 = vpop.permute.xlu1 %1903 }
 0x41e   :  { %v1916_v39 = vpop.permute.xlu1 %1915 }
 0x41f   :  { %v1923_v2 = vadd.f32 %v1916_v39, %v1907_v43  ;;  %v1922_v58 = vadd.f32 %v1916_v39, %v1906_v60  ;;  %v1925_v28 = vadd.f32 %v1916_v39, %v1909_v22  ;;  %v1924_v14 = vadd.f32 %v1916_v39, %v1908_v41  ;;  %v4400_v39 = vld [vmem:[%s6848_s4 + $0xa8] sm:$0xff]   ;;  %v4405_v43 = vld [vmem:[%s6848_s4 + $0x38] sm:$0xff]  }
 0x420   :  { %v4406_v60 = vld [vmem:[%s6848_s4 + $0xf8] sm:$0xff]  }
 0x421   :  { %v1931_v4 = vmax.f32 %v1923_v2, 0.0  ;;  %v1930_v15 = vmax.f32 %v1922_v58, 0.0  ;;  %v1933_v55 = vmax.f32 %v1925_v28, 0.0  ;;  %v1932_v33 = vmax.f32 %v1924_v14, 0.0 }
 0x4e1   :  { %v1822_v42 = vpop.f32.mrb[8].mxu0 }
 0x4e2   :  { %v1874_v11 = vrot.slane %v1822_v42, 4  ;;  %v1824_v36 = vpop.f32.mrb[9].mxu0  ;;  %v4386_v42 = vld [vmem:[%s6848_s4 + $0xd0] sm:$0xff]  }
 0x4e3   :  { %v1875_v0 = vrot.slane %v1824_v36, 4  ;;  %v1826_v46 = vpop.f32.mrb[10].mxu0  ;;  %v4388_v36 = vld [vmem:[%s6848_s4 + $0x90] sm:$0xff]  }
 0x4e4   :  { %1882 = vst [vmem:[#allocation2 + $0x20] sm:$0xf0] %v1874_v11  ;;  %v1827_v52 = vpop.f32.mrb[11].mxu0  ;;  %v4387_v11 = vld [vmem:[%s6848_s4 + $0x58] sm:$0xff]  }
 0x4e5   :  { %1883 = vst [vmem:[#allocation2 + $0x28] sm:$0xf0] %v1875_v0  ;;  %v1863_v35 = vpop.f32.mrb[8].mxu1  ;;  %v4389_v0 = vld [vmem:[%s6848_s4 + $0x18] sm:$0xff]  }
 0x4e6   :  { %v1876_v31 = vrot.slane %v1863_v35, 4  ;;  %v1865_v53 = vpop.f32.mrb[9].mxu1  ;;  %v4390_v46 = vld [vmem:[%s6848_s4 + $0xd8] sm:$0xff]   ;;  %v4393_v35 = vld [vmem:[%s6848_s4 + $0x20] sm:$0xff]  }
 0x4e7   :  { %v1877_v61 = vrot.slane %v1865_v53, 4  ;;  %v1867_v1 = vpop.f32.mrb[10].mxu1  ;;  %v4392_v52 = vld [vmem:[%s6848_s4 + $0x98] sm:$0xff]   ;;  %v4395_v53 = vld [vmem:[%s6848_s4 + $0x68] sm:$0xff]  }
 0x4e8   :  { %1884 = vst [vmem:[#allocation2 + $0x30] sm:$0xf0] %v1876_v31  ;;  %v1868_v38 = vpop.f32.mrb[11].mxu1  ;;  %v4394_v31 = vld [vmem:[%s6848_s4 + $0xe0] sm:$0xff]   ;;  %v4398_v1 = vld [vmem:[%s6848_s4 + $0xe8] sm:$0xff]  }
 0x4e9   :  { %1885 = vst [vmem:[#allocation2 + $0x38] sm:$0xf0] %v1877_v61  ;;  %v4397_v61 = vld [vmem:[%s6848_s4 + $0x28] sm:$0xff]   ;;  %v4399_v38 = vld [vmem:[%s6848_s4 + $0x70] sm:$0xff]  }
 0x4eb   :  { %v1890_v17 = vld [vmem:[#allocation2 + $0x20] sm:$0xff] }
 0x4ec   :  { %v1910_v50 = vmul.f32 %v1904_v19, %v1890_v17  ;;  %v1891_v10 = vld [vmem:[#allocation2 + $0x28] sm:$0xff]  ;;  %v4404_v17 = vld [vmem:[%s6848_s4 + $0xb0] sm:$0xff]  }
 0x4ed   :  { %v1911_v6 = vmul.f32 %v1904_v19, %v1891_v10  ;;  %v2386_v10 = vld [vmem:[%s6846_s2 + $0x2c] sm:$0xff] }
 0x4ee   :  { %v1926_v63 = vadd.f32 %v1920_v5, %v1910_v50  ;;  %v4407_v50 = vld [vmem:[%s6848_s4 + $0xb8] sm:$0xff]   ;;  %2394 = vperm.xlu1 %4342, %v2386_v10  }
 0x4ef   :  { %v1892_v18 = vld [vmem:[#allocation2 + $0x30] sm:$0xff]  ;;  %v1927_v45 = vadd.f32 %v1920_v5, %v1911_v6  ;;  %v6921_v6 = vmov 1  }
 0x4f0   :  { %v1912_v23 = vmul.f32 %v1904_v19, %v1892_v18  ;;  %v1934_v13 = vmax.f32 %v1926_v63, 0.0  ;;  %v1893_v21 = vld [vmem:[#allocation2 + $0x38] sm:$0xff] }
 0x4f1   :  { %v1935_v49 = vmax.f32 %v1927_v45, 0.0  ;;  %v1913_v54 = vmul.f32 %v1904_v19, %v1893_v21  ;;  %v4391_v19 = vld [vmem:[%s6848_s4 + $0x60] sm:$0xff]  }
 0x4f2   :  { %v1928_v51 = vadd.f32 %v1920_v5, %v1912_v23  ;;  %v1940_v32 = vpack.c.bf16 %v1934_v13, %v1930_v15  ;;  %4343 = vset.pattern.permute.xlu1 %v6921_v6 }
 0x4f3   :  { %v1941_v40 = vpack.c.bf16 %v1935_v49, %v1931_v4  ;;  %v1929_v48 = vadd.f32 %v1920_v5, %v1913_v54  ;;  %v4403_v5 = vld [vmem:[%s6848_s4 + $0x78] sm:$0xff]   ;;  %2404 = vperm.xlu1 %4343, %v2386_v10   ;;  %v2390_v54 = vpop.permute.xlu1 %2389 }
 0x4f4   :  { %v1936_v12 = vmax.f32 %v1928_v51, 0.0 }
 0x4f5   :  { %1953 = vmatprep.subr.bf16.mxu0 %v1941_v40  ;;  %v1937_v56 = vmax.f32 %v1929_v48, 0.0 }
 0x4f6   :  { %1954 = vmatpush1.bf16.msra.mxu0 %v1940_v32  ;;  %v1942_v20 = vpack.c.bf16 %v1936_v12, %v1932_v33 }
 0x4f7   :  { %v1943_v25 = vpack.c.bf16 %v1937_v56, %v1933_v55  ;;  %4152 = vmatprep.subr.bf16.mxu0 %v4376_v7  ;;  %4345 = vset.pattern.permute.xlu1 %v6920_v24 }
 0x4f9   :  { %1996 = vmatprep.subr.bf16.mxu1 %v1943_v25  ;;  %4088 = vmatmul.mubr.msk.bf16.vlgmr.msra.gmra.mrb[12].mxu0 %vm1949_vm1, %v4375_v34  ;;  %v2401_v25 = vpop.permute.xlu0 %2400 }
 0x4fa   :  { %1997 = vmatpush1.bf16.msra.mxu1 %v1942_v20  ;;  %4153 = vmatpush3.bf16.msra.mxu0 %v4377_v57 }
 0x4fb   :  { %4174 = vmatprep.subr.bf16.mxu1 %v4378_v9  ;;  %4154 = vmatprep.subr.bf16.mxu0 %v4379_v47 }
 0x4fd   :  { %4089 = vmatmul.mubr.msk.bf16.vlgmr.msra.gmra.mrb[12].mxu1 %vm1949_vm1, %v4375_v34 }
 0x4fe   :  { %4175 = vmatpush3.bf16.msra.mxu1 %v4380_v27  ;;  %4155 = vmatpush3.bf16.msra.mxu0 %v4381_v44 }
 0x4ff   :  { %4176 = vmatprep.subr.bf16.mxu1 %v4382_v59  ;;  %4156 = vmatprep.subr.bf16.mxu0 %v4383_v37  ;;  %v5951_v59 = vld [vmem:[%s6847_s3 + $0x25] ss:$0 sm:$0xff] }
 0x502   :  { %4177 = vmatpush3.bf16.msra.mxu1 %v4384_v26  ;;  %4157 = vmatpush3.bf16.msra.mxu0 %v4385_v16 }
 0x503   :  { %4178 = vmatprep.subr.bf16.mxu1 %v4386_v42  ;;  %4158 = vmatprep.subr.bf16.mxu0 %v4387_v11  ;;  %v5974_v11 = vld [vmem:[#allocation5 + $0x20] sm:$0x33] }
 0x506   :  { %4179 = vmatpush3.bf16.msra.mxu1 %v4388_v36  ;;  %4159 = vmatpush3.bf16.msra.mxu0 %v4389_v0  ;;  %v4123_v36 = vcombine.high %v5974_v11, %v5974_v11  ;;  %v2533_v0 = vld [vmem:[%s6846_s2 + $0x34] sm:$0xff] }
 0x507   :  { %4180 = vmatprep.subr.bf16.mxu1 %v4390_v46  ;;  %4160 = vmatprep.subr.bf16.mxu0 %v4391_v19  ;;  %v2534_v46 = vld [vmem:[%s6846_s2 + $0x3c] sm:$0xff]  ;;  %v2535_v19 = vld [vmem:[%s6846_s2 + $0x44] sm:$0xf] }
 0x50a   :  { %4181 = vmatpush3.bf16.msra.mxu1 %v4392_v52  ;;  %4161 = vmatpush3.bf16.msra.mxu0 %v4393_v35  ;;  %v6000_v52 = vld [vmem:[%s6847_s3 + $0x21] ss:$0 sm:$0xff] }
 0x50b   :  { %4182 = vmatprep.subr.bf16.mxu1 %v4394_v31  ;;  %4162 = vmatprep.subr.bf16.mxu0 %v4395_v53 }
 0x50e   :  { %4183 = vmatpush3.bf16.msra.mxu1 %v4396_v62  ;;  %4163 = vmatpush3.bf16.msra.mxu0 %v4397_v61  ;;  %v6007_v61 = vld [vmem:[%s6847_s3 + $0x22] ss:$0 sm:$0xff] }
 0x50f   :  { %4184 = vmatprep.subr.bf16.mxu1 %v4398_v1  ;;  %4164 = vmatprep.subr.bf16.mxu0 %v4399_v38 }
 0x512   :  { %4185 = vmatpush3.bf16.msra.mxu1 %v4400_v39  ;;  %4165 = vmatpush3.bf16.msra.mxu0 %v4401_v30 }
 0x513   :  { %4186 = vmatprep.subr.bf16.mxu1 %v4402_v3  ;;  %4166 = vmatprep.subr.bf16.mxu0 %v4403_v5  ;;  %v6014_v5 = vld [vmem:[%s6847_s3 + $0x23] ss:$0 sm:$0xff] }
 0x516   :  { %4187 = vmatpush3.bf16.msra.mxu1 %v4404_v17  ;;  %4167 = vmatpush3.bf16.msra.mxu0 %v4405_v43 }
 0x517   :  { %2489 = vmatprep.subr.bf16.mxu0 %v6920_v24  ;;  %4188 = vmatprep.subr.bf16.mxu1 %v4406_v60 }
 0x51a   :  { %4189 = vmatpush3.bf16.msra.mxu1 %v4407_v50 }
 0x51b   :  { %2732 = vmatprep.subr.bf16.mxu1 %v6920_v24 }
 0x56d   :  { %v2395_v55 = vpop.permute.xlu1 %2394 }
 0x572   :  { %v2405_v9 = vpop.permute.xlu1 %2404 }
 0x5cc   :  { %v1987_v2 = vpop.f32.mrb[12].mxu0 }
 0x5cd   :  { %v1989_v58 = vpop.f32.mrb[13].mxu0 }
 0x5ce   :  { %v1991_v63 = vpop.f32.mrb[14].mxu0 }
 0x5cf   :  { %v2039_v8 = vpack.c.bf16 %v1991_v63, %v1987_v2  ;;  %v1993_v29 = vpop.f32.mrb[15].mxu0  ;;  %v6022_v2 = vld [vmem:[%s6847_s3 + $0x24] ss:$0 sm:$0xff] }
 0x5d0   :  { %v2040_v18 = vpack.c.bf16 %v1993_v29, %v1989_v58  ;;  %v2030_v45 = vpop.f32.mrb[12].mxu1 }
 0x5d1   :  { %v2032_v22 = vpop.f32.mrb[13].mxu1 }
 0x5d2   :  { %v2034_v41 = vpop.f32.mrb[14].mxu1  ;;  %2331 = vmatprep.mubr.bf16.mxu0 %v2040_v18 }
 0x5d3   :  { %v2041_v23 = vpack.c.bf16 %v2034_v41, %v2030_v45  ;;  %v2036_v13 = vpop.f32.mrb[15].mxu1  ;;  %2332 = vmatmul.mubr.bf16.vlgmr.msra.gmra.mrb[16].mxu0 %v2039_v8 }
 0x5d4   :  { %v2042_v21 = vpack.c.bf16 %v2036_v13, %v2032_v22  ;;  %4124 = vmatprep.mubr.msk.bf16.mxu0 %vm1949_vm1, %v4123_v36  ;;  %vm3748_vm1 = vcmask 1014784  }
 0x5d6   :  { %2372 = vmatprep.mubr.bf16.mxu1 %v2042_v21 }
 0x5d7   :  { %2373 = vmatmul.mubr.bf16.vlgmr.msra.gmra.mrb[16].mxu1 %v2041_v23  ;;  %v6031_v23 = vld [vmem:[%s6847_s3 + $0x26] ss:$0 sm:$0xff] }
 0x6a6   :  { %v4168_v4 = vpop.f32.mrb[16].mxu0 }
 0x6a7   :  { %v4169_v49 = vpop.f32.mrb[17].mxu0 }
 0x6a8   :  { %v4170_v28 = vadd.f32 %v4169_v49, %v4168_v4  ;;  %v4171_v14 = vpop.f32.mrb[18].mxu0 }
 0x6a9   :  { %v4172_v15 = vpop.f32.mrb[19].mxu0 }
 0x6aa   :  { %v4173_v51 = vadd.f32 %v4172_v15, %v4171_v14  ;;  %v4190_v40 = vpop.f32.mrb[16].mxu1 }
 0x6ab   :  { %v4191_v48 = vpop.f32.mrb[17].mxu1 }
 0x6ac   :  { %v4192_v7 = vadd.f32 %v4191_v48, %v4190_v40  ;;  %v4193_v12 = vpop.f32.mrb[18].mxu1  ;;  %v6050_v48 = vld [vmem:[%s6847_s3 + $0x40] ss:$0 sm:$0xff] }
 0x6ad   :  { %v4194_v32 = vpop.f32.mrb[19].mxu1 }
 0x6ae   :  { %v5942_v56 = vadd.f32 %v4192_v7, %v4170_v28  ;;  %v4195_v34 = vadd.f32 %v4194_v32, %v4193_v12 }
 0x6b0   :  { %v5944_v33 = vadd.f32 %v4195_v34, %v4173_v51  ;;  %v2397_v57 = vmul.f32 %v2390_v54, %v5942_v56  ;;  %v6042_v54 = vld [vmem:[%s6847_s3 + $0x27] ss:$0 sm:$0xff]  ;;  %v6058_v34 = vld [vmem:[%s6847_s3 + $0x41] ss:$0 sm:$0xff] }
 0x6b2   :  { %v2407_v47 = vadd.f32 %v2401_v25, %v2397_v57  ;;  %v2398_v20 = vmul.f32 %v2395_v55, %v5944_v33 }
 0x6b4   :  { %v2409_v27 = vmax.f32 %v2407_v47, 0.0  ;;  %v2408_v44 = vadd.f32 %v2405_v9, %v2398_v20 }
 0x6b6   :  { %v2410_v37 = vmax.f32 %v2408_v44, 0.0  ;;  %2411 = vrot.lane.b32.xlu0 %v2409_v27, %s4472_s29  ;;  %v5956_v26 = vmul.f32 %v5951_v59, %v2409_v27 }
 0x6b8   :  { %2413 = vrot.lane.b32.xlu1 %v2410_v37, %s4472_s29  ;;  %v5959_v16 = vmul.f32 %v5951_v59, %v2410_v37 }
 0x6ba   :  { %2418 = vrot.lane.b32.xlu0 %v2409_v27, %s4460_s8  ;;  %v2474_v42 = vpack.c.bf16 %v5959_v16, %v5956_v26 }
 0x6bc   :  { %2420 = vrot.lane.b32.xlu1 %v2410_v37, %s4460_s8 }
 0x6be   :  { %2425 = vrot.lane.b32.xlu0 %v2409_v27, %s4473_s30 }
 0x6c0   :  { %2427 = vrot.lane.b32.xlu1 %v2410_v37, %s4473_s30 }
 0x6c2   :  { %2432 = vrot.lane.b32.xlu0 %v2409_v27, %s4462_s1 }
 0x6c4   :  { %2434 = vrot.lane.b32.xlu1 %v2410_v37, %s4462_s1 }
 0x6c6   :  { %2442 = vrot.lane.b32.xlu0 %v2409_v27, %s4464_s16 }
 0x6c8   :  { %2444 = vrot.lane.b32.xlu1 %v2410_v37, %s4464_s16 }
 0x6ca   :  { %2449 = vrot.lane.b32.xlu0 %v2409_v27, %s4474_s7 }
 0x6cc   :  { %2451 = vrot.lane.b32.xlu1 %v2410_v37, %s4474_s7 }
 0x6ce   :  { %2456 = vrot.lane.b32.xlu0 %v2409_v27, %s4475_s9 }
 0x6d0   :  { %2458 = vrot.lane.b32.xlu1 %v2410_v37, %s4475_s9 }
 0x6d2   :  { %2463 = vrot.lane.b32.xlu0 %v2409_v27, %s4476_s17  ;;  %v4122_v27 = vcombine.low %v5974_v11, %v5974_v11 }
 0x6d4   :  { %2465 = vrot.lane.b32.xlu1 %v2410_v37, %s4476_s17 }
 0x6d6   :  { %2538 = vperm.xlu0 %4344, %v2533_v0  }
 0x6d8   :  { %2543 = vperm.xlu1 %4345, %v2534_v46  }
 0x6da   :  { %4347 = vset.pattern.permute.xlu0 %v6921_v6 }
 0x6db   :  { %2559 = vperm.xlu0 %4347, %v2534_v46  }
 0x6dc   :  { %4346 = vset.pattern.permute.xlu1 %v6921_v6 }
 0x6dd   :  { %2555 = vperm.xlu1 %4346, %v2533_v0  }
 0x6df   :  { %4350 = vset.pattern.permute.xlu0 %v6920_v24 }
 0x6e1   :  { %4348 = vset.pattern.permute.xlu1 %v6920_v24 }
 0x6e2   :  { %2548 = vperm.xlu1 %4348, %v2535_v19  }
 0x6e6   :  { %4349 = vset.pattern.permute.xlu1 %v6921_v6 }
 0x6e7   :  { %2563 = vperm.xlu1 %4349, %v2535_v19  }
 0x6eb   :  { %4351 = vset.pattern.permute.xlu1 %v6920_v24 }
 0x728   :  { %v2412_v35 = vpop.permute.xlu0 %2411 }
 0x729   :  { %v2416_v53 = vmul.f32 %v6000_v52, %v2412_v35 }
 0x72a   :  { %v2414_v31 = vpop.permute.xlu1 %2413 }
 0x72b   :  { %v2417_v62 = vmul.f32 %v6000_v52, %v2414_v31 }
 0x72c   :  { %v2419_v1 = vpop.permute.xlu0 %2418 }
 0x72d   :  { %v2470_v38 = vpack.c.bf16 %v2417_v62, %v2416_v53  ;;  %v2423_v30 = vmul.f32 %v6007_v61, %v2419_v1 }
 0x72e   :  { %v2421_v39 = vpop.permute.xlu1 %2420 }
 0x72f   :  { %v2424_v3 = vmul.f32 %v6007_v61, %v2421_v39  ;;  %2490 = vmatpush1.bf16.msra.mxu0 %v2470_v38 }
 0x730   :  { %v2426_v17 = vpop.permute.xlu0 %2425  ;;  %2491 = vmatprep.subr.bf16.mxu0 %v6920_v24 }
 0x731   :  { %v2471_v43 = vpack.c.bf16 %v2424_v3, %v2423_v30  ;;  %v2430_v50 = vmul.f32 %v6014_v5, %v2426_v17 }
 0x732   :  { %v2428_v60 = vpop.permute.xlu1 %2427 }
 0x733   :  { %v2431_v10 = vmul.f32 %v6014_v5, %v2428_v60  ;;  %2492 = vmatpush1.bf16.msra.mxu0 %v2471_v43 }
 0x734   :  { %v2433_v58 = vpop.permute.xlu0 %2432  ;;  %2493 = vmatprep.subr.bf16.mxu0 %v6920_v24 }
 0x735   :  { %v2472_v63 = vpack.c.bf16 %v2431_v10, %v2430_v50  ;;  %v2437_v29 = vmul.f32 %v6022_v2, %v2433_v58 }
 0x736   :  { %v2435_v8 = vpop.permute.xlu1 %2434 }
 0x737   :  { %v2438_v18 = vmul.f32 %v6022_v2, %v2435_v8  ;;  %2494 = vmatpush1.bf16.msra.mxu0 %v2472_v63  ;;  %v6123_v63 = vld [vmem:[#allocation5 + $0x20] sm:$0xcc]  ;;  %v2777_v8 = vld [vmem:[%s6846_s2 + $0x50] sm:$0xff] }
 0x738   :  { %v2443_v45 = vpop.permute.xlu0 %2442  ;;  %2495 = vmatprep.subr.bf16.mxu0 %v6920_v24 }
 0x739   :  { %v2473_v22 = vpack.c.bf16 %v2438_v18, %v2437_v29  ;;  %v2447_v49 = vmul.f32 %v6031_v23, %v2443_v45  ;;  %v4126_v29 = vcombine.high %v6123_v63, %v6123_v63  ;;  %v2776_v45 = vld [vmem:[%s6846_s2 + $0x48] sm:$0xff] }
 0x73a   :  { %v2445_v41 = vpop.permute.xlu1 %2444 }
 0x73b   :  { %2496 = vmatpush1.bf16.msra.mxu0 %v2473_v22  ;;  %v2448_v21 = vmul.f32 %v6031_v23, %v2445_v41  ;;  %v2723_v18 = vrot.slane %v4126_v29, 2  ;;  %v2778_v22 = vld [vmem:[%s6846_s2 + $0x58] sm:$0xff] }
 0x73c   :  { %v2450_v13 = vpop.permute.xlu0 %2449  ;;  %2497 = vmatprep.subr.bf16.mxu0 %v6920_v24 }
 0x73d   :  { %v2475_v28 = vpack.c.bf16 %v2448_v21, %v2447_v49  ;;  %v2454_v40 = vmul.f32 %v6042_v54, %v2450_v13  ;;  %4127 = vmatprep.mubr.msk.bf16.mxu1 %vm2725_vm3, %v2723_v18 }
 0x73e   :  { %v2452_v4 = vpop.permute.xlu1 %2451 }
 0x73f   :  { %2498 = vmatpush1.bf16.msra.mxu0 %v2474_v42  ;;  %v2455_v14 = vmul.f32 %v6042_v54, %v2452_v4 }
 0x740   :  { %2499 = vmatprep.subr.bf16.mxu0 %v6920_v24  ;;  %v2457_v15 = vpop.permute.xlu0 %2456 }
 0x741   :  { %v2476_v7 = vpack.c.bf16 %v2455_v14, %v2454_v40  ;;  %v2461_v55 = vmul.f32 %v6050_v48, %v2457_v15 }
 0x742   :  { %v2459_v51 = vpop.permute.xlu1 %2458 }
 0x743   :  { %2500 = vmatpush1.bf16.msra.mxu0 %v2475_v28  ;;  %v2462_v12 = vmul.f32 %v6050_v48, %v2459_v51 }
 0x744   :  { %2501 = vmatprep.subr.bf16.mxu0 %v6920_v24  ;;  %v2464_v57 = vpop.permute.xlu0 %2463 }
 0x745   :  { %v2477_v25 = vpack.c.bf16 %v2462_v12, %v2461_v55  ;;  %v2468_v47 = vmul.f32 %v6058_v34, %v2464_v57 }
 0x746   :  { %v2466_v32 = vpop.permute.xlu1 %2465 }
 0x747   :  { %2502 = vmatpush1.bf16.msra.mxu0 %v2476_v7  ;;  %v2469_v9 = vmul.f32 %v6058_v34, %v2466_v32 }
 0x748   :  { %2503 = vmatprep.subr.bf16.mxu0 %v6920_v24 }
 0x749   :  { %v2478_v20 = vpack.c.bf16 %v2469_v9, %v2468_v47 }
 0x74b   :  { %2504 = vmatpush1.bf16.msra.mxu0 %v2477_v25 }
 0x74c   :  { %2505 = vmatprep.subr.bf16.mxu0 %v6920_v24 }
 0x74f   :  { %2506 = vmatpush1.bf16.msra.mxu0 %v2478_v20 }
 0x752   :  { %2522 = vmatmul.mubr.bf16.vlgmr.msra.gmra.mrb[20].mxu0 %v4122_v27 }
 0x755   :  { %v2539_v44 = vpop.permute.xlu0 %2538 }
 0x756   :  { %v2551_v42 = vmul.f32 %v2539_v44, %v5942_v56 }
 0x757   :  { %v2544_v37 = vpop.permute.xlu1 %2543 }
 0x758   :  { %v2552_v26 = vmul.f32 %v2544_v37, %v5944_v33 }
 0x75a   :  { %v2560_v16 = vpop.permute.xlu0 %2559 }
 0x75b   :  { %v2567_v36 = vadd.f32 %v2560_v16, %v2552_v26 }
 0x75c   :  { %v2556_v0 = vpop.permute.xlu1 %2555 }
 0x75d   :  { %v6068_v46 = vmax.f32 %v2567_v36, 0.0  ;;  %v2566_v19 = vadd.f32 %v2556_v0, %v2551_v42 }
 0x75f   :  { %v6070_v35 = vmax.f32 %v2566_v19, 0.0  ;;  %2574 = vrot.lane.b32.xlu1 %v6068_v46, %s4472_s29 }
 0x761   :  { %2572 = vrot.lane.b32.xlu0 %v6070_v35, %s4472_s29  ;;  %v2549_v11 = vpop.permute.xlu1 %2548 }
 0x763   :  { %2584 = vrot.lane.b32.xlu1 %v6068_v46, %s4460_s8 }
 0x765   :  { %2582 = vrot.lane.b32.xlu0 %v6070_v35, %s4460_s8 }
 0x766   :  { %v2564_v31 = vpop.permute.xlu1 %2563 }
 0x767   :  { %2602 = vrot.lane.b32.xlu1 %v6070_v35, %s4462_s1 }
 0x7d1   :  { %v2575_v53 = vpop.permute.xlu1 %2574 }
 0x7d2   :  { %v2580_v1 = vmul.f32 %v2575_v53, %v6000_v52 }
 0x7d3   :  { %v2573_v62 = vpop.permute.xlu0 %2572 }
 0x7d4   :  { %v2579_v38 = vmul.f32 %v2573_v62, %v6000_v52 }
 0x7d5   :  { %v2585_v41 = vpop.permute.xlu1 %2584 }
 0x7d6   :  { %v2704_v39 = vpack.c.bf16 %v2580_v1, %v2579_v38  ;;  %v2590_v49 = vmul.f32 %v2585_v41, %v6007_v61 }
 0x7d7   :  { %v2583_v13 = vpop.permute.xlu0 %2582 }
 0x7d8   :  { %2733 = vmatpush1.bf16.msra.mxu1 %v2704_v39  ;;  %v2589_v21 = vmul.f32 %v2583_v13, %v6007_v61  ;;  %v2660_v51 = vrot.slane %v2590_v49, 4 }
 0x7d9   :  { %2734 = vmatprep.subr.bf16.mxu1 %v6920_v24  ;;  %v2603_v4 = vpop.permute.xlu1 %2602 }
 0x7da   :  { %v2659_v28 = vrot.slane %v2589_v21, 4  ;;  %v2609_v47 = vmul.f32 %v2603_v4, %v6022_v2 }
 0x7dc   :  { %v2661_v12 = vsel %vm485_vm5, %v2659_v28, %v2660_v51  ;;  %v2670_v37 = vrot.slane %v2609_v47, 4 }
 0x825   :  { %v2523_v30 = vpop.f32.mrb[20].mxu0 }
 0x826   :  { %2529 = vst [vmem:[#allocation3 + $0x10] sm:$0xf] %v2523_v30  ;;  %v2525_v3 = vpop.f32.mrb[21].mxu0 }
 0x827   :  { %v2526_v17 = vpop.f32.mrb[22].mxu0 }
 0x828   :  { %v2527_v43 = vpop.f32.mrb[23].mxu0 }
 0x829   :  { %v2613_v43 = vmul.f32 %v6070_v35, %v5951_v59 }
 0x82d   :  { %v2532_v60 = vld [vmem:[#allocation3 + $0x10] sm:$0xf] }
 0x82e   :  { %v2553_v50 = vmul.f32 %v2549_v11, %v2532_v60 }
 0x830   :  { %v2568_v10 = vadd.f32 %v2564_v31, %v2553_v50 }
 0x832   :  { %v6085_v58 = vmax.f32 %v2568_v10, 0.0  ;;  %v2614_v10 = vmul.f32 %v6068_v46, %v5951_v59 }
 0x834   :  { %2586 = vrot.lane.b32.xlu1 %v6085_v58, %s4460_s8  ;;  %2576 = vrot.lane.b32.xlu0 %v6085_v58, %s4472_s29  ;;  %v2615_v29 = vmul.f32 %v6085_v58, %v5951_v59  ;;  %v2709_v18 = vpack.c.bf16 %v2614_v10, %v2613_v43 }
 0x838   :  { %2594 = vrot.lane.b32.xlu1 %v6068_v46, %s4473_s30  ;;  %2592 = vrot.lane.b32.xlu0 %v6070_v35, %s4473_s30 }
 0x83c   :  { %2606 = vrot.lane.b32.xlu1 %v6085_v58, %s4462_s1  ;;  %2596 = vrot.lane.b32.xlu0 %v6085_v58, %s4473_s30 }
 0x840   :  { %2618 = vrot.lane.b32.xlu1 %v6068_v46, %s4464_s16  ;;  %2604 = vrot.lane.b32.xlu0 %v6068_v46, %s4462_s1 }
 0x844   :  { %2626 = vrot.lane.b32.xlu1 %v6070_v35, %s4474_s7  ;;  %2616 = vrot.lane.b32.xlu0 %v6070_v35, %s4464_s16 }
 0x848   :  { %2630 = vrot.lane.b32.xlu1 %v6085_v58, %s4474_s7  ;;  %2636 = vrot.lane.b32.xlu0 %v6070_v35, %s4475_s9 }
 0x84c   :  { %2638 = vrot.lane.b32.xlu1 %v6068_v46, %s4475_s9  ;;  %2620 = vrot.lane.b32.xlu0 %v6085_v58, %s4464_s16 }
 0x850   :  { %2646 = vrot.lane.b32.xlu1 %v6070_v35, %s4476_s17  ;;  %2628 = vrot.lane.b32.xlu0 %v6068_v46, %s4474_s7 }
 0x854   :  { %2650 = vrot.lane.b32.xlu1 %v6085_v58, %s4476_s17  ;;  %2640 = vrot.lane.b32.xlu0 %v6085_v58, %s4475_s9  ;;  %s4477_s9 = smov 5  }
 0x858   :  { %2786 = vperm.xlu1 %4351, %v2777_v8   ;;  %2648 = vrot.lane.b32.xlu0 %v6068_v46, %s4476_s17  ;;  %s4479_s17 = smov 100  }
 0x85c   :  { %2781 = vperm.xlu0 %4350, %v2776_v45   ;;  %4352 = vset.pattern.permute.xlu1 %v6921_v6 }
 0x85d   :  { %2798 = vperm.xlu1 %4352, %v2776_v45  }
 0x860   :  { %4353 = vset.pattern.permute.xlu0 %v6921_v6 }
 0x861   :  { %2802 = vperm.xlu0 %4353, %v2777_v8   ;;  %4354 = vset.pattern.permute.xlu1 %v6920_v24 }
 0x862   :  { %2791 = vperm.xlu1 %4354, %v2778_v22  }
 0x865   :  { %4356 = vset.pattern.permute.xlu0 %v6920_v24 }
 0x866   :  { %4355 = vset.pattern.permute.xlu1 %v6921_v6 }
 0x867   :  { %2806 = vperm.xlu1 %4355, %v2778_v22  }
 0x86b   :  { %4357 = vset.pattern.permute.xlu1 %v6920_v24 }
 0x8a6   :  { %v2587_v14 = vpop.permute.xlu1 %2586  ;;  %v2577_v15 = vpop.permute.xlu0 %2576 }
 0x8a7   :  { %v2591_v40 = vmul.f32 %v2587_v14, %v6007_v61  ;;  %v2581_v7 = vmul.f32 %v2577_v15, %v6000_v52 }
 0x8a9   :  { %v2662_v32 = vrot.slane %v2591_v40, 4  ;;  %v2700_v55 = vsel %vm485_vm5, %v2581_v7, %v2659_v28 }
 0x8aa   :  { %v2705_v57 = vpack.c.bf16 %v2661_v12, %v2700_v55  ;;  %v2595_v25 = vpop.permute.xlu1 %2594  ;;  %v2593_v9 = vpop.permute.xlu0 %2592 }
 0x8ab   :  { %v2663_v20 = vsel %vm485_vm5, %v2660_v51, %v2662_v32  ;;  %v2599_v27 = vmul.f32 %v2593_v9, %v6014_v5  ;;  %v2600_v16 = vmul.f32 %v2595_v25, %v6014_v5 }
 0x8ac   :  { %2735 = vmatpush1.bf16.msra.mxu1 %v2705_v57 }
 0x8ad   :  { %v2706_v44 = vpack.c.bf16 %v2599_v27, %v2663_v20  ;;  %2736 = vmatprep.subr.bf16.mxu1 %v6920_v24 }
 0x8ae   :  { %v2607_v61 = vpop.permute.xlu1 %2606  ;;  %v2597_v52 = vpop.permute.xlu0 %2596 }
 0x8af   :  { %v2601_v26 = vmul.f32 %v2597_v52, %v6014_v5  ;;  %v2611_v42 = vmul.f32 %v2607_v61, %v6022_v2 }
 0x8b0   :  { %2737 = vmatpush1.bf16.msra.mxu1 %v2706_v44 }
 0x8b1   :  { %v2701_v36 = vsel %vm485_vm5, %v2601_v26, %v2670_v37  ;;  %2738 = vmatprep.subr.bf16.mxu1 %v6920_v24  ;;  %v2673_v53 = vrot.slane %v2611_v42, 4  ;;  %v4125_v26 = vcombine.low %v6123_v63, %v6123_v63 }
 0x8b2   :  { %v2707_v0 = vpack.c.bf16 %v2701_v36, %v2600_v16  ;;  %v2619_v19 = vpop.permute.xlu1 %2618  ;;  %v2605_v11 = vpop.permute.xlu0 %2604 }
 0x8b3   :  { %v2610_v31 = vmul.f32 %v2605_v11, %v6022_v2  ;;  %v2624_v5 = vmul.f32 %v2619_v19, %v6031_v23  ;;  %v2722_v42 = vrot.slane %v4125_v26, 2 }
 0x8b4   :  { %2739 = vmatpush1.bf16.msra.mxu1 %v2707_v0 }
 0x8b5   :  { %v2671_v62 = vrot.slane %v2610_v31, 4  ;;  %2740 = vmatprep.subr.bf16.mxu1 %v6920_v24  ;;  %v2682_v8 = vrot.slane %v2624_v5, 4  ;;  %v4412_v5 = vld [vmem:[#allocation5 + $0x28] ss:$8 sps:$4 sm:$0xff]  }
 0x8b6   :  { %v2627_v1 = vpop.permute.xlu1 %2626  ;;  %v2617_v38 = vpop.permute.xlu0 %2616  ;;  %4246 = vmatprep.mubr.msk.bf16.mxu0 %vm2828_vm4, %v4412_v5 }
 0x8b7   :  { %v2672_v39 = vsel %vm485_vm5, %v2670_v37, %v2671_v62  ;;  %v2674_v30 = vsel %vm485_vm5, %v2671_v62, %v2673_v53  ;;  %v2623_v3 = vmul.f32 %v2617_v38, %v6031_v23  ;;  %v2633_v59 = vmul.f32 %v2627_v1, %v6042_v54 }
 0x8b8   :  { %v2708_v17 = vpack.c.bf16 %v2674_v30, %v2672_v39 }
 0x8b9   :  { %v2681_v2 = vrot.slane %v2623_v3, 4 }
 0x8ba   :  { %v2631_v60 = vpop.permute.xlu1 %2630  ;;  %2741 = vmatpush1.bf16.msra.mxu1 %v2708_v17  ;;  %v2637_v50 = vpop.permute.xlu0 %2636 }
 0x8bb   :  { %2742 = vmatprep.subr.bf16.mxu1 %v6920_v24  ;;  %v2683_v45 = vsel %vm485_vm5, %v2681_v2, %v2682_v8  ;;  %v2702_v22 = vsel %vm485_vm5, %v2615_v29, %v2681_v2  ;;  %v2643_v13 = vmul.f32 %v2637_v50, %v6050_v48 }
 0x8bc   :  { %v2710_v46 = vpack.c.bf16 %v2683_v45, %v2702_v22  ;;  %v4415_v45 = vld [vmem:[%s6848_s4 + $0x108] sm:$0xff]   ;;  %v4416_v22 = vld [vmem:[%s6848_s4 + $0x110] sm:$0xff]  }
 0x8bd   :  { %v2692_v49 = vrot.slane %v2643_v13, 4  ;;  %v4419_v13 = vld [vmem:[%s6848_s4 + $0x128] sm:$0xff]  }
 0x8be   :  { %v2639_v41 = vpop.permute.xlu1 %2638  ;;  %2743 = vmatpush1.bf16.msra.mxu1 %v2709_v18  ;;  %v2621_v35 = vpop.permute.xlu0 %2620  ;;  %v4413_v18 = vld [vmem:[#allocation5 + $0x38] ss:$0 sps:$4 sm:$0xff]  }
 0x8bf   :  { %v2625_v21 = vmul.f32 %v2621_v35, %v6031_v23  ;;  %2744 = vmatprep.subr.bf16.mxu1 %v6920_v24  ;;  %v2644_v28 = vmul.f32 %v2639_v41, %v6050_v48  ;;  %v2635_v23 = vmul.f32 %v2631_v60, %v6042_v54  ;;  %v4417_v41 = vld [vmem:[%s6848_s4 + $0x118] sm:$0xff]   ;;  %v4418_v35 = vld [vmem:[%s6848_s4 + $0x120] sm:$0xff]  }
 0x8c1   :  { %v2684_v4 = vrot.slane %v2625_v21, 4  ;;  %v2693_v12 = vrot.slane %v2644_v28, 4  ;;  %v2703_v32 = vsel %vm485_vm5, %v2635_v23, %v2692_v49  ;;  %v4420_v21 = vld [vmem:[%s6848_s4 + $0x130] sm:$0xff]  }
 0x8c2   :  { %v2629_v58 = vpop.permute.xlu0 %2628  ;;  %2745 = vmatpush1.bf16.msra.mxu1 %v2710_v46  ;;  %v2647_v15 = vpop.permute.xlu1 %2646  ;;  %v4421_v46 = vld [vmem:[%s6848_s4 + $0x138] sm:$0xff]  }
 0x8c3   :  { %v2685_v14 = vsel %vm485_vm5, %v2682_v8, %v2684_v4  ;;  %2746 = vmatprep.subr.bf16.mxu1 %v6920_v24  ;;  %v2634_v51 = vmul.f32 %v2629_v58, %v6042_v54  ;;  %v2694_v20 = vsel %vm485_vm5, %v2692_v49, %v2693_v12  ;;  %v4414_v8 = vld [vmem:[%s6848_s4 + $0x100] sm:$0xff]   ;;  %v3008_v4 = vld [vmem:[%s6846_s2 + $0x68] sm:$0xff]  ;;  %v3009_v58 = vld [vmem:[%s6846_s2 + $0x70] sm:$0xff] }
 0x8c4   :  { %v2711_v40 = vpack.c.bf16 %v2633_v59, %v2685_v14  ;;  %v3007_v59 = vld [vmem:[%s6846_s2 + $0x60] sm:$0xff]  ;;  %3017 = vperm.xlu1 %4357, %v3008_v4  }
 0x8c5   :  { %v2712_v57 = vpack.c.bf16 %v2703_v32, %v2634_v51  ;;  %3012 = vperm.xlu0 %4356, %v3007_v59  }
 0x8c6   :  { %v2641_v7 = vpop.permute.xlu0 %2640  ;;  %2747 = vmatpush1.bf16.msra.mxu1 %v2711_v40  ;;  %v2651_v9 = vpop.permute.xlu1 %2650 }
 0x8c7   :  { %v2645_v55 = vmul.f32 %v2641_v7, %v6050_v48  ;;  %2748 = vmatprep.subr.bf16.mxu1 %v6920_v24  ;;  %v2655_v61 = vmul.f32 %v2651_v9, %v6058_v34  ;;  %v2653_v48 = vmul.f32 %v2647_v15, %v6058_v34 }
 0x8c8   :  { %4358 = vset.pattern.permute.xlu1 %v6921_v6 }
 0x8c9   :  { %v2695_v25 = vrot.slane %v2645_v55, 4  ;;  %v2715_v37 = vpack.c.bf16 %v2655_v61, %v2655_v61  ;;  %4359 = vset.pattern.permute.xlu0 %v6921_v6  ;;  %3029 = vperm.xlu1 %4358, %v3007_v59  }
 0x8ca   :  { %v2649_v47 = vpop.permute.xlu0 %2648  ;;  %2749 = vmatpush1.bf16.msra.mxu1 %v2712_v57  ;;  %3033 = vperm.xlu0 %4359, %v3008_v4  }
 0x8cb   :  { %v2696_v27 = vsel %vm485_vm5, %v2693_v12, %v2695_v25  ;;  %2750 = vmatprep.subr.bf16.mxu1 %v6920_v24  ;;  %v2654_v54 = vmul.f32 %v2649_v47, %v6058_v34  ;;  %v2730_v16 = vsel %vm495_vm13, %v2715_v37, 0  ;;  %vm3175_vm13 = vcmask 252928  }
 0x8cc   :  { %v2713_v44 = vpack.c.bf16 %v2696_v27, %v2694_v20 }
 0x8cd   :  { %v2714_v52 = vpack.c.bf16 %v2654_v54, %v2653_v48  ;;  %4360 = vset.pattern.permute.xlu1 %v6920_v24 }
 0x8ce   :  { %2751 = vmatpush1.bf16.msra.mxu1 %v2713_v44  ;;  %3022 = vperm.xlu1 %4360, %v3009_v58  }
 0x8cf   :  { %2752 = vmatprep.subr.bf16.mxu1 %v6920_v24 }
 0x8d2   :  { %2753 = vmatpush1.bf16.msra.mxu1 %v2714_v52  ;;  %4361 = vset.pattern.permute.xlu1 %v6921_v6 }
 0x8d3   :  { %2754 = vmatprep.subr.bf16.mxu1 %v6920_v24  ;;  %3037 = vperm.xlu1 %4361, %v3009_v58  }
 0x8d6   :  { %2755 = vmatpush1.bf16.msra.mxu1 %v2730_v16 }
 0x8d7   :  { %3288 = vmatprep.subr.bf16.mxu1 %v6920_v24  ;;  %v2787_v36 = vpop.permute.xlu1 %2786 }
 0x8d8   :  { %v2795_v11 = vmul.f32 %v2787_v36, %v5944_v33 }
 0x8d9   :  { %2765 = vmatmul.mubr.bf16.vlgmr.msra.gmra.mrb[20].mxu1 %v2722_v42 }
 0x8db   :  { %v2782_v34 = vpop.permute.xlu0 %2781 }
 0x8dc   :  { %v2794_v0 = vmul.f32 %v2782_v34, %v5942_v56  ;;  %v2799_v19 = vpop.permute.xlu1 %2798 }
 0x8de   :  { %v2809_v31 = vadd.f32 %v2799_v19, %v2794_v0  ;;  %v6347_v0 = vld [vmem:[#allocation5 + $0x40] sm:$0x33] }
 0x8df   :  { %v4141_v19 = vcombine.high %v6347_v0, %v6347_v0 }
 0x8e0   :  { %v2803_v53 = vpop.permute.xlu0 %2802  ;;  %v2812_v62 = vmax.f32 %v2809_v31, 0.0  ;;  %v3334_v31 = vld [vmem:[%s6846_s2 + $0x78] sm:$0xff] }
 0x8e1   :  { %v2810_v63 = vadd.f32 %v2803_v53, %v2795_v11  ;;  %v2792_v56 = vpop.permute.xlu1 %2791  ;;  %4142 = vmatprep.mubr.msk.bf16.mxu1 %vm3281_vm7, %v4141_v19  ;;  %v3336_v11 = vld [vmem:[%s6846_s2 + $0x88] sm:$0xff]  ;;  %v3335_v53 = vld [vmem:[%s6846_s2 + $0x80] sm:$0xff] }
 0x8e3   :  { %v2813_v1 = vmax.f32 %v2810_v63, 0.0  ;;  %v3337_v63 = vld [vmem:[%s6846_s2 + $0x90] sm:$0xf] }
 0x8e5   :  { %v2818_v38 = vpack.c.bf16 %v2813_v1, %v2812_v62 }
 0x8e6   :  { %v2807_v33 = vpop.permute.xlu1 %2806 }
 0x8e7   :  { %4242 = vmatprep.subr.bf16.mxu0 %v2818_v38 }
 0x8e8   :  { %4243 = vmatpush3.bf16.msra.mxu0 %v2818_v38 }
 0x943   :  { %v3018_v23 = vpop.permute.xlu1 %3017 }
 0x944   :  { %v3013_v27 = vpop.permute.xlu0 %3012 }
 0x948   :  { %v3030_v7 = vpop.permute.xlu1 %3029 }
 0x949   :  { %v3034_v42 = vpop.permute.xlu0 %3033 }
 0x94d   :  { %v3023_v57 = vpop.permute.xlu1 %3022 }
 0x952   :  { %v3038_v47 = vpop.permute.xlu1 %3037 }
 0x9ac   :  { %v2766_v39 = vpop.f32.mrb[20].mxu1 }
 0x9ad   :  { %2772 = vst [vmem:[#allocation3 + $0x14] sm:$0xf] %v2766_v39  ;;  %v2768_v30 = vpop.f32.mrb[21].mxu1 }
 0x9ae   :  { %v2769_v3 = vpop.f32.mrb[22].mxu1 }
 0x9af   :  { %v2770_v17 = vpop.f32.mrb[23].mxu1 }
 0x9b4   :  { %v2775_v43 = vld [vmem:[#allocation3 + $0x10] sm:$0xff] }
 0x9b5   :  { %v2796_v2 = vmul.f32 %v2792_v56, %v2775_v43 }
 0x9b7   :  { %v2811_v60 = vadd.f32 %v2807_v33, %v2796_v2 }
 0x9b9   :  { %v2814_v50 = vmax.f32 %v2811_v60, 0.0 }
 0x9bb   :  { %v2819_v10 = vpack.c.bf16 %v2814_v50, %v2814_v50 }
 0x9bd   :  { %4297 = vmatprep.subr.msk.bf16.mxu0 %vm485_vm5, %v2819_v10  ;;  %v2836_v29 = vsel %vm485_vm5, %v2819_v10, 0 }
 0x9be   :  { %4245 = vmatpush3.bf16.msra.mxu0 %v2836_v29 }
 0x9bf   :  { %4250 = vmatprep.subr.bf16.mxu0 %v4414_v8 }
 0x9c1   :  { %4247 = vmatmul.mubr.msk.bf16.vlgmr.msra.gmra.mrb[24].mxu0 %vm2828_vm4, %v4413_v18 }
 0x9c2   :  { %4251 = vmatpush3.bf16.msra.mxu0 %v4414_v8 }
 0x9c3   :  { %4252 = vmatprep.subr.bf16.mxu0 %v4415_v45 }
 0x9c6   :  { %4253 = vmatpush3.bf16.msra.mxu0 %v4415_v45 }
 0x9c7   :  { %4254 = vmatprep.subr.bf16.mxu0 %v4416_v22 }
 0x9ca   :  { %4255 = vmatpush3.bf16.msra.mxu0 %v4416_v22 }
 0x9cb   :  { %4256 = vmatprep.subr.bf16.mxu0 %v4417_v41 }
 0x9ce   :  { %4257 = vmatpush3.bf16.msra.mxu0 %v4417_v41 }
 0x9cf   :  { %4258 = vmatprep.subr.bf16.mxu0 %v4418_v35 }
 0x9d2   :  { %4259 = vmatpush3.bf16.msra.mxu0 %v4418_v35 }
 0x9d3   :  { %4260 = vmatprep.subr.bf16.mxu0 %v4419_v13 }
 0x9d6   :  { %4261 = vmatpush3.bf16.msra.mxu0 %v4419_v13 }
 0x9d7   :  { %4262 = vmatprep.subr.bf16.mxu0 %v4420_v21 }
 0x9da   :  { %4263 = vmatpush3.bf16.msra.mxu0 %v4420_v21  ;;  %v6385_v21 = vld [vmem:[%s6847_s3 + $0x42] ss:$0 sm:$0xff] }
 0x9db   :  { %4264 = vmatprep.subr.bf16.mxu0 %v4421_v46 }
 0x9de   :  { %4265 = vmatpush3.bf16.msra.mxu0 %v4421_v46 }
 0xa94   :  { %v4248_v49 = vpop.f32.mrb[24].mxu0 }
 0xa95   :  { %v2872_v28 = vpop.f32.mrb[25].mxu0  ;;  %v2887_v40 = vpack.c.bf16 %v4248_v49, %v4248_v49 }
 0xa96   :  { %v4249_v14 = vpop.f32.mrb[26].mxu0 }
 0xa97   :  { %v2875_v15 = vpop.f32.mrb[27].mxu0 }
 0xa98   :  { %v2886_v51 = vpack.c.bf16 %v2875_v15, %v2872_v28  ;;  %v6395_v28 = vld [vmem:[%s6847_s3 + $0x43] ss:$0 sm:$0xff] }
 0xa9a   :  { %4266 = vmatprep.mubr.bf16.mxu0 %v2886_v51 }
 0xa9b   :  { %4267 = vmatmul.mubr.bf16.vlgmr.msra.gmra.mrb[28].mxu0 %v2887_v40 }
 0xb6e   :  { %v4268_v12 = vpop.f32.mrb[28].mxu0 }
 0xb6f   :  { %3003 = vst.msk [vmem:[#allocation4 + $0x10] sm:$0xff] %vm3000_vm6, %v4268_v12  ;;  %v2986_v32 = vpop.f32.mrb[29].mxu0 }
 0xb70   :  { %3001 = vst.msk [vmem:[#allocation4] sm:$0xff] %vm3000_vm6, %v2986_v32  ;;  %v4269_v55 = vpop.f32.mrb[30].mxu0 }
 0xb71   :  { %v2989_v25 = vpop.f32.mrb[31].mxu0 }
 0xb72   :  { %3002 = vst.msk [vmem:[#allocation4 + $0x8] sm:$0xff] %vm3000_vm6, %v2989_v25 }
 0xb76   :  { %v6244_v9 = vld [vmem:[#allocation4 + $0x10] sm:$0xff] }
 0xb77   :  { %v3027_v20 = vmul.f32 %v3023_v57, %v6244_v9  ;;  %v6247_v54 = vld [vmem:[#allocation4] sm:$0xff] }
 0xb78   :  { %v3025_v61 = vmul.f32 %v3013_v27, %v6247_v54 }
 0xb79   :  { %v3042_v44 = vadd.f32 %v3038_v47, %v3027_v20  ;;  %v6278_v26 = vld [vmem:[#allocation4 + $0x8] sm:$0xff] }
 0xb7a   :  { %v3040_v52 = vadd.f32 %v3030_v7, %v3025_v61  ;;  %v3026_v16 = vmul.f32 %v3018_v23, %v6278_v26 }
 0xb7b   :  { %v6250_v48 = vmax.f32 %v3042_v44, 0.0 }
 0xb7c   :  { %v6260_v37 = vmax.f32 %v3040_v52, 0.0  ;;  %v3041_v36 = vadd.f32 %v3034_v42, %v3026_v16  ;;  %v6415_v52 = vld [vmem:[%s6847_s3 + $0x44] ss:$0 sm:$0xff] }
 0xb7d   :  { %3062 = vrot.lane.b32.xlu1 %v6250_v48, %s4477_s9  ;;  %3053 = vrot.lane.b32.xlu0 %v6250_v48, %s4478_s19 }
 0xb7e   :  { %v6293_v34 = vmax.f32 %v3041_v36, 0.0 }
 0xb81   :  { %3079 = vrot.lane.b32.xlu1 %v6250_v48, %s4479_s17  ;;  %3105 = vrot.lane.b32.xlu0 %v6250_v48, %s4480_s18 }
 0xb85   :  { %3088 = vrot.lane.b32.xlu1 %v6250_v48, %s4481_s20  ;;  %3049 = vrot.lane.b32.xlu0 %v6260_v37, %s4478_s19 }
 0xb89   :  { %3114 = vrot.lane.b32.xlu1 %v6250_v48, %s4482_s12  ;;  %3058 = vrot.lane.b32.xlu0 %v6260_v37, %s4477_s9 }
 0xb8d   :  { %3131 = vrot.lane.b32.xlu1 %v6250_v48, %s4483_s13  ;;  %3075 = vrot.lane.b32.xlu0 %v6260_v37, %s4479_s17 }
 0xb91   :  { %3140 = vrot.lane.b32.xlu1 %v6250_v48, %s4462_s1  ;;  %3101 = vrot.lane.b32.xlu0 %v6260_v37, %s4480_s18 }
 0xb95   :  { %3084 = vrot.lane.b32.xlu1 %v6260_v37, %s4481_s20  ;;  %3110 = vrot.lane.b32.xlu0 %v6260_v37, %s4482_s12 }
 0xb99   :  { %3136 = vrot.lane.b32.xlu1 %v6260_v37, %s4462_s1  ;;  %3127 = vrot.lane.b32.xlu0 %v6260_v37, %s4483_s13 }
 0xb9d   :  { %3166 = vrot.lane.b32.xlu1 %v6260_v37, %s4484_s14  ;;  %3157 = vrot.lane.b32.xlu0 %v6260_v37, %s4464_s16 }
 0xba1   :  { %3077 = vrot.lane.b32.xlu0 %v6293_v34, %s4479_s17  ;;  %3051 = vrot.lane.b32.xlu1 %v6293_v34, %s4478_s19 }
 0xba5   :  { %3086 = vrot.lane.b32.xlu0 %v6293_v34, %s4481_s20  ;;  %3060 = vrot.lane.b32.xlu1 %v6293_v34, %s4477_s9 }
 0xba9   :  { %3183 = vrot.lane.b32.xlu0 %v6260_v37, %s4485_s21  ;;  %3161 = vrot.lane.b32.xlu1 %v6250_v48, %s4464_s16 }
 0xbad   :  { %3192 = vrot.lane.b32.xlu0 %v6260_v37, %s4486_s22  ;;  %3103 = vrot.lane.b32.xlu1 %v6293_v34, %s4480_s18 }
 0xbb1   :  { %3187 = vrot.lane.b32.xlu0 %v6250_v48, %s4485_s21  ;;  %3112 = vrot.lane.b32.xlu1 %v6293_v34, %s4482_s12 }
 0xbb5   :  { %3129 = vrot.lane.b32.xlu0 %v6293_v34, %s4483_s13  ;;  %3170 = vrot.lane.b32.xlu1 %v6250_v48, %s4484_s14 }
 0xbb9   :  { %3138 = vrot.lane.b32.xlu0 %v6293_v34, %s4462_s1  ;;  %3196 = vrot.lane.b32.xlu1 %v6250_v48, %s4486_s22 }
 0xbbd   :  { %3209 = vrot.lane.b32.xlu0 %v6260_v37, %s4487_s23  ;;  %3218 = vrot.lane.b32.xlu1 %v6260_v37, %s4488_s24 }
 0xbc1   :  { %3159 = vrot.lane.b32.xlu0 %v6293_v34, %s4464_s16  ;;  %3213 = vrot.lane.b32.xlu1 %v6250_v48, %s4487_s23 }
 0xbc5   :  { %3168 = vrot.lane.b32.xlu0 %v6293_v34, %s4484_s14  ;;  %3185 = vrot.lane.b32.xlu1 %v6293_v34, %s4485_s21 }
 0xbc9   :  { %3235 = vrot.lane.b32.xlu0 %v6260_v37, %s4489_s25  ;;  %3194 = vrot.lane.b32.xlu1 %v6293_v34, %s4486_s22 }
 0xbcd   :  { %3211 = vrot.lane.b32.xlu0 %v6293_v34, %s4487_s23  ;;  %3222 = vrot.lane.b32.xlu1 %v6250_v48, %s4488_s24 }
 0xbd1   :  { %3220 = vrot.lane.b32.xlu0 %v6293_v34, %s4488_s24  ;;  %3237 = vrot.lane.b32.xlu1 %v6293_v34, %s4489_s25 }
 0xbd5   :  { %3244 = vrot.lane.b32.xlu0 %v6260_v37, %s4490_s26  ;;  %3246 = vrot.lane.b32.xlu1 %v6293_v34, %s4490_s26 }
 0xbd9   :  { %3239 = vrot.lane.b32.xlu0 %v6250_v48, %s4489_s25  ;;  %3248 = vrot.lane.b32.xlu1 %v6250_v48, %s4490_s26 }
 0xbdd   :  { %3371 = vperm.xlu0 %4359, %v3336_v11   ;;  %3363 = vperm.xlu1 %4361, %v3334_v31  }
 0xbe1   :  { %4364 = vset.pattern.permute.xlu0 %v6920_v24  ;;  %4362 = vset.pattern.permute.xlu1 %v6920_v24 }
 0xbe2   :  { %3340 = vperm.xlu0 %4364, %v3334_v31   ;;  %3345 = vperm.xlu1 %4362, %v3335_v53   ;;  %v6425_v31 = vld [vmem:[%s6847_s3 + $0x45] ss:$0 sm:$0xff] }
 0xbe6   :  { %3350 = vperm.xlu0 %4364, %v3336_v11   ;;  %4363 = vset.pattern.permute.xlu1 %v6921_v6 }
 0xbe7   :  { %3367 = vperm.xlu1 %4363, %v3335_v53  }
 0xbeb   :  { %4365 = vset.pattern.permute.xlu1 %v6920_v24 }
 0xbec   :  { %3355 = vperm.xlu1 %4365, %v3337_v63  }
 0xbef   :  { %v3063_v62 = vpop.permute.xlu1 %3062  ;;  %v3054_v1 = vpop.permute.xlu0 %3053 }
 0xbf0   :  { %4366 = vset.pattern.permute.xlu1 %v6921_v6  ;;  %v3070_v49 = vsel %vm3067_vm8, %v3054_v1, %v3063_v62 }
 0xbf1   :  { %3375 = vperm.xlu1 %4366, %v3337_v63   ;;  %v3074_v7 = vmul.f32 %v6385_v21, %v3070_v49 }
 0xbf3   :  { %v3080_v38 = vpop.permute.xlu1 %3079  ;;  %v3106_v5 = vpop.permute.xlu0 %3105 }
 0xbf5   :  { %4367 = vset.pattern.permute.xlu1 %v6920_v24 }
 0xbf7   :  { %v3089_v39 = vpop.permute.xlu1 %3088  ;;  %v3050_v30 = vpop.permute.xlu0 %3049 }
 0xbf8   :  { %v3096_v12 = vsel %vm3093_vm10, %v3080_v38, %v3089_v39 }
 0xbf9   :  { %v3100_v47 = vmul.f32 %v6395_v28, %v3096_v12 }
 0xbfb   :  { %v3115_v3 = vpop.permute.xlu1 %3114  ;;  %v3059_v56 = vpop.permute.xlu0 %3058 }
 0xbfc   :  { %v3068_v41 = vsel %vm3067_vm8, %v3050_v30, %v3059_v56  ;;  %v3122_v11 = vsel %vm3119_vm11, %v3106_v5, %v3115_v3 }
 0xbfd   :  { %v3072_v59 = vmul.f32 %v6385_v21, %v3068_v41  ;;  %v3126_v38 = vmul.f32 %v6415_v52, %v3122_v11 }
 0xbff   :  { %v3132_v17 = vpop.permute.xlu1 %3131  ;;  %v3076_v43 = vpop.permute.xlu0 %3075 }
 0xc03   :  { %v3141_v33 = vpop.permute.xlu1 %3140  ;;  %v3102_v2 = vpop.permute.xlu0 %3101 }
 0xc04   :  { %v3148_v39 = vsel %vm3145_vm12, %v3132_v17, %v3141_v33 }
 0xc07   :  { %v3085_v60 = vpop.permute.xlu1 %3084  ;;  %v3111_v50 = vpop.permute.xlu0 %3110 }
 0xc08   :  { %v3094_v46 = vsel %vm3093_vm10, %v3076_v43, %v3085_v60  ;;  %v3120_v20 = vsel %vm3119_vm11, %v3102_v2, %v3111_v50  ;;  %v3152_v43 = vmul.f32 %v6425_v31, %v3148_v39  ;;  %v6438_v60 = vld [vmem:[%s6847_s3 + $0x46] ss:$0 sm:$0xff] }
 0xc09   :  { %v3098_v14 = vmul.f32 %v6395_v28, %v3094_v46  ;;  %v3124_v36 = vmul.f32 %v6415_v52, %v3120_v20  ;;  %v3156_v46 = vmul.f32 %v6438_v60, %v6250_v48  ;;  %v6465_v48 = vld [vmem:[%s6847_s3 + $0x60] ss:$0 sm:$0xff] }
 0xc0b   :  { %v3137_v10 = vpop.permute.xlu1 %3136  ;;  %v3128_v8 = vpop.permute.xlu0 %3127  ;;  %v3261_v32 = vpack.c.bf16 %v3098_v14, %v3074_v7  ;;  %v6474_v7 = vld [vmem:[%s6847_s3 + $0x61] ss:$0 sm:$0xff] }
 0xc0c   :  { %v3146_v16 = vsel %vm3145_vm12, %v3128_v8, %v3137_v10  ;;  %v3155_v10 = vmul.f32 %v6438_v60, %v6293_v34  ;;  %v6446_v8 = vld [vmem:[%s6847_s3 + $0x47] ss:$0 sm:$0xff] }
 0xc0d   :  { %v3150_v53 = vmul.f32 %v6425_v31, %v3146_v16 }
 0xc0f   :  { %v6377_v29 = vpop.permute.xlu1 %3166  ;;  %v6379_v18 = vpop.permute.xlu0 %3157  ;;  %v3264_v5 = vpack.c.bf16 %v3150_v53, %v3126_v38 }
 0xc13   :  { %v3078_v45 = vpop.permute.xlu0 %3077  ;;  %v3052_v22 = vpop.permute.xlu1 %3051 }
 0xc17   :  { %v3087_v35 = vpop.permute.xlu0 %3086  ;;  %v3061_v13 = vpop.permute.xlu1 %3060 }
 0xc18   :  { %v3069_v4 = vsel %vm3067_vm8, %v3052_v22, %v3061_v13  ;;  %v3095_v23 = vsel %vm3093_vm10, %v3078_v45, %v3087_v35  ;;  %v3176_v45 = vsel %vm3175_vm13, %v6379_v18, %v6377_v29  ;;  %v3154_v22 = vmul.f32 %v6438_v60, %v6260_v37 }
 0xc19   :  { %v3073_v58 = vmul.f32 %v6385_v21, %v3069_v4  ;;  %v3099_v55 = vmul.f32 %v6395_v28, %v3095_v23  ;;  %v3180_v41 = vmul.f32 %v6446_v8, %v3176_v45  ;;  %v4140_v45 = vcombine.low %v6347_v0, %v6347_v0 }
 0xc1a   :  { %v3266_v34 = vpack.c.bf16 %v3155_v10, %v3154_v22 }
 0xc1b   :  { %v3260_v15 = vpack.c.bf16 %v3073_v58, %v3072_v59  ;;  %v6398_v51 = vpop.permute.xlu0 %3183  ;;  %v3162_v40 = vpop.permute.xlu1 %3161  ;;  %v3262_v27 = vpack.c.bf16 %v3100_v47, %v3099_v55  ;;  %v3267_v29 = vpack.c.bf16 %v3180_v41, %v3156_v46 }
 0xc1d   :  { %3289 = vmatpush1.bf16.msra.mxu1 %v3260_v15 }
 0xc1e   :  { %3290 = vmatprep.subr.bf16.mxu1 %v6920_v24 }
 0xc1f   :  { %v6405_v57 = vpop.permute.xlu0 %3192  ;;  %v3104_v25 = vpop.permute.xlu1 %3103 }
 0xc20   :  { %v3202_v14 = vsel %vm3201_vm14, %v6398_v51, %v6405_v57 }
 0xc21   :  { %3291 = vmatpush1.bf16.msra.mxu1 %v3261_v32  ;;  %v3206_v55 = vmul.f32 %v6465_v48, %v3202_v14 }
 0xc22   :  { %3292 = vmatprep.subr.bf16.mxu1 %v6920_v24 }
 0xc23   :  { %v6410_v44 = vpop.permute.xlu0 %3187  ;;  %v3113_v61 = vpop.permute.xlu1 %3112 }
 0xc24   :  { %v3121_v42 = vsel %vm3119_vm11, %v3104_v25, %v3113_v61 }
 0xc25   :  { %v3125_v19 = vmul.f32 %v6415_v52, %v3121_v42  ;;  %3293 = vmatpush1.bf16.msra.mxu1 %v3262_v27 }
 0xc26   :  { %3294 = vmatprep.subr.bf16.mxu1 %v6920_v24 }
 0xc27   :  { %v3263_v63 = vpack.c.bf16 %v3125_v19, %v3124_v36  ;;  %v3130_v62 = vpop.permute.xlu0 %3129  ;;  %v3171_v1 = vpop.permute.xlu1 %3170 }
 0xc28   :  { %v3178_v4 = vsel %vm3175_vm13, %v3162_v40, %v3171_v1 }
 0xc29   :  { %3295 = vmatpush1.bf16.msra.mxu1 %v3263_v63  ;;  %v3182_v58 = vmul.f32 %v6446_v8, %v3178_v4  ;;  %v6493_v63 = vld [vmem:[%s6847_s3 + $0x62] ss:$0 sm:$0xff] }
 0xc2a   :  { %3296 = vmatprep.subr.bf16.mxu1 %v6920_v24 }
 0xc2b   :  { %v3139_v30 = vpop.permute.xlu0 %3138  ;;  %v3197_v3 = vpop.permute.xlu1 %3196 }
 0xc2c   :  { %v3147_v56 = vsel %vm3145_vm12, %v3130_v62, %v3139_v30  ;;  %v3204_v51 = vsel %vm3201_vm14, %v6410_v44, %v3197_v3 }
 0xc2d   :  { %v3151_v2 = vmul.f32 %v6425_v31, %v3147_v56  ;;  %3297 = vmatpush1.bf16.msra.mxu1 %v3264_v5  ;;  %v3208_v61 = vmul.f32 %v6465_v48, %v3204_v51 }
 0xc2e   :  { %3298 = vmatprep.subr.bf16.mxu1 %v6920_v24 }
 0xc2f   :  { %v3265_v17 = vpack.c.bf16 %v3152_v43, %v3151_v2  ;;  %v3210_v33 = vpop.permute.xlu0 %3209  ;;  %v3219_v50 = vpop.permute.xlu1 %3218 }
 0xc30   :  { %v3228_v12 = vsel %vm3227_vm2, %v3210_v33, %v3219_v50 }
 0xc31   :  { %3299 = vmatpush1.bf16.msra.mxu1 %v3265_v17  ;;  %v3232_v57 = vmul.f32 %v6474_v7, %v3228_v12 }
 0xc32   :  { %3300 = vmatprep.subr.bf16.mxu1 %v6920_v24 }
 0xc33   :  { %v3160_v35 = vpop.permute.xlu0 %3159  ;;  %v3214_v13 = vpop.permute.xlu1 %3213  ;;  %v3270_v42 = vpack.c.bf16 %v3232_v57, %v3208_v61 }
 0xc35   :  { %3301 = vmatpush1.bf16.msra.mxu1 %v3266_v34 }
 0xc36   :  { %3302 = vmatprep.subr.bf16.mxu1 %v6920_v24 }
 0xc37   :  { %v3169_v18 = vpop.permute.xlu0 %3168  ;;  %v3186_v59 = vpop.permute.xlu1 %3185 }
 0xc38   :  { %v3177_v37 = vsel %vm3175_vm13, %v3160_v35, %v3169_v18 }
 0xc39   :  { %v3181_v49 = vmul.f32 %v6446_v8, %v3177_v37  ;;  %3303 = vmatpush1.bf16.msra.mxu1 %v3267_v29 }
 0xc3a   :  { %3304 = vmatprep.subr.bf16.mxu1 %v6920_v24 }
 0xc3b   :  { %v3268_v15 = vpack.c.bf16 %v3182_v58, %v3181_v49  ;;  %v3236_v40 = vpop.permute.xlu0 %3235  ;;  %v3195_v23 = vpop.permute.xlu1 %3194 }
 0xc3c   :  { %v3203_v32 = vsel %vm3201_vm14, %v3186_v59, %v3195_v23 }
 0xc3d   :  { %v3207_v25 = vmul.f32 %v6465_v48, %v3203_v32  ;;  %3305 = vmatpush1.bf16.msra.mxu1 %v3268_v15 }
 0xc3e   :  { %3306 = vmatprep.subr.bf16.mxu1 %v6920_v24 }
 0xc3f   :  { %v3269_v47 = vpack.c.bf16 %v3207_v25, %v3206_v55  ;;  %v3212_v20 = vpop.permute.xlu0 %3211  ;;  %v3223_v27 = vpop.permute.xlu1 %3222 }
 0xc40   :  { %v3230_v16 = vsel %vm3227_vm2, %v3214_v13, %v3223_v27 }
 0xc41   :  { %3307 = vmatpush1.bf16.msra.mxu1 %v3269_v47  ;;  %v3234_v44 = vmul.f32 %v6474_v7, %v3230_v16 }
 0xc42   :  { %3308 = vmatprep.subr.bf16.mxu1 %v6920_v24 }
 0xc43   :  { %v3221_v36 = vpop.permute.xlu0 %3220  ;;  %v3238_v19 = vpop.permute.xlu1 %3237 }
 0xc44   :  { %v3229_v11 = vsel %vm3227_vm2, %v3212_v20, %v3221_v36 }
 0xc45   :  { %v3233_v53 = vmul.f32 %v6474_v7, %v3229_v11  ;;  %3309 = vmatpush1.bf16.msra.mxu1 %v3270_v42 }
 0xc46   :  { %3310 = vmatprep.subr.bf16.mxu1 %v6920_v24 }
 0xc47   :  { %v3271_v62 = vpack.c.bf16 %v3234_v44, %v3233_v53  ;;  %v3245_v1 = vpop.permute.xlu0 %3244  ;;  %v3247_v38 = vpop.permute.xlu1 %3246 }
 0xc48   :  { %v3253_v39 = vsel %vm514_vm15, %v3236_v40, %v3245_v1  ;;  %v3254_v5 = vsel %vm514_vm15, %v3238_v19, %v3247_v38 }
 0xc49   :  { %v3257_v30 = vmul.f32 %v6493_v63, %v3253_v39  ;;  %v3258_v3 = vmul.f32 %v6493_v63, %v3254_v5  ;;  %3311 = vmatpush1.bf16.msra.mxu1 %v3271_v62 }
 0xc4a   :  { %3312 = vmatprep.subr.bf16.mxu1 %v6920_v24 }
 0xc4b   :  { %v3272_v56 = vpack.c.bf16 %v3258_v3, %v3257_v30  ;;  %v3240_v43 = vpop.permute.xlu0 %3239  ;;  %v3249_v2 = vpop.permute.xlu1 %3248 }
 0xc4c   :  { %v3255_v17 = vsel %vm514_vm15, %v3240_v43, %v3249_v2 }
 0xc4d   :  { %v3259_v33 = vmul.f32 %v6493_v63, %v3255_v17  ;;  %3313 = vmatpush1.bf16.msra.mxu1 %v3272_v56 }
 0xc4e   :  { %3314 = vmatprep.subr.bf16.mxu1 %v6920_v24 }
 0xc4f   :  { %v3273_v50 = vpack.c.bf16 %v3259_v33, %v3259_v33 }
 0xc51   :  { %v3286_v10 = vsel %vm485_vm5, %v3273_v50, 0 }
 0xc52   :  { %3315 = vmatpush1.bf16.msra.mxu1 %v3286_v10 }
 0xc55   :  { %3321 = vmatmul.mubr.bf16.vlgmr.msra.gmra.mrb[24].mxu1 %v4140_v45 }
 0xc5c   :  { %v3372_v22 = vpop.permute.xlu0 %3371  ;;  %v3364_v13 = vpop.permute.xlu1 %3363 }
 0xc61   :  { %v3341_v41 = vpop.permute.xlu0 %3340 }
 0xc62   :  { %v3358_v35 = vmul.f32 %v3341_v41, %v6247_v54 }
 0xc64   :  { %v3378_v34 = vadd.f32 %v3364_v13, %v3358_v35 }
 0xc65   :  { %v3351_v46 = vpop.permute.xlu0 %3350 }
 0xc66   :  { %v6508_v4 = vmax.f32 %v3378_v34, 0.0  ;;  %v3360_v29 = vmul.f32 %v3351_v46, %v6244_v9  ;;  %v3346_v9 = vpop.permute.xlu1 %3345 }
 0xc67   :  { %v3359_v18 = vmul.f32 %v3346_v9, %v6278_v26 }
 0xc68   :  { %v3380_v24 = vadd.f32 %v3372_v22, %v3360_v29  ;;  %3539 = vrot.lane.b32.xlu1 %v6508_v4, %s4484_s14  ;;  %3527 = vrot.lane.b32.xlu0 %v6508_v4, %s4464_s16 }
 0xc6a   :  { %v6515_v0 = vmax.f32 %v3380_v24, 0.0  ;;  %v3368_v54 = vpop.permute.xlu1 %3367 }
 0xc6b   :  { %v3379_v59 = vadd.f32 %v3368_v54, %v3359_v18 }
 0xc6c   :  { %3531 = vrot.lane.b32.xlu1 %v6515_v0, %s4464_s16  ;;  %3390 = vrot.lane.b32.xlu0 %v6508_v4, %s4478_s19 }
 0xc6d   :  { %v6566_v37 = vmax.f32 %v3379_v59, 0.0 }
 0xc6e   :  { %v6604_v26 = vpop.permute.xlu1 %3355 }
 0xc70   :  { %3543 = vrot.lane.b32.xlu1 %v6515_v0, %s4484_s14  ;;  %3402 = vrot.lane.b32.xlu0 %v6508_v4, %s4477_s9 }
 0xc72   :  { %v6606_v58 = vpop.permute.xlu1 %3375 }
 0xc74   :  { %3435 = vrot.lane.b32.xlu1 %v6508_v4, %s4481_s20  ;;  %3423 = vrot.lane.b32.xlu0 %v6508_v4, %s4479_s17 }
 0xc78   :  { %3406 = vrot.lane.b32.xlu1 %v6515_v0, %s4477_s9  ;;  %3394 = vrot.lane.b32.xlu0 %v6515_v0, %s4478_s19 }
 0xc7c   :  { %3427 = vrot.lane.b32.xlu1 %v6515_v0, %s4479_s17  ;;  %3560 = vrot.lane.b32.xlu0 %v6508_v4, %s4485_s21 }
 0xc80   :  { %3439 = vrot.lane.b32.xlu1 %v6515_v0, %s4481_s20  ;;  %3456 = vrot.lane.b32.xlu0 %v6508_v4, %s4480_s18 }
 0xc84   :  { %3572 = vrot.lane.b32.xlu1 %v6508_v4, %s4486_s22  ;;  %3593 = vrot.lane.b32.xlu0 %v6508_v4, %s4487_s23 }
 0xc88   :  { %3564 = vrot.lane.b32.xlu1 %v6515_v0, %s4485_s21  ;;  %3605 = vrot.lane.b32.xlu0 %v6508_v4, %s4488_s24 }
 0xc8c   :  { %3576 = vrot.lane.b32.xlu1 %v6515_v0, %s4486_s22  ;;  %3597 = vrot.lane.b32.xlu0 %v6515_v0, %s4487_s23 }
 0xc90   :  { %3468 = vrot.lane.b32.xlu1 %v6508_v4, %s4482_s12  ;;  %3609 = vrot.lane.b32.xlu0 %v6515_v0, %s4488_s24 }
 0xc94   :  { %3460 = vrot.lane.b32.xlu1 %v6515_v0, %s4480_s18  ;;  %3489 = vrot.lane.b32.xlu0 %v6508_v4, %s4483_s13 }
 0xc98   :  { %3472 = vrot.lane.b32.xlu1 %v6515_v0, %s4482_s12  ;;  %3501 = vrot.lane.b32.xlu0 %v6508_v4, %s4462_s1 }
 0xc9c   :  { %3493 = vrot.lane.b32.xlu0 %v6515_v0, %s4483_s13  ;;  %3392 = vrot.lane.b32.xlu1 %v6566_v37, %s4478_s19 }
 0xca0   :  { %3505 = vrot.lane.b32.xlu0 %v6515_v0, %s4462_s1  ;;  %3404 = vrot.lane.b32.xlu1 %v6566_v37, %s4477_s9 }
 0xca4   :  { %3626 = vrot.lane.b32.xlu0 %v6508_v4, %s4489_s25  ;;  %3595 = vrot.lane.b32.xlu1 %v6566_v37, %s4487_s23 }
 0xca8   :  { %3529 = vrot.lane.b32.xlu0 %v6566_v37, %s4464_s16  ;;  %3607 = vrot.lane.b32.xlu1 %v6566_v37, %s4488_s24 }
 0xcac   :  { %3541 = vrot.lane.b32.xlu0 %v6566_v37, %s4484_s14  ;;  %3491 = vrot.lane.b32.xlu1 %v6566_v37, %s4483_s13 }
 0xcb0   :  { %3425 = vrot.lane.b32.xlu0 %v6566_v37, %s4479_s17  ;;  %3503 = vrot.lane.b32.xlu1 %v6566_v37, %s4462_s1 }
 0xcb4   :  { %3437 = vrot.lane.b32.xlu0 %v6566_v37, %s4481_s20  ;;  %3628 = vrot.lane.b32.xlu1 %v6566_v37, %s4489_s25 }
 0xcb8   :  { %3562 = vrot.lane.b32.xlu0 %v6566_v37, %s4485_s21 }
 0xcbc   :  { %3574 = vrot.lane.b32.xlu0 %v6566_v37, %s4486_s22 }
 0xcc0   :  { %3458 = vrot.lane.b32.xlu0 %v6566_v37, %s4480_s18 }
 0xcc4   :  { %3470 = vrot.lane.b32.xlu0 %v6566_v37, %s4482_s12 }
 0xcda   :  { %v6608_v49 = vpop.permute.xlu0 %3527  ;;  %v3540_v14 = vpop.permute.xlu1 %3539 }
 0xcde   :  { %v6610_v15 = vpop.permute.xlu0 %3390  ;;  %v3532_v40 = vpop.permute.xlu1 %3531 }
 0xce2   :  { %v6612_v23 = vpop.permute.xlu0 %3402  ;;  %v3544_v12 = vpop.permute.xlu1 %3543 }
 0xce6   :  { %v3424_v32 = vpop.permute.xlu0 %3423  ;;  %v3436_v55 = vpop.permute.xlu1 %3435 }
 0xce7   :  { %v3447_v25 = vsel %vm3093_vm10, %v3424_v32, %v3436_v55 }
 0xce8   :  { %v6646_v29 = vmul.f32 %v3447_v25, %v6395_v28 }
 0xcea   :  { %v3395_v51 = vpop.permute.xlu0 %3394  ;;  %v3407_v57 = vpop.permute.xlu1 %3406  ;;  %v3663_v55 = vrot.slane %v6646_v29, 4 }
 0xceb   :  { %v6616_v47 = vsel %vm3067_vm8, %v3395_v51, %v3407_v57 }
 0xcee   :  { %v3561_v20 = vpop.permute.xlu0 %3560  ;;  %v3428_v27 = vpop.permute.xlu1 %3427 }
 0xcf2   :  { %v3457_v61 = vpop.permute.xlu0 %3456  ;;  %v3440_v16 = vpop.permute.xlu1 %3439 }
 0xcf3   :  { %v3449_v42 = vsel %vm3093_vm10, %v3428_v27, %v3440_v16 }
 0xcf4   :  { %v6649_v24 = vmul.f32 %v3449_v42, %v6395_v28 }
 0xcf6   :  { %v3594_v36 = vpop.permute.xlu0 %3593  ;;  %v3573_v19 = vpop.permute.xlu1 %3572  ;;  %v3666_v51 = vrot.slane %v6649_v24, 4 }
 0xcf7   :  { %v6620_v11 = vsel %vm3201_vm14, %v3561_v20, %v3573_v19  ;;  %v3551_v19 = vsel %vm3175_vm13, %v6608_v49, %v3540_v14  ;;  %v3414_v49 = vsel %vm3067_vm8, %v6610_v15, %v6612_v23 }
 0xcfa   :  { %v3606_v44 = vpop.permute.xlu0 %3605  ;;  %v3565_v53 = vpop.permute.xlu1 %3564 }
 0xcfb   :  { %v6623_v62 = vsel %vm3227_vm2, %v3594_v36, %v3606_v44  ;;  %v3553_v44 = vsel %vm3175_vm13, %v3532_v40, %v3544_v12 }
 0xcfe   :  { %v3598_v1 = vpop.permute.xlu0 %3597  ;;  %v3577_v38 = vpop.permute.xlu1 %3576 }
 0xcff   :  { %v6626_v39 = vsel %vm3201_vm14, %v3565_v53, %v3577_v38 }
 0xd02   :  { %v3610_v5 = vpop.permute.xlu0 %3609  ;;  %v3469_v30 = vpop.permute.xlu1 %3468 }
 0xd03   :  { %v6629_v3 = vsel %vm3227_vm2, %v3598_v1, %v3610_v5  ;;  %v6632_v56 = vsel %vm3119_vm11, %v3457_v61, %v3469_v30  ;;  %v3556_v30 = vmul.f32 %v3551_v19, %v6446_v8 }
 0xd05   :  { %v3693_v14 = vrot.slane %v3556_v30, 4 }
 0xd06   :  { %v3490_v43 = vpop.permute.xlu0 %3489  ;;  %v3461_v2 = vpop.permute.xlu1 %3460 }
 0xd0a   :  { %v3502_v17 = vpop.permute.xlu0 %3501  ;;  %v3473_v33 = vpop.permute.xlu1 %3472 }
 0xd0b   :  { %v6635_v50 = vsel %vm3145_vm12, %v3490_v43, %v3502_v17  ;;  %v6638_v10 = vsel %vm3119_vm11, %v3461_v2, %v3473_v33  ;;  %v6676_v43 = vmul.f32 %v3553_v44, %v6446_v8 }
 0xd0d   :  { %v3696_v40 = vrot.slane %v6676_v43, 4 }
 0xd0e   :  { %v3494_v45 = vpop.permute.xlu0 %3493  ;;  %v3393_v20 = vpop.permute.xlu1 %3392 }
 0xd12   :  { %v3506_v22 = vpop.permute.xlu0 %3505  ;;  %v3405_v1 = vpop.permute.xlu1 %3404 }
 0xd13   :  { %v6641_v41 = vsel %vm3145_vm12, %v3494_v45, %v3506_v22  ;;  %v3415_v17 = vsel %vm3067_vm8, %v3393_v20, %v3405_v1  ;;  %v3419_v22 = vmul.f32 %v3414_v49, %v6385_v21 }
 0xd16   :  { %v6643_v35 = vpop.permute.xlu0 %3626  ;;  %v3596_v20 = vpop.permute.xlu1 %3595 }
 0xd1a   :  { %v3530_v13 = vpop.permute.xlu0 %3529 }
 0xd1e   :  { %v3542_v34 = vpop.permute.xlu0 %3541 }
 0xd1f   :  { %v3552_v36 = vsel %vm3175_vm13, %v3530_v13, %v3542_v34 }
 0xd20   :  { %v3557_v38 = vmul.f32 %v3552_v36, %v6446_v8 }
 0xd22   :  { %v3426_v46 = vpop.permute.xlu0 %3425  ;;  %v3694_v33 = vrot.slane %v3557_v38, 4 }
 0xd24   :  { %v3695_v15 = vsel %vm485_vm5, %v3693_v14, %v3694_v33  ;;  %v3697_v23 = vsel %vm485_vm5, %v3694_v33, %v3696_v40 }
 0xd26   :  { %v3438_v9 = vpop.permute.xlu0 %3437 }
 0xd27   :  { %v3448_v54 = vsel %vm3093_vm10, %v3426_v46, %v3438_v9  ;;  %v3732_v9 = vpack.c.bf16 %v3697_v23, %v3695_v15 }
 0xd28   :  { %v3453_v18 = vmul.f32 %v3448_v54, %v6395_v28  ;;  %v3322_v59 = vpop.f32.mrb[24].mxu1  ;;  %v3800_v54 = vld [vmem:[%s6846_s2 + $0x94] sm:$0xff] }
 0xd29   :  { %3329 = vst.msk [vmem:[#allocation4 + $0x18] sm:$0xf] %vm3328_vm0, %v3322_v59  ;;  %v3324_v32 = vpop.f32.mrb[25].mxu1  ;;  %v6721_v59 = vld [vmem:[#allocation5 + $0x40] sm:$0xcc] }
 0xd2a   :  { %v3664_v57 = vrot.slane %v3453_v18, 4  ;;  %v3325_v25 = vpop.f32.mrb[26].mxu1  ;;  %v3803_v18 = vld [vmem:[%s6846_s2 + $0xac] sm:$0xff]  ;;  %v4144_v32 = vcombine.high %v6721_v59, %v6721_v59  ;;  %v3563_v36 = vpop.permute.xlu0 %3562 }
 0xd2b   :  { %v3326_v27 = vpop.f32.mrb[27].mxu1  ;;  %v3802_v25 = vld [vmem:[%s6846_s2 + $0xa4] sm:$0xff] }
 0xd2c   :  { %v6659_v61 = vsel %vm485_vm5, %v3663_v55, %v3664_v57  ;;  %v6664_v16 = vsel %vm485_vm5, %v3664_v57, %v3666_v51  ;;  %v3801_v57 = vld [vmem:[%s6846_s2 + $0x9c] sm:$0xff]  ;;  %v3608_v27 = vpop.permute.xlu1 %3607 }
 0xd2d   :  { %v3725_v42 = vpack.c.bf16 %v6664_v16, %v6659_v61 }
 0xd2e   :  { %v3575_v44 = vpop.permute.xlu0 %3574 }
 0xd30   :  { %v3333_v53 = vld [vmem:[#allocation4 + $0x18] sm:$0xf]  ;;  %v3492_v19 = vpop.permute.xlu1 %3491 }
 0xd31   :  { %v3361_v5 = vmul.f32 %v6604_v26, %v3333_v53  ;;  %v3420_v26 = vmul.f32 %v3415_v17, %v6385_v21 }
 0xd32   :  { %v3459_v1 = vpop.permute.xlu0 %3458 }
 0xd33   :  { %v3381_v2 = vadd.f32 %v6606_v58, %v3361_v5  ;;  %v3525_v58 = vmul.f32 %v6515_v0, %v6438_v60  ;;  %v3723_v46 = vpack.c.bf16 %v3420_v26, %v3419_v22 }
 0xd34   :  { %v3504_v53 = vpop.permute.xlu1 %3503 }
 0xd35   :  { %v3385_v45 = vmax.f32 %v3381_v2, 0.0 }
 0xd36   :  { %v3471_v5 = vpop.permute.xlu0 %3470 }
 0xd37   :  { %3408 = vrot.lane.b32.xlu1 %v3385_v45, %s4477_s9  ;;  %3396 = vrot.lane.b32.xlu0 %v3385_v45, %s4478_s19  ;;  %v3526_v12 = vmul.f32 %v3385_v45, %v6438_v60 }
 0xd38   :  { %v6736_v38 = vpop.permute.xlu1 %3628 }
 0xd39   :  { %v3721_v13 = vsel %vm485_vm5, %v3526_v12, %v3693_v14 }
 0xd3a   :  { %v3731_v34 = vpack.c.bf16 %v3721_v13, %v3525_v58  ;;  %v3585_v58 = vsel %vm3201_vm14, %v3563_v36, %v3575_v44  ;;  %v3514_v36 = vsel %vm3145_vm12, %v3492_v19, %v3504_v53 }
 0xd3b   :  { %3545 = vrot.lane.b32.xlu1 %v3385_v45, %s4484_s14  ;;  %3533 = vrot.lane.b32.xlu0 %v3385_v45, %s4464_s16  ;;  %v3590_v29 = vmul.f32 %v3585_v58, %v6465_v48 }
 0xd3c   :  { %4210 = vmatprep.subr.bf16.mxu0 %v3731_v34 }
 0xd3d   :  { %4211 = vmatpush3.bf16.msra.mxu0 %v3723_v46 }
 0xd3e   :  { %4212 = vmatprep.subr.bf16.mxu0 %v3732_v9 }
 0xd3f   :  { %3441 = vrot.lane.b32.xlu1 %v3385_v45, %s4481_s20  ;;  %3429 = vrot.lane.b32.xlu0 %v3385_v45, %s4479_s17 }
 0xd43   :  { %3640 = vrot.lane.b32.xlu1 %v6566_v37, %s4490_s26  ;;  %3566 = vrot.lane.b32.xlu0 %v3385_v45, %s4485_s21 }
 0xd47   :  { %3578 = vrot.lane.b32.xlu1 %v3385_v45, %s4486_s22  ;;  %3638 = vrot.lane.b32.xlu0 %v6508_v4, %s4490_s26 }
 0xd4b   :  { %3599 = vrot.lane.b32.xlu1 %v3385_v45, %s4487_s23  ;;  %3462 = vrot.lane.b32.xlu0 %v3385_v45, %s4480_s18 }
 0xd4f   :  { %3611 = vrot.lane.b32.xlu1 %v3385_v45, %s4488_s24  ;;  %3630 = vrot.lane.b32.xlu0 %v6515_v0, %s4489_s25 }
 0xd53   :  { %3474 = vrot.lane.b32.xlu1 %v3385_v45, %s4482_s12  ;;  %3642 = vrot.lane.b32.xlu0 %v6515_v0, %s4490_s26  ;;  %v3746_v0 = vrot.slane %v4144_v32, 2  ;;  %v3485_v32 = vmul.f32 %v6632_v56, %v6415_v52 }
 0xd55   :  { %4145 = vmatprep.mubr.msk.bf16.mxu0 %vm3748_vm1, %v3746_v0 }
 0xd57   :  { %3495 = vrot.lane.b32.xlu1 %v3385_v45, %s4483_s13  ;;  %3806 = vperm.xlu0 %4364, %v3800_v54  }
 0xd5b   :  { %3507 = vrot.lane.b32.xlu1 %v3385_v45, %s4462_s1  ;;  %3821 = vperm.xlu0 %4364, %v3803_v18  }
 0xd5f   :  { %3632 = vrot.lane.b32.xlu1 %v3385_v45, %s4489_s25  ;;  %4369 = vset.pattern.permute.xlu0 %v6921_v6 }
 0xd60   :  { %3833 = vperm.xlu0 %4369, %v3801_v57  }
 0xd63   :  { %3644 = vrot.lane.b32.xlu1 %v3385_v45, %s4490_s26 }
 0xd67   :  { %3811 = vperm.xlu1 %4367, %v3801_v57  }
 0xd6b   :  { %3816 = vperm.xlu1 %4367, %v3802_v25  }
 0xd6f   :  { %4368 = vset.pattern.permute.xlu1 %v6921_v6  ;;  %v3421_v6 = vmul.f32 %v6616_v47, %v6385_v21  ;;  %v3618_v47 = vsel %vm3227_vm2, %v3596_v20, %v3608_v27 }
 0xd70   :  { %3829 = vperm.xlu1 %4368, %v3800_v54   ;;  %v3623_v54 = vmul.f32 %v3618_v47, %v6474_v7 }
 0xd72   :  { %v3709_v57 = vrot.slane %v3623_v54, 4 }
 0xd74   :  { %3837 = vperm.xlu1 %4368, %v3802_v25  }
 0xd78   :  { %3841 = vperm.xlu1 %4368, %v3803_v18  }
 0xda9   :  { %v3409_v30 = vpop.permute.xlu1 %3408  ;;  %v3397_v2 = vpop.permute.xlu0 %3396 }
 0xdaa   :  { %v3417_v17 = vsel %vm3067_vm8, %v3397_v2, %v3409_v30  ;;  %v3624_v30 = vmul.f32 %v6629_v3, %v6474_v7 }
 0xdab   :  { %v3422_v33 = vmul.f32 %v3417_v17, %v6385_v21  ;;  %v3589_v21 = vmul.f32 %v6620_v11, %v6465_v48 }
 0xdac   :  { %v3711_v53 = vrot.slane %v3624_v30, 4  ;;  %v4426_v30 = vld [vmem:[%s6848_s4 + $0x140] sm:$0xff]  }
 0xdad   :  { %v3719_v45 = vsel %vm485_vm5, %v3422_v33, %v3663_v55  ;;  %v3546_v49 = vpop.permute.xlu1 %3545  ;;  %v3534_v14 = vpop.permute.xlu0 %3533  ;;  %4270 = vmatprep.subr.bf16.mxu1 %v4426_v30 }
 0xdae   :  { %v3554_v26 = vsel %vm3175_vm13, %v3534_v14, %v3546_v49  ;;  %v3724_v12 = vpack.c.bf16 %v3719_v45, %v3421_v6  ;;  %4271 = vmatpush3.bf16.msra.mxu1 %v4426_v30 }
 0xdaf   :  { %v3559_v22 = vmul.f32 %v3554_v26, %v6446_v8  ;;  %v3591_v8 = vmul.f32 %v6626_v39, %v6465_v48  ;;  %v3481_v39 = vsel %vm3119_vm11, %v3459_v1, %v3471_v5 }
 0xdb0   :  { %4213 = vmatpush3.bf16.msra.mxu0 %v3724_v12 }
 0xdb1   :  { %v3698_v13 = vrot.slane %v3559_v22, 4  ;;  %v3442_v15 = vpop.permute.xlu1 %3441  ;;  %v3430_v23 = vpop.permute.xlu0 %3429  ;;  %v3734_v0 = vpack.c.bf16 %v3591_v8, %v3590_v29 }
 0xdb2   :  { %v3450_v55 = vsel %vm3093_vm10, %v3430_v23, %v3442_v15 }
 0xdb3   :  { %v3455_v34 = vmul.f32 %v3450_v55, %v6395_v28  ;;  %v3699_v46 = vsel %vm485_vm5, %v3696_v40, %v3698_v13  ;;  %v3622_v28 = vmul.f32 %v6623_v62, %v6474_v7  ;;  %v3486_v62 = vmul.f32 %v3481_v39, %v6415_v52 }
 0xdb4   :  { %v3733_v9 = vpack.c.bf16 %v3589_v21, %v3699_v46  ;;  %v3524_v39 = vmul.f32 %v6566_v37, %v6438_v60 }
 0xdb5   :  { %v3668_v18 = vrot.slane %v3455_v34, 4  ;;  %v3641_v11 = vpop.permute.xlu1 %3640  ;;  %v3567_v25 = vpop.permute.xlu0 %3566  ;;  %v3708_v27 = vrot.slane %v3622_v28, 4 }
 0xdb6   :  { %4214 = vmatprep.subr.bf16.mxu0 %v3733_v9  ;;  %v3651_v26 = vsel %vm514_vm15, %v6736_v38, %v3641_v11 }
 0xdb7   :  { %v3669_v43 = vsel %vm485_vm5, %v3666_v51, %v3668_v18  ;;  %4215 = vmatpush3.bf16.msra.mxu0 %v3725_v42  ;;  %v3487_v51 = vmul.f32 %v6638_v10, %v6415_v52  ;;  %v3710_v16 = vsel %vm485_vm5, %v3708_v27, %v3709_v57  ;;  %v3518_v10 = vmul.f32 %v6635_v50, %v6425_v31 }
 0xdb8   :  { %4216 = vmatprep.subr.bf16.mxu0 %v3734_v0  ;;  %v3726_v40 = vpack.c.bf16 %v3485_v32, %v3669_v43  ;;  %v3656_v15 = vmul.f32 %v3651_v26, %v6493_v63 }
 0xdb9   :  { %v3579_v56 = vpop.permute.xlu1 %3578  ;;  %v3727_v1 = vpack.c.bf16 %v3487_v51, %v3486_v62  ;;  %v3639_v5 = vpop.permute.xlu0 %3638  ;;  %v3678_v3 = vrot.slane %v3518_v10, 4  ;;  %v3797_v51 = vld [vmem:[#allocation4 + $0x8] sm:$0xff] }
 0xdba   :  { %v3587_v20 = vsel %vm3201_vm14, %v3567_v25, %v3579_v56  ;;  %v3650_v19 = vsel %vm514_vm15, %v6643_v35, %v3639_v5  ;;  %v3523_v25 = vmul.f32 %v6508_v4, %v6438_v60 }
 0xdbb   :  { %v3592_v24 = vmul.f32 %v3587_v20, %v6465_v48  ;;  %4217 = vmatpush3.bf16.msra.mxu0 %v3726_v40  ;;  %v3519_v48 = vmul.f32 %v3514_v36, %v6425_v31  ;;  %v3655_v50 = vmul.f32 %v3650_v19, %v6493_v63 }
 0xdbc   :  { %v3730_v20 = vpack.c.bf16 %v3524_v39, %v3523_v25 }
 0xdbd   :  { %v3600_v61 = vpop.permute.xlu1 %3599  ;;  %v3722_v42 = vsel %vm485_vm5, %v3592_v24, %v3708_v27  ;;  %v3679_v6 = vrot.slane %v3519_v48, 4  ;;  %v3463_v45 = vpop.permute.xlu0 %3462  ;;  %v3737_v29 = vpack.c.bf16 %v3656_v15, %v3655_v50  ;;  %v4427_v48 = vld [vmem:[%s6848_s4 + $0x148] sm:$0xff]  }
 0xdbe   :  { %v3735_v44 = vpack.c.bf16 %v3710_v16, %v3722_v42  ;;  %v3796_v42 = vld [vmem:[#allocation4] sm:$0xff]  ;;  %4272 = vmatprep.subr.bf16.mxu1 %v4427_v48 }
 0xdbf   :  { %v3680_v13 = vsel %vm485_vm5, %v3678_v3, %v3679_v6  ;;  %4273 = vmatpush3.bf16.msra.mxu1 %v4427_v48 }
 0xdc0   :  { %4218 = vmatprep.subr.bf16.mxu0 %v3735_v44 }
 0xdc1   :  { %v3612_v2 = vpop.permute.xlu1 %3611  ;;  %4219 = vmatpush3.bf16.msra.mxu0 %v3727_v1  ;;  %v3631_v47 = vpop.permute.xlu0 %3630 }
 0xdc2   :  { %v3620_v17 = vsel %vm3227_vm2, %v3600_v61, %v3612_v2 }
 0xdc3   :  { %v3625_v33 = vmul.f32 %v3620_v17, %v6474_v7  ;;  %v3712_v7 = vsel %vm485_vm5, %v3709_v57, %v3711_v53  ;;  %v4143_v57 = vcombine.low %v6721_v59, %v6721_v59 }
 0xdc5   :  { %v3713_v49 = vrot.slane %v3625_v33, 4  ;;  %v3475_v14 = vpop.permute.xlu1 %3474  ;;  %v3643_v9 = vpop.permute.xlu0 %3642  ;;  %v3745_v27 = vrot.slane %v4143_v57, 2 }
 0xdc6   :  { %v3483_v12 = vsel %vm3119_vm11, %v3463_v45, %v3475_v14  ;;  %v3652_v0 = vsel %vm514_vm15, %v3631_v47, %v3643_v9 }
 0xdc7   :  { %v3488_v58 = vmul.f32 %v3483_v12, %v6415_v52  ;;  %v3714_v22 = vsel %vm485_vm5, %v3711_v53, %v3713_v49  ;;  %v3520_v52 = vmul.f32 %v6641_v41, %v6425_v31  ;;  %v3798_v53 = vld [vmem:[#allocation4 + $0x10] sm:$0xff] }
 0xdc8   :  { %v3736_v35 = vpack.c.bf16 %v3714_v22, %v3712_v7  ;;  %v3925_v22 = vld [vmem:[%s6849_s5] sm:$0xff] }
 0xdc9   :  { %v3720_v23 = vsel %vm485_vm5, %v3488_v58, %v3678_v3  ;;  %v3496_v21 = vpop.permute.xlu1 %3495  ;;  %v3681_v8 = vrot.slane %v3520_v52, 4 }
 0xdca   :  { %4220 = vmatprep.subr.bf16.mxu0 %v3736_v35  ;;  %v3728_v38 = vpack.c.bf16 %v3680_v13, %v3720_v23  ;;  %v3926_v35 = vld [vmem:[%s6849_s5 + $0x8] sm:$0xff]  ;;  %v4491_v13 = vmov 32  }
 0xdcb   :  { %v3682_v11 = vsel %vm485_vm5, %v3679_v6, %v3681_v8  ;;  %4371 = vset.pattern.permute.xlu1 %v4491_v13  ;;  %4370 = vset.pattern.permute.xlu0 %v4491_v13 }
 0xdcc   :  { %4221 = vmatpush3.bf16.msra.mxu0 %v3728_v38  ;;  %3934 = vperm.xlu1 %4371, %v3926_v35  }
 0xdcd   :  { %v3508_v55 = vpop.permute.xlu1 %3507  ;;  %4222 = vmatprep.subr.bf16.mxu0 %v3737_v29  ;;  %3929 = vperm.xlu0 %4370, %v3925_v22  }
 0xdce   :  { %v3516_v34 = vsel %vm3145_vm12, %v3496_v21, %v3508_v55 }
 0xdcf   :  { %v3521_v46 = vmul.f32 %v3516_v34, %v6425_v31  ;;  %v3657_v31 = vmul.f32 %v3652_v0, %v6493_v63 }
 0xdd1   :  { %v3683_v54 = vrot.slane %v3521_v46, 4  ;;  %v3633_v18 = vpop.permute.xlu1 %3632 }
 0xdd3   :  { %v3684_v32 = vsel %vm485_vm5, %v3681_v8, %v3683_v54  ;;  %vm4016_vm5 = vcmask 15360  }
 0xdd4   :  { %v3729_v28 = vpack.c.bf16 %v3684_v32, %v3682_v11 }
 0xdd5   :  { %v3645_v43 = vpop.permute.xlu1 %3644 }
 0xdd6   :  { %v3653_v41 = vsel %vm514_vm15, %v3633_v18, %v3645_v43  ;;  %4223 = vmatpush3.bf16.msra.mxu0 %v3729_v28  ;;  %v3807_v62 = vpop.permute.xlu0 %3806 }
 0xdd7   :  { %v3658_v40 = vmul.f32 %v3653_v41, %v6493_v63  ;;  %v3824_v36 = vmul.f32 %v3807_v62, %v3796_v42 }
 0xdd9   :  { %v3738_v56 = vpack.c.bf16 %v3658_v40, %v3657_v31 }
 0xdda   :  { %v3822_v37 = vpop.permute.xlu0 %3821 }
 0xddb   :  { %4298 = vmatprep.subr.msk.bf16.mxu0 %vm475_vm9, %v3738_v56 }
 0xddc   :  { %4225 = vmatpush3.bf16.msra.mxu0 %v3730_v20 }
 0xddf   :  { %3788 = vmatmul.mubr.bf16.vlgmr.msra.gmra.mrb[32].mxu0 %v3745_v27  ;;  %v3834_v63 = vpop.permute.xlu0 %3833 }
 0xde0   :  { %4286 = vmatprep.mubr.msk.f32.mxu0 %vm3000_vm6, %v3925_v22 }
 0xde6   :  { %v3812_v24 = vpop.permute.xlu1 %3811 }
 0xde7   :  { %v3825_v61 = vmul.f32 %v3812_v24, %v3797_v51 }
 0xde9   :  { %v3845_v59 = vadd.f32 %v3834_v63, %v3825_v61 }
 0xdea   :  { %v3817_v16 = vpop.permute.xlu1 %3816 }
 0xdeb   :  { %v3849_v60 = vmax.f32 %v3845_v59, 0.0  ;;  %v3826_v45 = vmul.f32 %v3817_v16, %v3798_v53 }
 0xdef   :  { %v3830_v44 = vpop.permute.xlu1 %3829 }
 0xdf0   :  { %v3844_v1 = vadd.f32 %v3830_v44, %v3824_v36 }
 0xdf2   :  { %v3848_v4 = vmax.f32 %v3844_v1, 0.0 }
 0xdf3   :  { %v3838_v6 = vpop.permute.xlu1 %3837 }
 0xdf4   :  { %v3852_v5 = vpack.c.bf16 %v3849_v60, %v3848_v4  ;;  %v3846_v14 = vadd.f32 %v3838_v6, %v3826_v45 }
 0xdf6   :  { %4274 = vmatprep.mubr.msk.bf16.mxu1 %vm3000_vm6, %v3852_v5  ;;  %v3850_v50 = vmax.f32 %v3846_v14, 0.0 }
 0xdf7   :  { %v3842_v26 = vpop.permute.xlu1 %3841 }
 0xe4b   :  { %v3935_v52 = vpop.permute.xlu1 %3934 }
 0xe4c   :  { %v3930_v55 = vpop.permute.xlu0 %3929 }
 0xeb2   :  { %v4226_v2 = vpop.f32.mrb[32].mxu0 }
 0xeb3   :  { %v4227_v10 = vpop.f32.mrb[33].mxu0 }
 0xeb4   :  { %v4228_v17 = vadd.f32 %v4227_v10, %v4226_v2  ;;  %v4229_v33 = vpop.f32.mrb[34].mxu0 }
 0xeb5   :  { %v4230_v19 = vpop.f32.mrb[35].mxu0 }
 0xeb6   :  { %3795 = vst.msk [vmem:[#allocation4 + $0x1c] sm:$0xf] %vm3328_vm0, %v4228_v17 }
 0xebd   :  { %v3799_v49 = vld [vmem:[#allocation4 + $0x18] sm:$0xff] }
 0xebe   :  { %v3827_v3 = vmul.f32 %v3822_v37, %v3799_v49 }
 0xec0   :  { %v3847_v12 = vadd.f32 %v3842_v26, %v3827_v3 }
 0xec2   :  { %v3851_v58 = vmax.f32 %v3847_v12, 0.0 }
 0xec4   :  { %v3853_v7 = vpack.c.bf16 %v3851_v58, %v3850_v50 }
 0xec6   :  { %4275 = vmatmul.mubr.msk.bf16.vlgmr.msra.gmra.mrb[28].mxu1 %vm3000_vm6, %v3853_v7 }
 0xf99   :  { %v4276_v15 = vpop.f32.mrb[28].mxu1 }
 0xf9a   :  { %v3910_v23 = vpop.f32.mrb[29].mxu1 }
 0xf9b   :  { %v4277_v21 = vpop.f32.mrb[30].mxu1 }
 0xf9c   :  { %v4293_v38 = vpack.c.bf16 %v4277_v21, %v4276_v15  ;;  %v3913_v47 = vpop.f32.mrb[31].mxu1 }
 0xf9d   :  { %v4289_v29 = vpack.c.bf16 %v3913_v47, %v3910_v23 }
 0xf9f   :  { %4290 = vmatprep.subr.bf16.mxu0 %v4289_v29 }
 0xfa0   :  { %4292 = vmatpush3.bf16.msra.mxu0 %v4289_v29 }
 0xfa1   :  { %4294 = vmatprep.subr.bf16.mxu0 %v4293_v38 }
 0xfa4   :  { %4296 = vmatpush3.bf16.msra.mxu0 %v4293_v38 }
 0xfa7   :  { %4287 = vmatmul.mubr.msk.f32.vlgmr.msra.gmra.mrb[36].mxu0 %vm3000_vm6, %v3926_v35 }
0x107a   :  { %v4288_v34 = vpop.f32.mrb[36].mxu0 }
0x107b   :  { %v4013_v46 = vadd.f32 %v4288_v34, %v3935_v52  ;;  %v4007_v8 = vpop.f32.mrb[37].mxu0 }
0x107c   :  { %v4008_v9 = vadd.f32 %v4007_v8, %v3930_v55 }
0x107d   :  { %v4018_v54 = vsel %vm4016_vm5, %v4013_v46, -inf }
0x107e   :  { %v4017_v18 = vsel %vm4016_vm5, %v4008_v9, -inf }
0x107f   :  { %v4019_v11 = vmax.f32 %v4017_v18, %v4018_v54 }
0x1081   :  { %v4020_v32 = vrot.slane %v4019_v11, 4 }
0x1083   :  { %v4021_v0 = vmax.f32 %v4019_v11, %v4020_v32 }
0x1085   :  { %v4022_v28 = vrot.slane %v4021_v0, 2 }
0x1087   :  { %v4023_v43 = vmax.f32 %v4021_v0, %v4022_v28 }
0x1089   :  { %v4024_v41 = vrot.slane %v4023_v43, 1 }
0x108b   :  { %v4025_v39 = vmax.f32 %v4023_v43, %v4024_v41 }
0x108d   :  { %v4026_v31 = vsub.f32 %v4008_v9, %v4025_v39  ;;  %v4027_v40 = vsub.f32 %v4013_v46, %v4025_v39 }
0x108f   :  { %v4028_v57 = vmul.f32 1.442695, %v4026_v31  ;;  %v4030_v25 = vmul.f32 1.442695, %v4027_v40 }
0x1091   :  { %4428 = vpow2.f32 %v4028_v57 }
0x1092   :  { %4430 = vpow2.f32 %v4030_v25 }
0x109b   :  { %v4429_v56 = vpop.eup %4428 }
0x109c   :  { %v4431_v20 = vpop.eup %4430  ;;  %v4032_v27 = vsel %vm4016_vm5, %v4429_v56, 0.0 }
0x109d   :  { %v4033_v62 = vsel %vm4016_vm5, %v4431_v20, 0.0 }
0x109e   :  { %v4034_v24 = vadd.f32 %v4033_v62, %v4032_v27 }
0x10a0   :  { %v4035_v37 = vrot.slane %v4034_v24, 4 }
0x10a2   :  { %v4036_v51 = vadd.f32 %v4035_v37, %v4034_v24 }
0x10a4   :  { %v4037_v61 = vrot.slane %v4036_v51, 2 }
0x10a6   :  { %v4038_v16 = vadd.f32 %v4037_v61, %v4036_v51 }
0x10a8   :  { %v4039_v63 = vrot.slane %v4038_v16, 1 }
0x10aa   :  { %v4040_v42 = vadd.f32 %v4039_v63, %v4038_v16 }
0x10ac   :  { %4432 = vlog2.f32 %v4040_v42 }
0x10b6   :  { %v4433_v36 = vpop.eup %4432 }
0x10b7   :  { %v4042_v59 = vmul.f32 0.6931472, %v4433_v36 }
0x10b9   :  { %v4043_v44 = vsub.f32 %v4026_v31, %v4042_v59  ;;  %v4044_v1 = vsub.f32 %v4027_v40, %v4042_v59 }
0x10bb   :  { %4045 = vst.msk [vmem:[%s6850_s6] sm:$0xff] %vm4016_vm5, %v4043_v44  ;;  %4046 = vst.msk [vmem:[%s6850_s6 + $0x8] sm:$0xff] %vm4016_vm5, %v4044_v1 }
0x10bc   :  { %4051 = vsyncpa [#allocation6], 1 }

</bundles_post_ra>
